<compile_context>
chip_gen: v7x
topology: tpu7x:2x2x1
jax: 0.10.0
libtpu: 0.0.40
codegen_flags: <defaults>
</compile_context>

<pallas_src>
import functools
import math

import jax
import jax.numpy as jnp
from jax import lax
from jax.experimental import pallas as pl
from jax.experimental.pallas import tpu as pltpu

WINDOW_SIZE = 11
SIGMA = 1.5
C1 = 0.01 ** 2
C2 = 0.03 ** 2


def _gaussian_1d(window_size: int, sigma: float):
    # Matches torch: exp(-(x - ws//2)^2 / (2 sigma^2)), normalized to sum 1.
    center = window_size // 2
    vals = [math.exp(-((x - center) ** 2) / (2.0 * sigma ** 2)) for x in range(window_size)]
    total = sum(vals)
    return tuple(v / total for v in vals)


def _round_up(x: int, m: int) -> int:
    return ((x + m - 1) // m) * m


def _cdiv(a: int, b: int) -> int:
    return -(-a // b)


def _band_matrix(n: int, weights, half: int) -> jnp.ndarray:
    """(n, n) banded Gaussian: B[r, c] = g[c - r + half] for |c - r| <= half.

    Right-multiplying (X @ B) or left-multiplying (B @ X) reproduces
    F.conv2d(padding=half) with zero padding at the array boundaries (the
    band is simply truncated there), and the window is symmetric so
    convolution == correlation.
    """
    w = jnp.asarray(weights, dtype=jnp.float32)
    idx = jnp.arange(n, dtype=jnp.int32)
    d = idx[None, :] - idx[:, None]                       # col - row
    tap = jnp.clip(d + half, 0, 2 * half)
    return jnp.where(jnp.abs(d) <= half, w[tap], 0.0).astype(jnp.float32)


def _ssim_kernel(x1_ref, x2_ref, bh_ref, bv_ref, out_ref, *, P, Hp, Wp, H):
    f32 = jnp.float32
    x1 = x1_ref[...]                                      # (P, Hp, Wp) f32
    x2 = x2_ref[...]
    bh = bh_ref[...]                                      # (Wp, Wp)
    bv = bv_ref[...]                                      # (Hp, Hp)

    rows = P * Hp
    # Hoisted once per grid step: broadcast B_v across the plane batch so the
    # vertical pass is a plain batched matmul (the well-supported MXU path).
    bvb = jnp.broadcast_to(bv[None, :, :], (P, Hp, Hp))

    def blur(f):                                          # (P, Hp, Wp) -> (P, Hp, Wp)
        h = jnp.dot(f.reshape(rows, Wp), bh,
                    preferred_element_type=f32,
                    precision=lax.Precision.HIGHEST)      # horizontal, MXU
        return jnp.einsum('pij,pjw->piw', bvb, h.reshape(P, Hp, Wp),
                          preferred_element_type=f32,
                          precision=lax.Precision.HIGHEST)  # vertical, MXU

    # Five independent blurs; no concatenate, no slab slicing.
    mu1 = blur(x1)
    mu2 = blur(x2)
    e11 = blur(x1 * x1)
    e22 = blur(x2 * x2)
    e12 = blur(x1 * x2)

    mu1_sq = mu1 * mu1
    mu2_sq = mu2 * mu2
    mu1_mu2 = mu1 * mu2
    sigma1_sq = e11 - mu1_sq
    sigma2_sq = e22 - mu2_sq
    sigma12 = e12 - mu1_mu2

    numer = (2.0 * mu1_mu2 + C1) * (2.0 * sigma12 + C2)
    denom = (mu1_sq + mu2_sq + C1) * (sigma1_sq + sigma2_sq + C2)
    r = pl.reciprocal(denom, approx=True)                 # EUP slot
    r = r * (2.0 - denom * r)                             # one Newton step
    ssim_map = numer * r                                  # (P, Hp, Wp)

    # Masked per-plane row reduction as a 2-D matmul on the MXU:
    # sel[p, r] = 1 iff flat row r belongs to plane p's valid image rows [0, H).
    ridx = lax.broadcasted_iota(jnp.int32, (P, rows), 1)
    pidx = lax.broadcasted_iota(jnp.int32, (P, rows), 0)
    base = pidx * Hp
    sel = ((ridx >= base) & (ridx < base + H)).astype(f32)        # (P, P*Hp)
    res = jnp.dot(sel, ssim_map.reshape(rows, Wp),
                  preferred_element_type=f32,
                  precision=lax.Precision.HIGHEST)                # (P, Wp)
    out_ref[...] = res[:, None, :]                                # (P, 1, Wp)


def ssim(img1: jnp.ndarray, img2: jnp.ndarray, window_size: int = WINDOW_SIZE,
         size_average: bool = True) -> jnp.ndarray:
    """SSIM forward matching the PyTorch module (window_size=11, sigma=1.5)."""
    assert img1.shape == img2.shape and img1.ndim == 4
    N, C, H, W = img1.shape
    NC = N * C
    half = window_size // 2
    weights = _gaussian_1d(window_size, SIGMA)

    # Per-plane padded dims (band matmuls handle the conv zero-padding, so the
    # image sits at the origin and we only pad up to (8, 128) tile multiples).
    Hp = _round_up(H, 8)
    Wp = _round_up(W, 128)

    bh = _band_matrix(Wp, weights, half)      # (Wp, Wp)
    bv = _band_matrix(Hp, weights, half)      # (Hp, Hp)

    # ---- generation-aware VMEM / grid sizing ----
    try:
        vmem_cap = int(pltpu.get_tpu_info().vmem_capacity_bytes)
    except Exception:                         # no TPU info available: be conservative
        vmem_cap = 64 * 1024 * 1024
    num_tc = 2 if vmem_cap <= 96 * 1024 * 1024 else 1   # v7x: 64 MiB & 2 TCs

    plane_bytes = Hp * Wp * 4
    LIVE_SLABS = 20                           # 2 in x 2 bufs + 5 blurred + ~9 temps
    fixed_bytes = 2 * 4 * (Wp * Wp + Hp * Hp)             # band matrices (x2 buffers)
    per_plane = LIVE_SLABS * plane_bytes + 4 * Hp * Hp    # slabs + bvb share
    budget = (vmem_cap * 7) // 10
    p_cap = max(1, (budget - fixed_bytes) // per_plane)
    p_cap = min(p_cap, 64)                    # keep sel / bvb side-structures small

    if num_tc > 1 and NC >= 2:
        # 2-TC parts: at least 2 grid steps and an even step count for balance.
        g_target = max(2, _cdiv(NC, p_cap))
        g_target += g_target % 2
        P = max(1, min(p_cap, _cdiv(NC, g_target)))
    else:
        # Single-TC parts: one big step when it fits VMEM.
        P = max(1, min(p_cap, NC))
    G = _cdiv(NC, P)
    NCp = G * P

    def prep(x):
        x = x.reshape(NC, H, W).astype(jnp.float32)
        return jnp.pad(x, ((0, NCp - NC), (0, Hp - H), (0, Wp - W)))
    # TODO(synk): for very large images, stream unpadded planes via
    # memory_space=pl.ANY + manual DMA (skip the host-side padded copy) and fall
    # back to an XLU-roll horizontal pass once Wp MACs/pixel rivals the MXU budget.

    x1 = prep(img1)
    x2 = prep(img2)

    est = (fixed_bytes + P * per_plane
           + 3 * P * P * Hp * 4              # sel + iotas
           + 4 * P * Wp * 4)                 # output buffers
    vmem_limit = max(est + (8 << 20), 32 << 20)
    vmem_limit = int(min(vmem_limit, int(vmem_cap * 0.9)))

    kernel = functools.partial(_ssim_kernel, P=P, Hp=Hp, Wp=Wp, H=H)

    out = pl.pallas_call(
        kernel,
        out_shape=jax.ShapeDtypeStruct((NCp, 1, Wp), jnp.float32),
        grid_spec=pltpu.PrefetchScalarGridSpec(
            num_scalar_prefetch=0,
            grid=(G,),
            in_specs=[
                pl.BlockSpec((P, Hp, Wp), lambda g: (g, 0, 0)),
                pl.BlockSpec((P, Hp, Wp), lambda g: (g, 0, 0)),
                pl.BlockSpec((Wp, Wp), lambda g: (0, 0)),
                pl.BlockSpec((Hp, Hp), lambda g: (0, 0)),
            ],
            out_specs=pl.BlockSpec((P, 1, Wp), lambda g: (g, 0, 0)),
        ),
        compiler_params=pltpu.CompilerParams(
            dimension_semantics=("parallel",),
            vmem_limit_bytes=vmem_limit,
        ),
    )(x1, x2, bh, bv)

    # Tiny finish on the host side: keep only valid columns, mean per plane.
    row_sums = out[:NC, 0, :W]                            # (NC, W)
    plane_means = jnp.sum(row_sums, axis=-1) / float(H * W)
    if size_average:
        # mean over all N*C*H*W elements == mean of equal-sized plane means
        return jnp.mean(plane_means)
    # size_average=False: per-batch mean over (C, H, W) == .mean(1).mean(1).mean(1)
    return jnp.mean(plane_means.reshape(N, C), axis=1)


if __name__ == "__main__":
    key = jax.random.PRNGKey(0)
    k1, k2 = jax.random.split(key)
    N, C, H, W = 2, 4, 16, 16
    img1 = jax.random.uniform(k1, (N, C, H, W), dtype=jnp.float32)
    img2 = jax.random.uniform(k2, (N, C, H, W), dtype=jnp.float32)

    out = ssim(img1, img2, size_average=True)
    out = jax.block_until_ready(out)
    assert out.shape == () and bool(jnp.isfinite(out))

    out_nb = ssim(img1, img2, size_average=False)
    out_nb = jax.block_until_ready(out_nb)
    assert out_nb.shape == (N,) and bool(jnp.all(jnp.isfinite(out_nb)))

    print("KERNEL_OK")
</pallas_src>

<mosaic_0001>
module attributes {stable_mosaic.version = 11 : i64} {
  func.func @_ssim_kernel(%arg0: i32, %arg1: memref<4x16x128xf32, #tpu.memory_space<vmem>>, %arg2: memref<4x16x128xf32, #tpu.memory_space<vmem>>, %arg3: memref<128x128xf32, #tpu.memory_space<vmem>>, %arg4: memref<16x16xf32, #tpu.memory_space<vmem>>, %arg5: memref<4x1x128xf32, #tpu.memory_space<vmem>>) attributes {dimension_semantics = [#tpu.dimension_semantics<parallel>], iteration_bounds = array<i64: 2>, scalar_prefetch = 0 : i64, scratch_operands = 0 : i64, tpu.core_type = #tpu.core_type<tc>, window_params = [{transform_indices = @transform_0, window_bounds = array<i64: 4, 16, 128>}, {transform_indices = @transform_1, window_bounds = array<i64: 4, 16, 128>}, {pipeline_mode = #tpu.pipeline_mode<synchronous>, transform_indices = @transform_2, window_bounds = array<i64: 128, 128>}, {pipeline_mode = #tpu.pipeline_mode<synchronous>, transform_indices = @transform_3, window_bounds = array<i64: 16, 16>}, {transform_indices = @transform_4, window_bounds = array<i64: 4, 1, 128>}]} {
    %c0 = arith.constant 0 : index
    %c0_0 = arith.constant 0 : index
    %c0_1 = arith.constant 0 : index
    %0 = vector.load %arg1[%c0, %c0_0, %c0_1] : memref<4x16x128xf32, #tpu.memory_space<vmem>>, vector<4x16x128xf32>
    %c0_2 = arith.constant 0 : index
    %c0_3 = arith.constant 0 : index
    %c0_4 = arith.constant 0 : index
    %1 = vector.load %arg2[%c0_2, %c0_3, %c0_4] : memref<4x16x128xf32, #tpu.memory_space<vmem>>, vector<4x16x128xf32>
    %c0_5 = arith.constant 0 : index
    %c0_6 = arith.constant 0 : index
    %2 = vector.load %arg3[%c0_5, %c0_6] : memref<128x128xf32, #tpu.memory_space<vmem>>, vector<128x128xf32>
    %c0_7 = arith.constant 0 : index
    %c0_8 = arith.constant 0 : index
    %3 = vector.load %arg4[%c0_7, %c0_8] : memref<16x16xf32, #tpu.memory_space<vmem>>, vector<16x16xf32>
    %4 = vector.shape_cast %3 : vector<16x16xf32> to vector<1x16x16xf32>
    %5 = vector.shape_cast %4 : vector<1x16x16xf32> to vector<1x16x16xf32>
    %6 = vector.broadcast %5 : vector<1x16x16xf32> to vector<4x16x16xf32>
    %7 = vector.shape_cast %0 : vector<4x16x128xf32> to vector<64x128xf32>
    %cst = arith.constant dense<0.000000e+00> : vector<64x128xf32>
    %8 = tpu.matmul %7, %2, %cst {dimension_numbers = #tpu.dot_dimension_numbers<[1], [0], [0], [1], [0, 0, 1, 1], [], []>, precision = #tpu.contract_precision<fp32>} : vector<64x128xf32>, vector<128x128xf32>, vector<64x128xf32> -> vector<64x128xf32>
    %9 = vector.shape_cast %8 : vector<64x128xf32> to vector<4x16x128xf32>
    "tpu.trace_start"() <{level = 10 : i32, message = "pij,pjw->piw"}> : () -> ()
    %cst_9 = arith.constant dense<0.000000e+00> : vector<4x16x128xf32>
    %10 = tpu.matmul %6, %9, %cst_9 {dimension_numbers = #tpu.dot_dimension_numbers<[2], [1], [1], [2], [0, 0, 0, 1, 1, 2], [0], [0]>, precision = #tpu.contract_precision<fp32>} : vector<4x16x16xf32>, vector<4x16x128xf32>, vector<4x16x128xf32> -> vector<4x16x128xf32>
    "tpu.trace_stop"() : () -> ()
    %11 = vector.shape_cast %1 : vector<4x16x128xf32> to vector<64x128xf32>
    %cst_10 = arith.constant dense<0.000000e+00> : vector<64x128xf32>
    %12 = tpu.matmul %11, %2, %cst_10 {dimension_numbers = #tpu.dot_dimension_numbers<[1], [0], [0], [1], [0, 0, 1, 1], [], []>, precision = #tpu.contract_precision<fp32>} : vector<64x128xf32>, vector<128x128xf32>, vector<64x128xf32> -> vector<64x128xf32>
    %13 = vector.shape_cast %12 : vector<64x128xf32> to vector<4x16x128xf32>
    "tpu.trace_start"() <{level = 10 : i32, message = "pij,pjw->piw"}> : () -> ()
    %cst_11 = arith.constant dense<0.000000e+00> : vector<4x16x128xf32>
    %14 = tpu.matmul %6, %13, %cst_11 {dimension_numbers = #tpu.dot_dimension_numbers<[2], [1], [1], [2], [0, 0, 0, 1, 1, 2], [0], [0]>, precision = #tpu.contract_precision<fp32>} : vector<4x16x16xf32>, vector<4x16x128xf32>, vector<4x16x128xf32> -> vector<4x16x128xf32>
    "tpu.trace_stop"() : () -> ()
    %15 = arith.mulf %0, %0 : vector<4x16x128xf32>
    %16 = vector.shape_cast %15 : vector<4x16x128xf32> to vector<64x128xf32>
    %cst_12 = arith.constant dense<0.000000e+00> : vector<64x128xf32>
    %17 = tpu.matmul %16, %2, %cst_12 {dimension_numbers = #tpu.dot_dimension_numbers<[1], [0], [0], [1], [0, 0, 1, 1], [], []>, precision = #tpu.contract_precision<fp32>} : vector<64x128xf32>, vector<128x128xf32>, vector<64x128xf32> -> vector<64x128xf32>
    %18 = vector.shape_cast %17 : vector<64x128xf32> to vector<4x16x128xf32>
    "tpu.trace_start"() <{level = 10 : i32, message = "pij,pjw->piw"}> : () -> ()
    %cst_13 = arith.constant dense<0.000000e+00> : vector<4x16x128xf32>
    %19 = tpu.matmul %6, %18, %cst_13 {dimension_numbers = #tpu.dot_dimension_numbers<[2], [1], [1], [2], [0, 0, 0, 1, 1, 2], [0], [0]>, precision = #tpu.contract_precision<fp32>} : vector<4x16x16xf32>, vector<4x16x128xf32>, vector<4x16x128xf32> -> vector<4x16x128xf32>
    "tpu.trace_stop"() : () -> ()
    %20 = arith.mulf %1, %1 : vector<4x16x128xf32>
    %21 = vector.shape_cast %20 : vector<4x16x128xf32> to vector<64x128xf32>
    %cst_14 = arith.constant dense<0.000000e+00> : vector<64x128xf32>
    %22 = tpu.matmul %21, %2, %cst_14 {dimension_numbers = #tpu.dot_dimension_numbers<[1], [0], [0], [1], [0, 0, 1, 1], [], []>, precision = #tpu.contract_precision<fp32>} : vector<64x128xf32>, vector<128x128xf32>, vector<64x128xf32> -> vector<64x128xf32>
    %23 = vector.shape_cast %22 : vector<64x128xf32> to vector<4x16x128xf32>
    "tpu.trace_start"() <{level = 10 : i32, message = "pij,pjw->piw"}> : () -> ()
    %cst_15 = arith.constant dense<0.000000e+00> : vector<4x16x128xf32>
    %24 = tpu.matmul %6, %23, %cst_15 {dimension_numbers = #tpu.dot_dimension_numbers<[2], [1], [1], [2], [0, 0, 0, 1, 1, 2], [0], [0]>, precision = #tpu.contract_precision<fp32>} : vector<4x16x16xf32>, vector<4x16x128xf32>, vector<4x16x128xf32> -> vector<4x16x128xf32>
    "tpu.trace_stop"() : () -> ()
    %25 = arith.mulf %0, %1 : vector<4x16x128xf32>
    %26 = vector.shape_cast %25 : vector<4x16x128xf32> to vector<64x128xf32>
    %cst_16 = arith.constant dense<0.000000e+00> : vector<64x128xf32>
    %27 = tpu.matmul %26, %2, %cst_16 {dimension_numbers = #tpu.dot_dimension_numbers<[1], [0], [0], [1], [0, 0, 1, 1], [], []>, precision = #tpu.contract_precision<fp32>} : vector<64x128xf32>, vector<128x128xf32>, vector<64x128xf32> -> vector<64x128xf32>
    %28 = vector.shape_cast %27 : vector<64x128xf32> to vector<4x16x128xf32>
    "tpu.trace_start"() <{level = 10 : i32, message = "pij,pjw->piw"}> : () -> ()
    %cst_17 = arith.constant dense<0.000000e+00> : vector<4x16x128xf32>
    %29 = tpu.matmul %6, %28, %cst_17 {dimension_numbers = #tpu.dot_dimension_numbers<[2], [1], [1], [2], [0, 0, 0, 1, 1, 2], [0], [0]>, precision = #tpu.contract_precision<fp32>} : vector<4x16x16xf32>, vector<4x16x128xf32>, vector<4x16x128xf32> -> vector<4x16x128xf32>
    "tpu.trace_stop"() : () -> ()
    %30 = arith.mulf %10, %10 : vector<4x16x128xf32>
    %31 = arith.mulf %14, %14 : vector<4x16x128xf32>
    %32 = arith.mulf %10, %14 : vector<4x16x128xf32>
    %33 = arith.subf %19, %30 : vector<4x16x128xf32>
    %34 = arith.subf %24, %31 : vector<4x16x128xf32>
    %35 = arith.subf %29, %32 : vector<4x16x128xf32>
    %cst_18 = arith.constant 2.000000e+00 : f32
    %36 = vector.broadcast %cst_18 : f32 to vector<4x16x128xf32>
    %37 = arith.mulf %36, %32 : vector<4x16x128xf32>
    %cst_19 = arith.constant 9.99999974E-5 : f32
    %38 = vector.broadcast %cst_19 : f32 to vector<4x16x128xf32>
    %39 = arith.addf %37, %38 : vector<4x16x128xf32>
    %cst_20 = arith.constant 2.000000e+00 : f32
    %40 = vector.broadcast %cst_20 : f32 to vector<4x16x128xf32>
    %41 = arith.mulf %40, %35 : vector<4x16x128xf32>
    %cst_21 = arith.constant 8.99999984E-4 : f32
    %42 = vector.broadcast %cst_21 : f32 to vector<4x16x128xf32>
    %43 = arith.addf %41, %42 : vector<4x16x128xf32>
    %44 = arith.mulf %39, %43 : vector<4x16x128xf32>
    %45 = arith.addf %30, %31 : vector<4x16x128xf32>
    %cst_22 = arith.constant 9.99999974E-5 : f32
    %46 = vector.broadcast %cst_22 : f32 to vector<4x16x128xf32>
    %47 = arith.addf %45, %46 : vector<4x16x128xf32>
    %48 = arith.addf %33, %34 : vector<4x16x128xf32>
    %cst_23 = arith.constant 8.99999984E-4 : f32
    %49 = vector.broadcast %cst_23 : f32 to vector<4x16x128xf32>
    %50 = arith.addf %48, %49 : vector<4x16x128xf32>
    %51 = arith.mulf %47, %50 : vector<4x16x128xf32>
    %52 = tpu.reciprocal %51 {approx = true} : vector<4x16x128xf32> -> vector<4x16x128xf32>
    %53 = arith.mulf %51, %52 : vector<4x16x128xf32>
    %cst_24 = arith.constant 2.000000e+00 : f32
    %54 = vector.broadcast %cst_24 : f32 to vector<4x16x128xf32>
    %55 = arith.subf %54, %53 : vector<4x16x128xf32>
    %56 = arith.mulf %52, %55 : vector<4x16x128xf32>
    %57 = arith.mulf %44, %56 : vector<4x16x128xf32>
    %58 = tpu.iota {dimensions = array<i32: 1>} : vector<4x64xi32>
    %59 = tpu.iota {dimensions = array<i32: 0>} : vector<4x64xi32>
    %c16_i32 = arith.constant 16 : i32
    %60 = vector.broadcast %c16_i32 : i32 to vector<4x64xi32>
    %61 = arith.muli %59, %60 : vector<4x64xi32>
    %62 = arith.cmpi sge, %58, %61 : vector<4x64xi32>
    %c16_i32_25 = arith.constant 16 : i32
    %63 = vector.broadcast %c16_i32_25 : i32 to vector<4x64xi32>
    %64 = arith.addi %61, %63 : vector<4x64xi32>
    %65 = arith.cmpi slt, %58, %64 : vector<4x64xi32>
    %66 = arith.andi %62, %65 : vector<4x64xi1>
    %67 = arith.extui %66 : vector<4x64xi1> to vector<4x64xi32>
    %68 = arith.sitofp %67 : vector<4x64xi32> to vector<4x64xf32>
    %69 = vector.shape_cast %57 : vector<4x16x128xf32> to vector<64x128xf32>
    %cst_26 = arith.constant dense<0.000000e+00> : vector<4x128xf32>
    %70 = tpu.matmul %68, %69, %cst_26 {dimension_numbers = #tpu.dot_dimension_numbers<[1], [0], [0], [1], [0, 0, 1, 1], [], []>, precision = #tpu.contract_precision<fp32>} : vector<4x64xf32>, vector<64x128xf32>, vector<4x128xf32> -> vector<4x128xf32>
    %71 = vector.shape_cast %70 : vector<4x128xf32> to vector<4x1x128xf32>
    %c0_27 = arith.constant 0 : index
    %c0_28 = arith.constant 0 : index
    %c0_29 = arith.constant 0 : index
    %72 = vector.load %arg5[%c0_27, %c0_28, %c0_29] : memref<4x1x128xf32, #tpu.memory_space<vmem>>, vector<4x1x128xf32>
    tpu.vector_store %arg5[%c0_27, %c0_28, %c0_29], %71 {strides = array<i32>} : memref<4x1x128xf32, #tpu.memory_space<vmem>>, vector<4x1x128xf32>,
    return
  }
  func.func @transform_0(%arg0: i32) -> (i32, i32, i32) {
    %c0_i32 = arith.constant 0 : i32
    %c0_i32_0 = arith.constant 0 : i32
    %c0_i32_1 = arith.constant 0 : i32
    return %arg0, %c0_i32, %c0_i32_0 : i32, i32, i32
  }
  func.func @transform_1(%arg0: i32) -> (i32, i32, i32) {
    %c0_i32 = arith.constant 0 : i32
    %c0_i32_0 = arith.constant 0 : i32
    %c0_i32_1 = arith.constant 0 : i32
    return %arg0, %c0_i32, %c0_i32_0 : i32, i32, i32
  }
  func.func @transform_2(%arg0: i32) -> (i32, i32) {
    %c0_i32 = arith.constant 0 : i32
    %c0_i32_0 = arith.constant 0 : i32
    %c0_i32_1 = arith.constant 0 : i32
    return %c0_i32, %c0_i32_0 : i32, i32
  }
  func.func @transform_3(%arg0: i32) -> (i32, i32) {
    %c0_i32 = arith.constant 0 : i32
    %c0_i32_0 = arith.constant 0 : i32
    %c0_i32_1 = arith.constant 0 : i32
    return %c0_i32, %c0_i32_0 : i32, i32
  }
  func.func @transform_4(%arg0: i32) -> (i32, i32, i32) {
    %c0_i32 = arith.constant 0 : i32
    %c0_i32_0 = arith.constant 0 : i32
    %c0_i32_1 = arith.constant 0 : i32
    return %arg0, %c0_i32, %c0_i32_0 : i32, i32, i32
  }
}

</mosaic_0001>

<bundles_post_ra>
// kernel: tpu_custom_call.1
= control target key start
LH: loop header
LB: loop body
LE: loop exit
PB: predicated region body
PF: predicated region fallthrough
CT: control target
= control target key end

     0   :  { %s24438_s0 = inlined_call_operand.hbm [shape: f32[8,16,128], index: 0, kind: input, shape index: {}]   ;;  %s24439_s1 = inlined_call_operand.hbm [shape: f32[8,16,128], index: 1, kind: input, shape index: {}]   ;;  %s24440_s2 = inlined_call_operand.hbm [shape: f32[128,128], index: 2, kind: input, shape index: {}]   ;;  %s24441_s3 = inlined_call_operand.hbm [shape: f32[16,16], index: 3, kind: input, shape index: {}]   ;;  %s24442_s4 = inlined_call_operand.hbm [shape: f32[8,1,128], index: 4, kind: output, shape index: {}]  }
   0x1   :  { %24576 = sst [smem:[#allocation66_spill]] %s24438_s0 }
   0x2   :  { %9 = vsyncpa [#allocation3], 0 }
   0x3   :  { %11 = vsyncpa [#allocation3 + $0x1], 0 }
   0x4   :  { %12 = vsyncpa [#allocation6], 0 }
   0x5   :  { %14 = vsyncpa [#allocation6 + $0x1], 0 }
   0x6   :  { %15 = vsyncpa [#allocation9], 0 }
   0x7   :  { %16 = vsyncpa [#allocation4], 0 }
   0x8   :  { %18 = vsyncpa [#allocation4 + $0x1], 0  ;;  %s21826_s15 = smov 0   ;;  %s21828_s16 = smov 0  }
   0x9   :  { %s21830_s17 = smov 0   ;;  %s21832_s18 = smov 0  }
   0xa LB: > { %s21847_s19 = sadd.s32 4294967295, %s21786_s18   ;;  %s15987_s20 = sadd.s32 4294967294, %s21786_s18   ;;  %s21786_s18 = sphi %s21832_s18, %s24800_s18   ;;  %s21782_s17 = sphi %s21830_s17, %s24799_s17   ;;  %s21778_s16 = sphi %s21828_s16, %s24798_s16   ;;  %s21774_s15 = sphi %s21826_s15, %s24797_s15  }
   0xb   : > { %p44_p0 = scmp.ne.s32.totalorder %s21778_s16, %s21774_s15  ;;  %p24443_p1 = scmp.eq.s32.totalorder %s21847_s19, 0 }
   0xc   : > { %p142_p3 = scmp.eq.s32.totalorder %s15987_s20, 1  ;;  %p15988_p5 = scmp.ge.s32.totalorder %s21786_s18, 1 }
   0xd   : > { %p21856_p4 = por %p24443_p1, %p44_p0  ;;  %p149_p7 = scmp.lt.s32.totalorder %s21786_s18, 3 }
   0xe   : > { %p21861_p6 = por %p142_p3, %p44_p0  ;;  %s21788_s24 = smov [#allocation7]  }
   0xf   : > { %s24577_s21 = scalar_select %p21856_p4, 1, 0 }
  0x10   : > { %s24578_s22 = scalar_select %p21861_p6, 1, 0 }
  0x11   : > { %p21866_p8 = pnand %p15988_p5, %p149_p7  ;;  %s161_s25 = sshll.u32 %s21788_s24, 4  ;;  %s21870_s25 = int_to_ptr.vmem [resolvable:$true] %s161_s25 }
  0x12   : > { %s21789_s27 = smov [#allocation8]   ;;  %s21592_s5 = scalar_lea.hbm %s24440_s2, 2048 }
  0x13   : > { %p21486_p9 = pneg %p21866_p8  ;;  %s174_s28 = sshll.u32 %s21789_s27, 4  ;;  %s21881_s28 = int_to_ptr.vmem [resolvable:$true] %s174_s28 }
  0x14   : > { %p21593_p12 = scmp.ne.s32.totalorder %s24440_s2, %s21592_s5  ;;  %p21599_p5 = scmp.lt.u32.totalorder %s21592_s5, %s24440_s2 }
  0x15   : > { %p21877_p11 = pnand %p21486_p9, %p24443_p1 }
  0x17   : > { %p21594_p13 = pneg %p21877_p11 }
  0x19   : > { %p21595_p0 = pnand %p21594_p13, %p21593_p12 }
  0x1b   : > { %p21596_p3 = pneg %p21595_p0 }
  0x1d   : > { %p21601_p7 = pnand %p21599_p5, %p21596_p3 }
  0x1f   : > { %21604 = shalt.err (!%p21601_p7)
}
  0x20   : > { %s21605_s10 = scalar_lea.vmem %s21870_s25, 2048  ;;  %p21613_p2 = scmp.lt.s32.totalorder %s21870_s25, %s21870_s25 }
  0x21   : > { %p21606_p9 = scmp.ne.s32.totalorder %s21870_s25, %s21605_s10  ;;  %p21614_p12 = scmp.lt.s32.totalorder %s21605_s10, %s21605_s10 }
  0x23   : > { %p21608_p10 = pnand %p21606_p9, %p21594_p13  ;;  %p21615_p0 = por %p21614_p12, %p21613_p2 }
  0x25   : > { %p21609_p1 = pneg %p21608_p10 }
  0x27   : > { %p21616_p6 = pnand %p21615_p0, %p21609_p1 }
  0x29   : > { %21619 = shalt.err (!%p21616_p6)
}
  0x2a   : > { %s24444_s11 = smov 128   ;;  %s24446_s12 = smov 8  }
  0x2b   : > { %21489 = dma.hbm_to_vmem [thread:$0]  (!%p21877_p11), %s24440_s2, 2048, %s21870_s25, [#allocation6], %s24444_s11, %s24444_s11, %s24446_s12  }
  0x2c   : > { %s21620_s27 = scalar_lea.hbm %s24441_s3, 256 }
  0x2d   : > { %p21621_p1 = scmp.ne.s32.totalorder %s24441_s3, %s21620_s27  ;;  %p21627_p10 = scmp.lt.u32.totalorder %s21620_s27, %s24441_s3 }
  0x2f   : > { %p21623_p2 = pnand %p21621_p1, %p21594_p13 }
  0x31   : > { %p21624_p6 = pneg %p21623_p2 }
  0x33   : > { %p21629_p3 = pnand %p21627_p10, %p21624_p6 }
  0x35   : > { %21632 = shalt.err (!%p21629_p3)
}
  0x36   : > { %s21633_s25 = scalar_lea.vmem %s21881_s28, 256  ;;  %p21641_p12 = scmp.lt.s32.totalorder %s21881_s28, %s21881_s28 }
  0x37   : > { %p21634_p5 = scmp.ne.s32.totalorder %s21881_s28, %s21633_s25  ;;  %p21642_p0 = scmp.lt.s32.totalorder %s21633_s25, %s21633_s25 }
  0x39   : > { %p21636_p7 = pnand %p21634_p5, %p21594_p13  ;;  %p21643_p1 = por %p21642_p0, %p21641_p12 }
  0x3b   : > { %p21637_p9 = pneg %p21636_p7 }
  0x3d   : > { %p21644_p2 = pnand %p21643_p1, %p21637_p9 }
  0x3f   : > { %21647 = shalt.err (!%p21644_p2)
}
  0x40   : > { %21492 = dma.hbm_to_vmem [thread:$0]  (!%p21877_p11), %s24441_s3, 256, %s21881_s28, [#allocation9], %s24444_s11, %s24444_s11, %s24446_s12  }
  0x41   : > { %s21942_s26 = sadd.s32 1, %s21786_s18   ;;  %s31_s9 = sadd.s32 1, %s21782_s17 }
  0x42   : > { %s28_s10 = ssub.s32 %s21786_s18, %s21942_s26  ;;  %p38_p13 = scmp.ne.s32.totalorder %s21782_s17, %s21778_s16 }
  0x43   : > { %p29_p6 = scmp.eq.s32.totalorder %s28_s10, 0  ;;  %p39_p10 = scmp.eq.s32.totalorder %s21786_s18, 0 }
  0x44   : > { %p24581_p3 = scmp.eq.s32.totalorder %s21847_s19, 1  ;;  %p21506_p7 = scmp.lt.s32.totalorder %s21786_s18, 2 }
  0x45   : > { %s21958_s14 = scalar_select %p29_p6, %s21782_s17, %s31_s9  }
  0x46   : > { %p21952_p5 = por %p24581_p3, %p38_p13  ;;  %p40_p9 = por %p39_p10, %p38_p13 }
  0x47   : > { %s188_s20 = sand.u32 1, %s21782_s17   ;;  %s16018_s28 = sshll.u32 %s21786_s18, 10 }
  0x48   : > { %s24582_s13 = scalar_select %p21952_p5, 1, 0 }
  0x49   : > { %s15992_s24 = sshll.u32 %s188_s20, 6  ;;  %s24583_s0 = sld [smem:[#allocation66_spill]] }
  0x4a   : > { %s192_s5 = scalar_lea.vmem [#allocation2], %s15992_s24  ;;  %p21969_p11 = pnand %p21506_p7, %p40_p9 }
  0x4b   : > { %s200_s6 = sshll.u32 %s192_s5, 4  ;;  %s21976_s9 = scalar_lea.hbm %s24439_s1, %s16018_s28  ;;  %s21967_s6 = int_to_ptr.vmem [resolvable:$true] %s200_s6 }
  0x4c   : > { %s214_s10 = scalar_lea.vmem [#allocation5], %s15992_s24  ;;  %s21980_s29 = scalar_lea.sflag [#allocation3], %s188_s20 }
  0x4d   : > { %s21978_s27 = sshll.u32 %s214_s10, 4  ;;  %p21650_p0 = pneg %p21969_p11  ;;  %s22012_s27 = int_to_ptr.vmem [resolvable:$true] %s21978_s27 }
  0x4f   : > { %s21965_s30 = scalar_lea.hbm %s24583_s0, %s16018_s28  ;;  %s21653_s7 = scalar_lea.hbm %s24583_s0, 2048 }
  0x50   : > { %s21648_s5 = scalar_lea.hbm %s21965_s30, 1024  ;;  %p21654_p13 = scmp.lt.u32.totalorder %s21965_s30, %s24583_s0 }
  0x51   : > { %p21649_p12 = scmp.ne.s32.totalorder %s21965_s30, %s21648_s5  ;;  %p21655_p6 = scmp.lt.u32.totalorder %s21653_s7, %s21648_s5 }
  0x52   : > { %p21657_p3 = scmp.lt.u32.totalorder %s21648_s5, %s21965_s30 }
  0x53   : > { %p21651_p1 = pnand %p21650_p0, %p21649_p12  ;;  %p21656_p10 = por %p21655_p6, %p21654_p13 }
  0x55   : > { %p21652_p2 = pneg %p21651_p1  ;;  %p21658_p7 = por %p21657_p3, %p21656_p10 }
  0x57   : > { %p21659_p9 = pnand %p21658_p7, %p21652_p2 }
  0x59   : > { %21662 = shalt.err (!%p21659_p9)
}
  0x5a   : > { %s21663_s20 = scalar_lea.vmem %s21967_s6, 1024  ;;  %s21792_s11 = smov [#allocation2]  }
  0x5b   : > { %p21664_p12 = scmp.ne.s32.totalorder %s21967_s6, %s21663_s20  ;;  %s21668_s12 = sshll.u32 %s21792_s11, 4  ;;  %s21669_s12 = int_to_ptr.vmem [resolvable:$false] %s21668_s12 }
  0x5c   : > { %s21670_s24 = scalar_lea.vmem %s21669_s12, 2048  ;;  %p21671_p4 = scmp.lt.s32.totalorder %s21967_s6, %s21669_s12 }
  0x5d   : > { %p21666_p1 = pnand %p21664_p12, %p21650_p0  ;;  %p21672_p13 = scmp.lt.s32.totalorder %s21670_s24, %s21663_s20 }
  0x5f   : > { %p21667_p5 = pneg %p21666_p1  ;;  %p21673_p6 = por %p21672_p13, %p21671_p4 }
  0x61   : > { %p21674_p10 = pnand %p21673_p6, %p21667_p5 }
  0x63   : > { %21677 = shalt.err (!%p21674_p10)
}
  0x64   : > { %s24585_s10 = smov 8   ;;  %s24586_s5 = smov 128  }
  0x65   : > { %21496 = dma.hbm_to_vmem [thread:$0]  (!%p21969_p11), %s21965_s30, 1024, %s21967_s6, %s21980_s29, %s24586_s5, %s24586_s5, %s24585_s10  }
  0x66   : > { %s210_s7 = sand.u32 1, %s21786_s18   ;;  %s21678_s28 = scalar_lea.hbm %s21976_s9, 1024 }
  0x67   : > { %s22015_s8 = scalar_lea.sflag [#allocation6], %s210_s7  ;;  %p21679_p4 = scmp.ne.s32.totalorder %s21976_s9, %s21678_s28 }
  0x68   : > { %s21683_s12 = scalar_lea.hbm %s24439_s1, 2048  ;;  %p21684_p3 = scmp.lt.u32.totalorder %s21976_s9, %s24439_s1 }
  0x69   : > { %p21681_p5 = pnand %p21679_p4, %p21650_p0  ;;  %p21685_p7 = scmp.lt.u32.totalorder %s21683_s12, %s21678_s28 }
  0x6a   : > { %p21687_p12 = scmp.lt.u32.totalorder %s21678_s28, %s21976_s9 }
  0x6b   : > { %p21682_p2 = pneg %p21681_p5  ;;  %p21686_p9 = por %p21685_p7, %p21684_p3 }
  0x6d   : > { %p21688_p1 = por %p21687_p12, %p21686_p9 }
  0x6f   : > { %p21689_p13 = pnand %p21688_p1, %p21682_p2 }
  0x71   : > { %21692 = shalt.err (!%p21689_p13)
}
  0x72   : > { %s21693_s30 = scalar_lea.vmem %s22012_s27, 1024  ;;  %s21793_s6 = smov [#allocation5]  }
  0x73   : > { %p21694_p6 = scmp.ne.s32.totalorder %s22012_s27, %s21693_s30  ;;  %s21698_s29 = sshll.u32 %s21793_s6, 4  ;;  %s21699_s29 = int_to_ptr.vmem [resolvable:$false] %s21698_s29 }
  0x74   : > { %s21700_s0 = scalar_lea.vmem %s21699_s29, 2048  ;;  %p21701_p5 = scmp.lt.s32.totalorder %s22012_s27, %s21699_s29 }
  0x75   : > { %p21696_p10 = pnand %p21694_p6, %p21650_p0  ;;  %p21702_p3 = scmp.lt.s32.totalorder %s21700_s0, %s21693_s30 }
  0x77   : > { %p21697_p4 = pneg %p21696_p10  ;;  %p21703_p7 = por %p21702_p3, %p21701_p5 }
  0x79   : > { %p21704_p9 = pnand %p21703_p7, %p21697_p4 }
  0x7b   : > { %21707 = shalt.err (!%p21704_p9)
}
  0x7c   : > { %21499 = dma.hbm_to_vmem [thread:$0]  (!%p21969_p11), %s21976_s9, 1024, %s22012_s27, %s22015_s8, %s24586_s5, %s24586_s5, %s24585_s10  }
  0x7d   : > { %234 = sbr.rel (%p21866_p8) target bundleno = 2834 (0xb12), region = 36 }
  0x84   : > { %s22047_s7 = sand.u32 1, %s21778_s16   ;;  %p24587_p0 = scmp.ne.s32.totalorder %s24577_s21, 0 }
  0x85   : > { %s16001_s28 = sshll.u32 %s22047_s7, 6  ;;  %s237_s20 = scalar_lea.sflag [#allocation3], %s22047_s7 }
  0x86   : > { %s22051_s11 = scalar_lea.vmem [#allocation2], %s16001_s28 }
  0x87   : > { %21753 = dma.done.wait (%p24587_p0), %s237_s20, 1024  }
  0x88   : > { %21755 = vsyncadd (%p24587_p0), %s237_s20, 4294966272  ;;  %s245_s25 = sand.u32 1, %s21847_s19   ;;  %s22058_s9 = scalar_lea.vmem [#allocation5], %s16001_s28 }
  0x89   : > { %s246_s23 = scalar_lea.sflag [#allocation6], %s245_s25 }
  0x8a   : > { %21757 = dma.done.wait (%p24587_p0), %s246_s23, 1024  }
  0x8b   : > { %21759 = vsyncadd (%p24587_p0), %s246_s23, 4294966272  ;;  %p24588_p8 = scmp.eq.s32.totalorder %s21847_s19, 0 }
  0x8d   : > { %21761 = dma.done.wait (%p24588_p8), [#allocation6], 2048   ;;  %p24589_p11 = pmov %p24588_p8 }
  0x8e   : > { %p24590_p2 = pmov %p24588_p8 }
  0x8f   : > { %21763 = vsyncadd (%p24589_p11), [#allocation6], 4294965248 }
  0x90   : > { %21765 = dma.done.wait (%p24590_p2), [#allocation9], 256   ;;  %p24591_p12 = pmov %p24590_p2 }
  0x91   : > { %v306_v0 = vld [vmem:[#allocation7] sm:$0xff]  ;;  %v307_v1 = vld [vmem:[#allocation7 + $0x8] sm:$0xff]  ;;  %v308_v2 = vld [vmem:[#allocation7 + $0x10] sm:$0xff]  ;;  %vm1266_vm0 = vcmask 130048   ;;  %vm21795_vm1 = vmmov 0   ;;  %vm15284_vm5 = vcmask 523264  }
  0x92   : > { %21767 = vsyncadd (%p24591_p12), [#allocation9], 4294967040  ;;  %v325_v3 = vand.u32 4294901760, %v306_v0  ;;  %v328_v4 = vand.u32 4294901760, %v307_v1  ;;  %v309_v5 = vld [vmem:[#allocation7 + $0x18] sm:$0xff]  ;;  %v331_v6 = vand.u32 4294901760, %v308_v2 }
  0x93   : > { %v310_v7 = vld [vmem:[#allocation7 + $0x20] sm:$0xff]  ;;  %v311_v8 = vld [vmem:[#allocation7 + $0x28] sm:$0xff]  ;;  %v334_v9 = vand.u32 4294901760, %v309_v5  ;;  %v22076_v14 = vld [vmem:[#allocation7 + $0x30] sm:$0xff]  ;;  %s16005_s21 = sshll.u32 %s22047_s7, 2  ;;  %s16021_s5 = sshll.u32 %s21847_s19, 6 }
  0x94   : > { %v22072_v10 = vpack.c.bf16 %v328_v4, %v325_v3  ;;  %v337_v11 = vand.u32 4294901760, %v310_v7  ;;  %v340_v12 = vand.u32 4294901760, %v311_v8  ;;  %v22078_v15 = vld [vmem:[#allocation7 + $0x38] sm:$0xff]  ;;  %v290_v16 = vld [vmem:[%s22051_s11] sm:$0xff]  ;;  %v343_v19 = vand.u32 4294901760, %v22076_v14  ;;  %v22092_v22 = vld [vmem:[#allocation7 + $0x48] sm:$0xff]  ;;  %s24394_s24 = scalar_lea.hbm %s24442_s4, %s16021_s5 }
  0x95   : > { %v22074_v13 = vpack.c.bf16 %v334_v9, %v331_v6  ;;  %v22083_v17 = vand.u32 4294901760, %v290_v16  ;;  %v346_v20 = vand.u32 4294901760, %v22078_v15  ;;  %v22090_v21 = vld [vmem:[#allocation7 + $0x40] sm:$0xff]  ;;  %v291_v24 = vld [vmem:[%s22051_s11 + $0x8] sm:$0xff]  ;;  %v22100_v26 = vsub.f32 %v306_v0, %v325_v3  ;;  %v22111_v31 = vld [vmem:[#allocation7 + $0x50] sm:$0xff]  ;;  %s286_s27 = scalar_lea.vmem [#allocation10], %s16005_s21 }
  0x96   : > { %19551 = vmatprep.subr.bf16.mxu0 %v22072_v10  ;;  %v22086_v18 = vpack.c.bf16 %v340_v12, %v337_v11  ;;  %v22102_v27 = vsub.f32 %v307_v1, %v328_v4  ;;  %v349_v29 = vand.u32 4294901760, %v22090_v21  ;;  %v352_v30 = vand.u32 4294901760, %v22092_v22  ;;  %v22113_v32 = vld [vmem:[#allocation7 + $0x58] sm:$0xff]  ;;  %v22126_v38 = vld [vmem:[#allocation7 + $0x60] sm:$0xff]  ;;  %v22128_v39 = vld [vmem:[#allocation7 + $0x68] sm:$0xff]  ;;  %s15872_s10 = sshll.u32 %s286_s27, 4  ;;  %s24389_s10 = int_to_ptr.vmem [resolvable:$true] %s15872_s10 }
  0x97   : > { %19553 = vmatpush3.bf16.msra.mxu0 %v22072_v10  ;;  %v22095_v23 = vsub.f32 %v290_v16, %v22083_v17  ;;  %v22107_v28 = vpack.c.bf16 %v346_v20, %v343_v19  ;;  %v22118_v34 = vand.u32 4294901760, %v291_v24  ;;  %v22120_v35 = vsub.f32 %v308_v2, %v331_v6  ;;  %v292_v47 = vld [vmem:[%s22051_s11 + $0x10] sm:$0xff]  ;;  %v22155_v54 = vld [vmem:[#allocation7 + $0x78] sm:$0xff]  ;;  %v294_v1 = vld [vmem:[%s22051_s11 + $0x20] sm:$0xff]  ;;  %s15859_s30 = scalar_lea.sflag [#allocation4], %s22047_s7  ;;  %s21708_s6 = scalar_lea.vmem %s24389_s10, 64 }
  0x98   : > { %19555 = vmatprep.subr.bf16.mxu0 %v22074_v13  ;;  %24592 = vst [vmem:[#allocation16_spill] sm:$0xff] %v22086_v18  ;;  %v22122_v36 = vsub.f32 %v309_v5, %v334_v9  ;;  %v355_v37 = vand.u32 4294901760, %v22111_v31  ;;  %v24460_v41 = vand.u32 4294901760, %v22100_v26  ;;  %v24459_v42 = vand.u32 4294901760, %v22102_v27  ;;  %v22153_v53 = vld [vmem:[#allocation7 + $0x70] sm:$0xff]  ;;  %v293_v61 = vld [vmem:[%s22051_s11 + $0x18] sm:$0xff]  ;;  %p21709_p1 = scmp.ne.s32.totalorder %s24389_s10, %s21708_s6 }
  0x99   : > { %v24450_v25 = vand.u32 4294901760, %v22095_v23  ;;  %24593 = vst [vmem:[#allocation17_spill] sm:$0xff] %v22107_v28  ;;  %v22137_v43 = vpack.c.bf16 %v352_v30, %v349_v29  ;;  %v358_v44 = vand.u32 4294901760, %v22113_v32  ;;  %v22140_v45 = vsub.f32 %v310_v7, %v337_v11  ;;  %p24794_p13 = scmp.ne.s32.totalorder %s24582_s13, 0  ;;  %s21798_s19 = smov [#allocation10]  }
  0x9a   : > { %v22142_v46 = vsub.f32 %v311_v8, %v340_v12  ;;  %v22146_v48 = vsub.f32 %v291_v24, %v22118_v34  ;;  %v24457_v49 = vand.u32 4294901760, %v22120_v35  ;;  %v24455_v50 = vand.u32 4294901760, %v22122_v36  ;;  %s21712_s29 = sshll.u32 %s21798_s19, 4  ;;  %s21713_s29 = int_to_ptr.vmem [resolvable:$false] %s21712_s29 }
  0x9b   : > { %19557 = vmatpush3.bf16.msra.mxu0 %v22074_v13  ;;  %v408_v33 = vsub.f32 %v22095_v23, %v24450_v25  ;;  %24594 = vst [vmem:[#allocation18_spill] sm:$0xff] %v22137_v43  ;;  %v361_v51 = vand.u32 4294901760, %v22126_v38  ;;  %v364_v52 = vand.u32 4294901760, %v22128_v39  ;;  %v489_v55 = vsub.f32 %v22100_v26, %v24460_v41  ;;  %p21710_p6 = pnand %p21709_p1, %p24794_p13  ;;  %s21714_s0 = scalar_lea.vmem %s21713_s29, 128 }
  0x9c   : > { %19559 = vmatprep.subr.bf16.mxu0 %v22086_v18  ;;  %v496_v56 = vsub.f32 %v22102_v27, %v24459_v42  ;;  %v22163_v57 = vand.u32 4294901760, %v292_v47  ;;  %v22170_v58 = vpack.c.bf16 %v358_v44, %v355_v37  ;;  %v24453_v59 = vand.u32 4294901760, %v22140_v45  ;;  %p21715_p4 = scmp.lt.s32.totalorder %s24389_s10, %s21713_s29  ;;  %p21716_p5 = scmp.lt.s32.totalorder %s21714_s0, %s21708_s6 }
  0x9d   : > { %v409_v40 = vand.u32 4294901760, %v408_v33  ;;  %v24452_v60 = vand.u32 4294901760, %v22142_v46  ;;  %v24451_v62 = vand.u32 4294901760, %v22146_v48  ;;  %v503_v63 = vsub.f32 %v22120_v35, %v24457_v49  ;;  %p21711_p10 = pneg %p21710_p6 }
  0x9e   : > { %24595 = vst [vmem:[#allocation19_spill] sm:$0xff] %v22170_v58  ;;  %v510_v0 = vsub.f32 %v22122_v36, %v24455_v50  ;;  %v22187_v2 = vpack.c.bf16 %v364_v52, %v361_v51  ;;  %v367_v3 = vand.u32 4294901760, %v22153_v53  ;;  %v370_v4 = vand.u32 4294901760, %v22155_v54  ;;  %p21717_p3 = por %p21716_p5, %p21715_p4 }
  0x9f   : > { %19561 = vmatpush3.bf16.msra.mxu0 %v22086_v18  ;;  %17308 = vmatprep.mubr.f32.mxu0 %v409_v40  ;;  %v22192_v5 = vsub.f32 %v22076_v14, %v343_v19  ;;  %v490_v6 = vand.u32 4294901760, %v489_v55  ;;  %v497_v7 = vand.u32 4294901760, %v496_v56  ;;  %v22196_v8 = vsub.f32 %v292_v47, %v22163_v57  ;;  %v295_v19 = vld [vmem:[%s22051_s11 + $0x28] sm:$0xff]  ;;  %v296_v55 = vld [vmem:[%s22051_s11 + $0x30] sm:$0xff] }
  0xa0   : > { %19563 = vmatprep.subr.bf16.mxu0 %v22107_v28  ;;  %24596 = vst [vmem:[#allocation20_spill] sm:$0xff] %v22187_v2  ;;  %v22198_v9 = vand.u32 4294901760, %v293_v61  ;;  %v517_v11 = vsub.f32 %v22140_v45, %v24453_v59  ;;  %v524_v12 = vsub.f32 %v22142_v46, %v24452_v60  ;;  %v22210_v14 = vsub.f32 %v22078_v15, %v346_v20  ;;  %p21718_p7 = pnand %p21717_p3, %p21711_p10 }
  0xa1   : > { %v22212_v16 = vand.u32 4294901760, %v294_v1  ;;  %v418_v24 = vsub.f32 %v22146_v48, %v24451_v62  ;;  %v504_v33 = vand.u32 4294901760, %v503_v63  ;;  %v511_v40 = vand.u32 4294901760, %v510_v0 }
  0xa2   : > { %v22219_v47 = vsub.f32 %v293_v61, %v22198_v9  ;;  %v22222_v56 = vpack.c.bf16 %v370_v4, %v367_v3  ;;  %v24454_v25 = vand.u32 4294901760, %v22192_v5  ;;  %v22228_v15 = vsub.f32 %v22090_v21, %v349_v29 }
  0xa3   : > { %19565 = vmatpush3.bf16.msra.mxu0 %v22107_v28  ;;  %v22233_v20 = vsub.f32 %v22092_v22, %v352_v30  ;;  %v22236_v63 = vpack.c.bf16 %v497_v7, %v490_v6  ;;  %v24456_v61 = vand.u32 4294901760, %v22196_v8  ;;  %v22240_v0 = vsub.f32 %v294_v1, %v22212_v16 }
  0xa4   : > { %19567 = vmatprep.subr.bf16.mxu0 %v22137_v43  ;;  %24597 = vst [vmem:[#allocation21_spill] sm:$0xff] %v22222_v56  ;;  %v22242_v62 = vand.u32 4294901760, %v295_v19  ;;  %v518_v21 = vand.u32 4294901760, %v517_v11  ;;  %v525_v29 = vand.u32 4294901760, %v524_v12  ;;  %v537_v60 = vand.u32 4294901760, %v22210_v14 }
  0xa5   : > { %24598 = vst [vmem:[#allocation22_spill] sm:$0xff] %v22236_v63  ;;  %v22246_v22 = vand.u32 4294901760, %v296_v55  ;;  %v419_v30 = vand.u32 4294901760, %v418_v24  ;;  %v22248_v59 = vpack.c.bf16 %v511_v40, %v504_v33  ;;  %v22253_v6 = vsub.f32 %v22111_v31, %v355_v37  ;;  %v297_v33 = vld [vmem:[%s22051_s11 + $0x38] sm:$0xff] }
  0xa6   : > { %v24458_v1 = vand.u32 4294901760, %v22219_v47  ;;  %v22259_v7 = vsub.f32 %v22192_v5, %v24454_v25  ;;  %v544_v11 = vand.u32 4294901760, %v22228_v15  ;;  %v551_v12 = vand.u32 4294901760, %v22233_v20 }
  0xa7   : > { %19569 = vmatpush3.bf16.msra.mxu0 %v22137_v43  ;;  %v22264_v24 = vsub.f32 %v295_v19, %v22242_v62  ;;  %v428_v31 = vsub.f32 %v22196_v8, %v24456_v61  ;;  %v22274_v37 = vsub.f32 %v22113_v32, %v358_v44  ;;  %v24461_v40 = vand.u32 4294901760, %v22240_v0 }
  0xa8   : > { %19571 = vmatprep.subr.bf16.mxu0 %v22170_v58  ;;  %v22278_v25 = vsub.f32 %v296_v55, %v22246_v22  ;;  %v22281_v19 = vpack.c.bf16 %v525_v29, %v518_v21  ;;  %v538_v50 = vsub.f32 %v22210_v14, %v537_v60  ;;  %v22287_v61 = vsub.f32 %v22126_v38, %v361_v51 }
  0xa9   : > { %24599 = vst [vmem:[#allocation23_spill] sm:$0xff] %v22264_v24  ;;  %v22292_v32 = vsub.f32 %v22128_v39, %v364_v52  ;;  %v438_v44 = vsub.f32 %v22219_v47, %v24458_v1  ;;  %v22298_v55 = vsub.f32 %v22153_v53, %v367_v3  ;;  %v22301_v21 = vsub.f32 %v22155_v54, %v370_v4 }
  0xaa   : > { %v22303_v29 = vand.u32 4294901760, %v297_v33  ;;  %v532_v38 = vand.u32 4294901760, %v22259_v7  ;;  %v545_v51 = vsub.f32 %v22228_v15, %v544_v11  ;;  %v558_v49 = vand.u32 4294901760, %v22253_v6 }
  0xab   : > { %19573 = vmatpush3.bf16.msra.mxu0 %v22170_v58  ;;  %v429_v52 = vand.u32 4294901760, %v428_v31  ;;  %v448_v53 = vsub.f32 %v22240_v0, %v24461_v40  ;;  %v539_v4 = vand.u32 4294901760, %v538_v50  ;;  %v552_v7 = vsub.f32 %v22233_v20, %v551_v12 }
  0xac   : > { %19575 = vmatprep.subr.bf16.mxu0 %v22187_v2  ;;  %v22315_v3 = vsub.f32 %v297_v33, %v22303_v29  ;;  %v565_v1 = vand.u32 4294901760, %v22274_v37  ;;  %v572_v42 = vand.u32 4294901760, %v22287_v61  ;;  %v439_v41 = vand.u32 4294901760, %v438_v44 }
  0xad   : > { %v579_v31 = vand.u32 4294901760, %v22292_v32  ;;  %v586_v39 = vand.u32 4294901760, %v22298_v55  ;;  %v593_v40 = vand.u32 4294901760, %v22301_v21  ;;  %v24600_v33 = vand.u32 4294901760, %v22264_v24 }
  0xae   : > { %v24604_v44 = vand.u32 4294901760, %v22120_v35  ;;  %v24605_v43 = vand.u32 4294901760, %v22122_v36  ;;  %v24609_v18 = vand.u32 4294901760, %v22142_v46 }
  0xaf   : > { %19577 = vmatpush3.bf16.msra.mxu0 %v22187_v2  ;;  %v458_v54 = vsub.f32 %v22264_v24, %v24600_v33  ;;  %v24602_v2 = vand.u32 4294901760, %v22102_v27  ;;  %v24607_v33 = vand.u32 4294901760, %v22278_v25  ;;  %v24608_v24 = vand.u32 4294901760, %v22140_v45 }
  0xb0   : > { %19579 = vmatprep.subr.bf16.mxu0 %v22222_v56  ;;  %v22338_v28 = vpack.c.bf16 %v24605_v43, %v24604_v44  ;;  %v22355_v43 = vpack.c.bf16 %v551_v12, %v544_v11  ;;  %v22361_v44 = vpack.c.bf16 %v593_v40, %v586_v39  ;;  %v22370_v12 = vpack.c.bf16 %v539_v4, %v532_v38 }
  0xb1   : > { %v468_v50 = vsub.f32 %v22278_v25, %v24607_v33  ;;  %v459_v33 = vand.u32 4294901760, %v458_v54 }
  0xb2   : > { %24606 = vst [vmem:[#allocation25_spill] sm:$0xff] %v22338_v28  ;;  %24613 = vst [vmem:[#allocation28_spill] sm:$0xff] %v22355_v43 }
  0xb3   : > { %19581 = vmatpush3.bf16.msra.mxu0 %v22222_v56  ;;  %v24601_v56 = vand.u32 4294901760, %v22100_v26  ;;  %24616 = vst [vmem:[#allocation31_spill] sm:$0xff] %v22361_v44  ;;  %v469_v11 = vand.u32 4294901760, %v468_v50  ;;  %v553_v44 = vand.u32 4294901760, %v552_v7  ;;  %v580_v50 = vsub.f32 %v22292_v32, %v579_v31 }
  0xb4   : > { %19583 = vmatprep.subr.bf16.mxu0 %v22236_v63  ;;  %v587_v7 = vsub.f32 %v22298_v55, %v586_v39  ;;  %v22403_v39 = vpack.c.bf16 %v22122_v36, %v22120_v35  ;;  %v22427_v35 = vpack.c.bf16 %v22233_v20, %v22228_v15  ;;  %v22435_v36 = vpack.c.bf16 %v22274_v37, %v22253_v6  ;;  %v24620_v15 = vld [vmem:[#allocation17_spill] sm:$0xff] }
  0xb5   : > { %v22332_v58 = vpack.c.bf16 %v24602_v2, %v24601_v56  ;;  %v22348_v2 = vpack.c.bf16 %v24609_v18, %v24608_v24  ;;  %v24611_v56 = vand.u32 4294901760, %v22192_v5  ;;  %v566_v24 = vsub.f32 %v22274_v37, %v565_v1  ;;  %v24624_v37 = vld [vmem:[#allocation20_spill] sm:$0xff] }
  0xb6   : > { %17309 = vmatmul.mubr.f32.vlgmr.msra.gmra.mrb[0].mxu0 %v419_v30  ;;  %v449_v30 = vand.u32 4294901760, %v448_v53  ;;  %v22359_v53 = vpack.c.bf16 %v579_v31, %v572_v42  ;;  %v581_v4 = vand.u32 4294901760, %v580_v50  ;;  %v588_v31 = vand.u32 4294901760, %v587_v7 }
  0xb7   : > { %24603 = vst [vmem:[#allocation24_spill] sm:$0xff] %v22332_v58  ;;  %19585 = vmatpush3.bf16.msra.mxu0 %v22236_v63  ;;  %17311 = vmatprep.mubr.f32.mxu0 %v429_v52  ;;  %24610 = vst [vmem:[#allocation26_spill] sm:$0xff] %v22348_v2  ;;  %v22352_v58 = vpack.c.bf16 %v537_v60, %v24611_v56  ;;  %v22357_v52 = vpack.c.bf16 %v565_v1, %v558_v49  ;;  %v24617_v63 = vand.u32 4294901760, %v22315_v3 }
  0xb8   : > { %19587 = vmatprep.subr.bf16.mxu0 %v22248_v59  ;;  %24615 = vst [vmem:[#allocation30_spill] sm:$0xff] %v22359_v53  ;;  %v559_v60 = vsub.f32 %v22253_v6, %v558_v49  ;;  %v546_v56 = vand.u32 4294901760, %v545_v51  ;;  %v573_v1 = vsub.f32 %v22287_v61, %v572_v42  ;;  %v24621_v20 = vand.u32 4294901760, %v22095_v23  ;;  %v24623_v6 = vld [vmem:[#allocation19_spill] sm:$0xff] }
  0xb9   : > { %24612 = vst [vmem:[#allocation27_spill] sm:$0xff] %v22352_v58  ;;  %24614 = vst [vmem:[#allocation29_spill] sm:$0xff] %v22357_v52  ;;  %v478_v18 = vsub.f32 %v22315_v3, %v24617_v63  ;;  %v567_v63 = vand.u32 4294901760, %v566_v24 }
  0xba   : > { %17312 = vmatmul.mubr.f32.gmra.mrb[2].mxu0 %v439_v41  ;;  %v560_v54 = vand.u32 4294901760, %v559_v60  ;;  %v22374_v49 = vpack.c.bf16 %v553_v44, %v546_v56  ;;  %v574_v51 = vand.u32 4294901760, %v573_v1  ;;  %v24630_v60 = vand.u32 4294901760, %v22240_v0 }
  0xbb   : > { %19589 = vmatpush3.bf16.msra.mxu0 %v22248_v59  ;;  %17314 = vmatprep.mubr.f32.mxu0 %v449_v30  ;;  %v479_v41 = vand.u32 4294901760, %v478_v18  ;;  %v594_v30 = vsub.f32 %v22301_v21, %v593_v40  ;;  %v22397_v40 = vpack.c.bf16 %v22102_v27, %v22100_v26  ;;  %v22411_v26 = vpack.c.bf16 %v22142_v46, %v22140_v45 }
  0xbc   : > { %19591 = vmatprep.subr.bf16.mxu0 %v22281_v19  ;;  %v22379_v38 = vpack.c.bf16 %v567_v63, %v560_v54  ;;  %v22387_v42 = vpack.c.bf16 %v581_v4, %v574_v51  ;;  %v22419_v27 = vpack.c.bf16 %v22210_v14, %v22192_v5  ;;  %v22441_v45 = vpack.c.bf16 %v22292_v32, %v22287_v61  ;;  %v24618_v5 = vld [vmem:[#allocation16_spill] sm:$0xff]  ;;  %v24619_v14 = vld [vmem:[#allocation23_spill] sm:$0xff]  ;;  %v24622_v61 = vld [vmem:[#allocation18_spill] sm:$0xff] }
  0xbd   : > { %v595_v44 = vand.u32 4294901760, %v594_v30  ;;  %v22447_v46 = vpack.c.bf16 %v22301_v21, %v22298_v55  ;;  %v24625_v32 = vld [vmem:[#allocation21_spill] sm:$0xff]  ;;  %v24628_v21 = vand.u32 4294901760, %v22196_v8  ;;  %v24629_v18 = vand.u32 4294901760, %v22219_v47 }
  0xbe   : > { %17315 = vmatmul.mubr.f32.gmra.mrb[4].mxu0 %v459_v33  ;;  %v24626_v55 = vld [vmem:[#allocation24_spill] sm:$0xff] }
  0xbf   : > { %19593 = vmatpush3.bf16.msra.mxu0 %v22281_v19  ;;  %17317 = vmatprep.mubr.f32.mxu0 %v469_v11  ;;  %v22391_v33 = vpack.c.bf16 %v595_v44, %v588_v31 }
  0xc0   : > { %19595 = vmatprep.subr.bf16.mxu0 %v22370_v12 }
  0xc2   : > { %17318 = vmatmul.mubr.f32.gmra.mrb[6].mxu0 %v479_v41 }
  0xc3   : > { %19597 = vmatpush3.bf16.msra.mxu0 %v22370_v12  ;;  %17352 = vmatprep.mubr.f32.mxu0 %v22083_v17 }
  0xc4   : > { %19599 = vmatprep.subr.bf16.mxu0 %v22374_v49 }
  0xc7   : > { %19601 = vmatpush3.bf16.msra.mxu0 %v22374_v49 }
  0xc8   : > { %19603 = vmatprep.subr.bf16.mxu0 %v22379_v38 }
  0xcb   : > { %19605 = vmatpush3.bf16.msra.mxu0 %v22379_v38 }
  0xcc   : > { %19607 = vmatprep.subr.bf16.mxu0 %v22387_v42 }
  0xcf   : > { %19609 = vmatpush3.bf16.msra.mxu0 %v22387_v42 }
  0xd0   : > { %19611 = vmatprep.subr.bf16.mxu0 %v22391_v33 }
  0xd3   : > { %19613 = vmatpush3.bf16.msra.mxu0 %v22391_v33 }
  0xd4   : > { %19615 = vmatprep.subr.bf16.mxu0 %v22397_v40 }
  0xd6   : > { %17353 = vmatmul.mubr.f32.vlgmr.msra.gmra.mrb[0].mxu0 %v22118_v34 }
  0xd7   : > { %19617 = vmatpush3.bf16.msra.mxu0 %v22397_v40  ;;  %17355 = vmatprep.mubr.f32.mxu0 %v22163_v57 }
  0xd8   : > { %19619 = vmatprep.subr.bf16.mxu0 %v22403_v39 }
  0xda   : > { %17356 = vmatmul.mubr.f32.gmra.mrb[2].mxu0 %v22198_v9 }
  0xdb   : > { %19621 = vmatpush3.bf16.msra.mxu0 %v22403_v39  ;;  %17358 = vmatprep.mubr.f32.mxu0 %v22212_v16 }
  0xdc   : > { %19623 = vmatprep.subr.bf16.mxu0 %v22411_v26 }
  0xde   : > { %17359 = vmatmul.mubr.f32.gmra.mrb[4].mxu0 %v22242_v62 }
  0xdf   : > { %19625 = vmatpush3.bf16.msra.mxu0 %v22411_v26  ;;  %17361 = vmatprep.mubr.f32.mxu0 %v22246_v22 }
  0xe0   : > { %19627 = vmatprep.subr.bf16.mxu0 %v22419_v27 }
  0xe2   : > { %17362 = vmatmul.mubr.f32.gmra.mrb[6].mxu0 %v22303_v29 }
  0xe3   : > { %19629 = vmatpush3.bf16.msra.mxu0 %v22419_v27  ;;  %17396 = vmatprep.mubr.f32.mxu0 %v22095_v23  ;;  %v24627_v23 = vand.u32 4294901760, %v22146_v48 }
  0xe4   : > { %19631 = vmatprep.subr.bf16.mxu0 %v22427_v35 }
  0xe7   : > { %19633 = vmatpush3.bf16.msra.mxu0 %v22427_v35 }
  0xe8   : > { %19635 = vmatprep.subr.bf16.mxu0 %v22435_v36 }
  0xeb   : > { %19637 = vmatpush3.bf16.msra.mxu0 %v22435_v36 }
  0xec   : > { %19639 = vmatprep.subr.bf16.mxu0 %v22441_v45 }
  0xef   : > { %19641 = vmatpush3.bf16.msra.mxu0 %v22441_v45 }
  0xf0   : > { %19643 = vmatprep.subr.bf16.mxu0 %v22447_v46 }
  0xf3   : > { %19645 = vmatpush3.bf16.msra.mxu0 %v22447_v46 }
  0xf4   : > { %19647 = vmatprep.subr.bf16.mxu0 %v22072_v10 }
  0xf6   : > { %17397 = vmatmul.mubr.f32.vlgmr.msra.gmra.mrb[0].mxu0 %v22146_v48  ;;  %v24631_v48 = vand.u32 4294901760, %v24619_v14 }
  0xf7   : > { %19649 = vmatpush3.bf16.msra.mxu0 %v22072_v10  ;;  %17399 = vmatprep.mubr.f32.mxu0 %v22196_v8  ;;  %v24632_v8 = vand.u32 4294901760, %v22278_v25 }
  0xf8   : > { %19651 = vmatprep.subr.bf16.mxu0 %v22074_v13 }
  0xfa   : > { %17400 = vmatmul.mubr.f32.gmra.mrb[2].mxu0 %v22219_v47  ;;  %v24633_v47 = vand.u32 4294901760, %v22315_v3 }
  0xfb   : > { %19653 = vmatpush3.bf16.msra.mxu0 %v22074_v13  ;;  %17402 = vmatprep.mubr.f32.mxu0 %v22240_v0 }
  0xfc   : > { %19655 = vmatprep.subr.bf16.mxu0 %v24618_v5 }
  0xfe   : > { %17403 = vmatmul.mubr.f32.gmra.mrb[4].mxu0 %v24619_v14 }
  0xff   : > { %19657 = vmatpush3.bf16.msra.mxu0 %v24618_v5  ;;  %17405 = vmatprep.mubr.f32.mxu0 %v22278_v25  ;;  %v24634_v25 = vld [vmem:[#allocation31_spill] sm:$0xff] }
 0x100   : > { %19659 = vmatprep.subr.bf16.mxu0 %v24620_v15 }
 0x102   : > { %17406 = vmatmul.mubr.f32.gmra.mrb[6].mxu0 %v22315_v3 }
 0x103   : > { %19661 = vmatpush3.bf16.msra.mxu0 %v24620_v15  ;;  %17440 = vmatprep.mubr.f32.mxu0 %v24621_v20 }
 0x104   : > { %19663 = vmatprep.subr.bf16.mxu0 %v24622_v61 }
 0x107   : > { %19665 = vmatpush3.bf16.msra.mxu0 %v24622_v61 }
 0x108   : > { %19667 = vmatprep.subr.bf16.mxu0 %v24623_v6 }
 0x10b   : > { %19669 = vmatpush3.bf16.msra.mxu0 %v24623_v6 }
 0x10c   : > { %19671 = vmatprep.subr.bf16.mxu0 %v24624_v37 }
 0x10f   : > { %19673 = vmatpush3.bf16.msra.mxu0 %v24624_v37 }
 0x110   : > { %19675 = vmatprep.subr.bf16.mxu0 %v24625_v32 }
 0x113   : > { %19677 = vmatpush3.bf16.msra.mxu0 %v24625_v32 }
 0x114   : > { %19679 = vmatprep.subr.bf16.mxu0 %v24626_v55 }
 0x116   : > { %17441 = vmatmul.mubr.f32.vlgmr.msra.gmra.mrb[0].mxu0 %v24627_v23 }
 0x117   : > { %19681 = vmatpush3.bf16.msra.mxu0 %v24626_v55  ;;  %17443 = vmatprep.mubr.f32.mxu0 %v24628_v21 }
 0x118   : > { %19683 = vmatprep.subr.bf16.mxu0 %v22338_v28 }
 0x11a   : > { %17444 = vmatmul.mubr.f32.gmra.mrb[2].mxu0 %v24629_v18 }
 0x11b   : > { %19685 = vmatpush3.bf16.msra.mxu0 %v22338_v28  ;;  %17446 = vmatprep.mubr.f32.mxu0 %v24630_v60 }
 0x11c   : > { %19687 = vmatprep.subr.bf16.mxu0 %v22348_v2 }
 0x11e   : > { %17447 = vmatmul.mubr.f32.gmra.mrb[4].mxu0 %v24631_v48 }
 0x11f   : > { %19689 = vmatpush3.bf16.msra.mxu0 %v22348_v2  ;;  %17449 = vmatprep.mubr.f32.mxu0 %v24632_v8 }
 0x120   : > { %19691 = vmatprep.subr.bf16.mxu0 %v22352_v58 }
 0x122   : > { %17450 = vmatmul.mubr.f32.gmra.mrb[6].mxu0 %v24633_v47 }
 0x123   : > { %19693 = vmatpush3.bf16.msra.mxu0 %v22352_v58  ;;  %17484 = vmatprep.mubr.f32.mxu0 %v22083_v17 }
 0x124   : > { %19695 = vmatprep.subr.bf16.mxu0 %v22355_v43 }
 0x127   : > { %19697 = vmatpush3.bf16.msra.mxu0 %v22355_v43 }
 0x128   : > { %19699 = vmatprep.subr.bf16.mxu0 %v22357_v52 }
 0x12b   : > { %19701 = vmatpush3.bf16.msra.mxu0 %v22357_v52 }
 0x12c   : > { %19703 = vmatprep.subr.bf16.mxu0 %v22359_v53 }
 0x12f   : > { %19705 = vmatpush3.bf16.msra.mxu0 %v22359_v53 }
 0x130   : > { %19707 = vmatprep.subr.bf16.mxu0 %v24634_v25 }
 0x133   : > { %19709 = vmatpush3.bf16.msra.mxu0 %v24634_v25 }
 0x134   : > { %19711 = vmatprep.subr.bf16.mxu0 %v22072_v10 }
 0x136   : > { %17485 = vmatmul.mubr.f32.vlgmr.msra.gmra.mrb[0].mxu0 %v22118_v34 }
 0x137   : > { %19713 = vmatpush3.bf16.msra.mxu0 %v22072_v10  ;;  %17487 = vmatprep.mubr.f32.mxu0 %v22163_v57 }
 0x138   : > { %19715 = vmatprep.subr.bf16.mxu0 %v22074_v13 }
 0x13a   : > { %17488 = vmatmul.mubr.f32.gmra.mrb[2].mxu0 %v22198_v9 }
 0x13b   : > { %19717 = vmatpush3.bf16.msra.mxu0 %v22074_v13  ;;  %17490 = vmatprep.mubr.f32.mxu0 %v22212_v16 }
 0x13c   : > { %19719 = vmatprep.subr.bf16.mxu0 %v24618_v5 }
 0x13e   : > { %17491 = vmatmul.mubr.f32.gmra.mrb[4].mxu0 %v22242_v62 }
 0x13f   : > { %19721 = vmatpush3.bf16.msra.mxu0 %v24618_v5  ;;  %17493 = vmatprep.mubr.f32.mxu0 %v22246_v22 }
 0x140   : > { %19723 = vmatprep.subr.bf16.mxu0 %v24620_v15 }
 0x142   : > { %17494 = vmatmul.mubr.f32.gmra.mrb[6].mxu0 %v22303_v29 }
 0x143   : > { %19725 = vmatpush3.bf16.msra.mxu0 %v24620_v15  ;;  %17528 = vmatprep.mubr.f32.mxu0 %v22083_v17  ;;  %v322_v17 = vld [vmem:[#allocation8] sm:$0xff] }
 0x144   : > { %19727 = vmatprep.subr.bf16.mxu0 %v24622_v61  ;;  %v1268_v0 = vsel %vm1266_vm0, %v322_v17, 0 }
 0x145   : > { %v22539_v3 = vand.u32 4294901760, %v1268_v0 }
 0x147   : > { %19729 = vmatpush3.bf16.msra.mxu0 %v24622_v61  ;;  %24635 = vst [vmem:[#allocation16_spill] sm:$0xff] %v22539_v3  ;;  %v22542_v24 = vsub.f32 %v1268_v0, %v22539_v3 }
 0x148   : > { %19731 = vmatprep.subr.bf16.mxu0 %v24623_v6 }
 0x149   : > { %24636 = vst [vmem:[#allocation23_spill] sm:$0xff] %v22542_v24 }
 0x14b   : > { %19733 = vmatpush3.bf16.msra.mxu0 %v24623_v6 }
 0x14c   : > { %19735 = vmatprep.subr.bf16.mxu0 %v24624_v37 }
 0x14f   : > { %19737 = vmatpush3.bf16.msra.mxu0 %v24624_v37 }
 0x150   : > { %19739 = vmatprep.subr.bf16.mxu0 %v24625_v32 }
 0x153   : > { %19741 = vmatpush3.bf16.msra.mxu0 %v24625_v32 }
 0x156   : > { %17529 = vmatmul.mubr.f32.vlgmr.msra.gmra.mrb[0].mxu0 %v22118_v34  ;;  %v22545_v34 = vand.u32 4294901760, %v22542_v24 }
 0x157   : > { %17531 = vmatprep.mubr.f32.mxu0 %v22163_v57 }
 0x158   : > { %24637 = vst [vmem:[#allocation17_spill] sm:$0xff] %v22545_v34  ;;  %v1343_v57 = vsub.f32 %v22542_v24, %v22545_v34 }
 0x15a   : > { %17532 = vmatmul.mubr.f32.gmra.mrb[2].mxu0 %v22198_v9  ;;  %v22549_v9 = vand.u32 4294901760, %v1343_v57 }
 0x15b   : > { %17534 = vmatprep.mubr.f32.mxu0 %v22212_v16 }
 0x15c   : > { %24638 = vst [vmem:[#allocation18_spill] sm:$0xff] %v22549_v9  ;;  %17544 = vmatprep.mubr.f32.mxu1 %v22549_v9 }
 0x15e   : > { %17535 = vmatmul.mubr.f32.gmra.mrb[4].mxu0 %v22242_v62  ;;  %v323_v62 = vld [vmem:[#allocation8 + $0x8] sm:$0xff] }
 0x15f   : > { %17537 = vmatprep.mubr.f32.mxu0 %v22246_v22  ;;  %v1271_v16 = vsel %vm1266_vm0, %v323_v62, 0 }
 0x160   : > { %v22553_v22 = vand.u32 4294901760, %v1271_v16 }
 0x162   : > { %17538 = vmatmul.mubr.f32.gmra.mrb[6].mxu0 %v22303_v29  ;;  %24639 = vst [vmem:[#allocation19_spill] sm:$0xff] %v22553_v22  ;;  %v22556_v29 = vsub.f32 %v1271_v16, %v22553_v22 }
 0x163   : > { %17976 = vmatprep.mubr.f32.mxu0 %v22549_v9 }
 0x164   : > { %24640 = vst [vmem:[#allocation20_spill] sm:$0xff] %v22556_v29  ;;  %v22559_v11 = vand.u32 4294901760, %v22556_v29 }
 0x166   : > { %24641 = vst [vmem:[#allocation21_spill] sm:$0xff] %v22559_v11  ;;  %v1353_v1 = vsub.f32 %v22556_v29, %v22559_v11 }
 0x168   : > { %v22566_v23 = vand.u32 4294901760, %v1353_v1 }
 0x16a   : > { %24642 = vst [vmem:[#allocation32_spill] sm:$0xff] %v22566_v23 }
 0x229   : > { %v17530_v56 = vpop.f32.mrb[0].mxu0 }
 0x22a   : > { %v1277_v41 = vand.u32 4294901760, %v17530_v56  ;;  %v1220_v54 = vpop.f32.mrb[1].mxu0 }
 0x22b   : > { %v1274_v63 = vand.u32 4294901760, %v1220_v54 }
 0x22c   : > { %v1369_v50 = vsub.f32 %v17530_v56, %v1277_v41 }
 0x22d   : > { %v22563_v51 = vpack.c.bf16 %v1277_v41, %v1274_v63  ;;  %v1362_v4 = vsub.f32 %v1220_v54, %v1274_v63  ;;  %v17533_v7 = vpop.f32.mrb[2].mxu0 }
 0x22e   : > { %v1370_v30 = vand.u32 4294901760, %v1369_v50  ;;  %v1779_v31 = vand.u32 4294901760, %v17533_v7  ;;  %v1232_v44 = vpop.f32.mrb[3].mxu0 }
 0x22f   : > { %v1363_v14 = vand.u32 4294901760, %v1362_v4  ;;  %v1776_v20 = vand.u32 4294901760, %v1232_v44  ;;  %19743 = vmatprep.subr.bf16.mxu1 %v22563_v51  ;;  %v19750_v21 = vpack.c.bf16 %v1369_v50, %v1362_v4 }
 0x230   : > { %v1371_v18 = vsub.f32 %v1369_v50, %v1370_v30  ;;  %v1871_v60 = vsub.f32 %v17533_v7, %v1779_v31  ;;  %19745 = vmatpush3.bf16.msra.mxu1 %v22563_v51 }
 0x231   : > { %v1364_v48 = vsub.f32 %v1362_v4, %v1363_v14  ;;  %v22569_v8 = vpack.c.bf16 %v1779_v31, %v1776_v20  ;;  %v1864_v47 = vsub.f32 %v1232_v44, %v1776_v20  ;;  %v17536_v17 = vpop.f32.mrb[4].mxu0  ;;  %v19758_v0 = vpack.c.bf16 %v1370_v30, %v1363_v14 }
 0x232   : > { %v1872_v57 = vand.u32 4294901760, %v1871_v60  ;;  %v2281_v62 = vand.u32 4294901760, %v17536_v17  ;;  %v1244_v16 = vpop.f32.mrb[5].mxu0  ;;  %v1372_v56 = vand.u32 4294901760, %v1371_v18 }
 0x233   : > { %v1865_v41 = vand.u32 4294901760, %v1864_v47  ;;  %v2278_v54 = vand.u32 4294901760, %v1244_v16  ;;  %17545 = vmatmul.mubr.f32.vlgmr.msra.gmra.mrb[0].mxu1 %v22566_v23  ;;  %v1365_v63 = vand.u32 4294901760, %v1364_v48  ;;  %v22572_v1 = vpack.c.bf16 %v1871_v60, %v1864_v47 }
 0x234   : > { %v1873_v50 = vsub.f32 %v1871_v60, %v1872_v57  ;;  %v2373_v7 = vsub.f32 %v17536_v17, %v2281_v62  ;;  %17551 = vmatprep.mubr.f32.mxu1 %v22539_v3 }
 0x235   : > { %v1866_v4 = vsub.f32 %v1864_v47, %v1865_v41  ;;  %v22575_v31 = vpack.c.bf16 %v2281_v62, %v2278_v54  ;;  %v2366_v44 = vsub.f32 %v1244_v16, %v2278_v54  ;;  %v17539_v30 = vpop.f32.mrb[6].mxu0  ;;  %v19746_v14 = vpack.c.bf16 %v1372_v56, %v1365_v63 }
 0x236   : > { %v2374_v20 = vand.u32 4294901760, %v2373_v7  ;;  %v2783_v25 = vand.u32 4294901760, %v17539_v30  ;;  %v1256_v18 = vpop.f32.mrb[7].mxu0  ;;  %v1874_v53 = vand.u32 4294901760, %v1873_v50  ;;  %v19782_v52 = vpack.c.bf16 %v1872_v57, %v1865_v41 }
 0x237   : > { %v2367_v43 = vand.u32 4294901760, %v2366_v44  ;;  %v2780_v58 = vand.u32 4294901760, %v1256_v18  ;;  %19747 = vmatprep.subr.bf16.mxu1 %v19746_v14  ;;  %v1867_v48 = vand.u32 4294901760, %v1866_v4  ;;  %v22577_v2 = vpack.c.bf16 %v2373_v7, %v2366_v44 }
 0x238   : > { %v2375_v60 = vsub.f32 %v2373_v7, %v2374_v20  ;;  %v2875_v17 = vsub.f32 %v17539_v30, %v2783_v25  ;;  %19749 = vmatpush3.bf16.msra.mxu1 %v19746_v14  ;;  %v301_v14 = vld [vmem:[%s22058_s9 + $0x18] sm:$0xff] }
 0x239   : > { %v2368_v47 = vsub.f32 %v2366_v44, %v2367_v43  ;;  %v22579_v62 = vpack.c.bf16 %v2783_v25, %v2780_v58  ;;  %v2868_v16 = vsub.f32 %v1256_v18, %v2780_v58  ;;  %19751 = vmatprep.subr.bf16.mxu1 %v19750_v21  ;;  %v19770_v56 = vpack.c.bf16 %v1874_v53, %v1867_v48 }
 0x23a   : > { %v2876_v54 = vand.u32 4294901760, %v2875_v17  ;;  %v2376_v63 = vand.u32 4294901760, %v2375_v60  ;;  %v22581_v28 = vpack.c.bf16 %v2374_v20, %v2367_v43  ;;  %v302_v20 = vld [vmem:[%s22058_s9 + $0x20] sm:$0xff]  ;;  %v22698_v48 = vand.u32 4294901760, %v301_v14 }
 0x23b   : > { %v2869_v57 = vand.u32 4294901760, %v2868_v16  ;;  %17552 = vmatmul.mubr.f32.vlgmr.msra.gmra.mrb[0].mxu1 %v22553_v22  ;;  %v2369_v41 = vand.u32 4294901760, %v2368_v47  ;;  %v22584_v50 = vpack.c.bf16 %v2875_v17, %v2868_v16  ;;  %v303_v47 = vld [vmem:[%s22058_s9 + $0x28] sm:$0xff] }
 0x23c   : > { %v2877_v4 = vsub.f32 %v2875_v17, %v2876_v54  ;;  %19753 = vmatpush3.bf16.msra.mxu1 %v19750_v21  ;;  %17558 = vmatprep.mubr.f32.mxu1 %v22542_v24  ;;  %v22704_v17 = vand.u32 4294901760, %v302_v20 }
 0x23d   : > { %v2870_v7 = vsub.f32 %v2868_v16, %v2869_v57  ;;  %19755 = vmatprep.subr.bf16.mxu1 %v22563_v51  ;;  %v19794_v58 = vpack.c.bf16 %v2376_v63, %v2369_v41  ;;  %v22588_v25 = vpack.c.bf16 %v2876_v54, %v2869_v57  ;;  %v22713_v54 = vand.u32 4294901760, %v303_v47 }
 0x23e   : > { %v2878_v53 = vand.u32 4294901760, %v2877_v4  ;;  %v22718_v57 = vsub.f32 %v302_v20, %v22704_v17 }
 0x23f   : > { %v2871_v44 = vand.u32 4294901760, %v2870_v7 }
 0x241   : > { %v22590_v43 = vpack.c.bf16 %v2878_v53, %v2871_v44  ;;  %v24493_v44 = vand.u32 4294901760, %v22718_v57 }
 0x243   : > { %17559 = vmatmul.mubr.f32.vlgmr.msra.gmra.mrb[0].mxu1 %v22556_v29 }
 0x244   : > { %19757 = vmatpush3.bf16.msra.mxu1 %v22563_v51  ;;  %17565 = vmatprep.mubr.f32.mxu1 %v22545_v34 }
 0x245   : > { %19759 = vmatprep.subr.bf16.mxu1 %v19758_v0 }
 0x24b   : > { %17566 = vmatmul.mubr.f32.vlgmr.msra.gmra.mrb[0].mxu1 %v22559_v11 }
 0x24c   : > { %19761 = vmatpush3.bf16.msra.mxu1 %v19758_v0  ;;  %17572 = vmatprep.mubr.f32.mxu1 %v22539_v3  ;;  %v299_v0 = vld [vmem:[%s22058_s9 + $0x8] sm:$0xff] }
 0x24d   : > { %19763 = vmatprep.subr.bf16.mxu1 %v22563_v51 }
 0x253   : > { %17573 = vmatmul.mubr.f32.vlgmr.msra.gmra.mrb[0].mxu1 %v22553_v22 }
 0x254   : > { %19765 = vmatpush3.bf16.msra.mxu1 %v22563_v51  ;;  %17579 = vmatprep.mubr.f32.mxu1 %v22539_v3 }
 0x255   : > { %19767 = vmatprep.subr.bf16.mxu1 %v22569_v8 }
 0x25b   : > { %17580 = vmatmul.mubr.f32.vlgmr.msra.gmra.mrb[0].mxu1 %v22553_v22 }
 0x25c   : > { %19769 = vmatpush3.bf16.msra.mxu1 %v22569_v8  ;;  %17586 = vmatprep.mubr.f32.mxu1 %v22549_v9 }
 0x25d   : > { %19771 = vmatprep.subr.bf16.mxu1 %v19770_v56 }
 0x25f   : > { %17587 = vmatmul.mubr.f32.vlgmr.msra.gmra.mrb[2].mxu1 %v22566_v23 }
 0x260   : > { %19773 = vmatpush3.bf16.msra.mxu1 %v19770_v56  ;;  %17593 = vmatprep.mubr.f32.mxu1 %v22539_v3  ;;  %v22711_v56 = vsub.f32 %v301_v14, %v22698_v48  ;;  %v3405_v14 = vsub.f32 %v22718_v57, %v24493_v44 }
 0x261   : > { %19775 = vmatprep.subr.bf16.mxu1 %v22572_v1 }
 0x262   : > { %v24494_v7 = vand.u32 4294901760, %v22711_v56 }
 0x267   : > { %17594 = vmatmul.mubr.f32.vlgmr.msra.gmra.mrb[2].mxu1 %v22553_v22 }
 0x268   : > { %19777 = vmatpush3.bf16.msra.mxu1 %v22572_v1  ;;  %17600 = vmatprep.mubr.f32.mxu1 %v22542_v24  ;;  %v300_v1 = vld [vmem:[%s22058_s9 + $0x10] sm:$0xff] }
 0x269   : > { %19779 = vmatprep.subr.bf16.mxu1 %v22569_v8  ;;  %v22690_v30 = vand.u32 4294901760, %v300_v1 }
 0x26b   : > { %v22702_v60 = vsub.f32 %v300_v1, %v22690_v30 }
 0x26d   : > { %v3384_v63 = vand.u32 4294901760, %v22702_v60 }
 0x26f   : > { %17601 = vmatmul.mubr.f32.vlgmr.msra.gmra.mrb[2].mxu1 %v22556_v29  ;;  %v3385_v53 = vsub.f32 %v22702_v60, %v3384_v63 }
 0x270   : > { %19781 = vmatpush3.bf16.msra.mxu1 %v22569_v8  ;;  %17607 = vmatprep.mubr.f32.mxu1 %v22545_v34 }
 0x271   : > { %19783 = vmatprep.subr.bf16.mxu1 %v19782_v52  ;;  %v3386_v1 = vand.u32 4294901760, %v3385_v53  ;;  %v3406_v53 = vand.u32 4294901760, %v3405_v14 }
 0x277   : > { %17608 = vmatmul.mubr.f32.vlgmr.msra.gmra.mrb[2].mxu1 %v22559_v11 }
 0x278   : > { %19785 = vmatpush3.bf16.msra.mxu1 %v19782_v52  ;;  %17614 = vmatprep.mubr.f32.mxu1 %v22539_v3 }
 0x279   : > { %19787 = vmatprep.subr.bf16.mxu1 %v22569_v8 }
 0x27f   : > { %17615 = vmatmul.mubr.f32.vlgmr.msra.gmra.mrb[2].mxu1 %v22553_v22 }
 0x280   : > { %19789 = vmatpush3.bf16.msra.mxu1 %v22569_v8  ;;  %17621 = vmatprep.mubr.f32.mxu1 %v22539_v3 }
 0x281   : > { %19791 = vmatprep.subr.bf16.mxu1 %v22575_v31 }
 0x287   : > { %17622 = vmatmul.mubr.f32.vlgmr.msra.gmra.mrb[2].mxu1 %v22553_v22 }
 0x288   : > { %19793 = vmatpush3.bf16.msra.mxu1 %v22575_v31  ;;  %17628 = vmatprep.mubr.f32.mxu1 %v22549_v9 }
 0x289   : > { %19795 = vmatprep.subr.bf16.mxu1 %v19794_v58 }
 0x28b   : > { %17629 = vmatmul.mubr.f32.vlgmr.msra.gmra.mrb[4].mxu1 %v22566_v23 }
 0x28c   : > { %19797 = vmatpush3.bf16.msra.mxu1 %v19794_v58  ;;  %17635 = vmatprep.mubr.f32.mxu1 %v22539_v3  ;;  %v22729_v58 = vsub.f32 %v303_v47, %v22713_v54  ;;  %v24643_v47 = vld [vmem:[#allocation22_spill] sm:$0xff] }
 0x28d   : > { %19799 = vmatprep.subr.bf16.mxu1 %v22577_v2 }
 0x293   : > { %17636 = vmatmul.mubr.f32.vlgmr.msra.gmra.mrb[4].mxu1 %v22553_v22 }
 0x294   : > { %19801 = vmatpush3.bf16.msra.mxu1 %v22577_v2  ;;  %17642 = vmatprep.mubr.f32.mxu1 %v22542_v24 }
 0x295   : > { %19803 = vmatprep.subr.bf16.mxu1 %v22575_v31 }
 0x29b   : > { %17643 = vmatmul.mubr.f32.vlgmr.msra.gmra.mrb[4].mxu1 %v22556_v29 }
 0x29c   : > { %19805 = vmatpush3.bf16.msra.mxu1 %v22575_v31  ;;  %17649 = vmatprep.mubr.f32.mxu1 %v22545_v34 }
 0x29d   : > { %19807 = vmatprep.subr.bf16.mxu1 %v22581_v28 }
 0x2a3   : > { %17650 = vmatmul.mubr.f32.vlgmr.msra.gmra.mrb[4].mxu1 %v22559_v11 }
 0x2a4   : > { %19809 = vmatpush3.bf16.msra.mxu1 %v22581_v28  ;;  %17656 = vmatprep.mubr.f32.mxu1 %v22539_v3  ;;  %v298_v28 = vld [vmem:[%s22058_s9] sm:$0xff] }
 0x2a5   : > { %19811 = vmatprep.subr.bf16.mxu1 %v22575_v31  ;;  %v22661_v2 = vand.u32 4294901760, %v298_v28 }
 0x2a7   : > { %v22667_v52 = vsub.f32 %v298_v28, %v22661_v2 }
 0x2a9   : > { %v3364_v51 = vand.u32 4294901760, %v22667_v52 }
 0x2ab   : > { %17657 = vmatmul.mubr.f32.vlgmr.msra.gmra.mrb[4].mxu1 %v22553_v22  ;;  %v3365_v21 = vsub.f32 %v22667_v52, %v3364_v51 }
 0x2ac   : > { %19813 = vmatpush3.bf16.msra.mxu1 %v22575_v31  ;;  %17663 = vmatprep.mubr.f32.mxu1 %v22539_v3  ;;  %v22687_v31 = vand.u32 4294901760, %v299_v0 }
 0x2ad   : > { %19815 = vmatprep.subr.bf16.mxu1 %v22579_v62  ;;  %v3366_v8 = vand.u32 4294901760, %v3365_v21  ;;  %v3395_v21 = vsub.f32 %v22711_v56, %v24494_v7 }
 0x2ae   : > { %v22696_v18 = vsub.f32 %v299_v0, %v22687_v31 }
 0x2b0   : > { %v3374_v16 = vand.u32 4294901760, %v22696_v18 }
 0x2b2   : > { %v3375_v4 = vsub.f32 %v22696_v18, %v3374_v16 }
 0x2b3   : > { %17664 = vmatmul.mubr.f32.vlgmr.msra.gmra.mrb[4].mxu1 %v22553_v22 }
 0x2b4   : > { %19817 = vmatpush3.bf16.msra.mxu1 %v22579_v62  ;;  %17670 = vmatprep.mubr.f32.mxu1 %v22549_v9  ;;  %v3376_v28 = vand.u32 4294901760, %v3375_v4 }
 0x2b5   : > { %19819 = vmatprep.subr.bf16.mxu1 %v22590_v43 }
 0x2b7   : > { %17671 = vmatmul.mubr.f32.vlgmr.msra.gmra.mrb[6].mxu1 %v22566_v23 }
 0x2b8   : > { %19821 = vmatpush3.bf16.msra.mxu1 %v22590_v43  ;;  %17677 = vmatprep.mubr.f32.mxu1 %v22539_v3 }
 0x2b9   : > { %19823 = vmatprep.subr.bf16.mxu1 %v22584_v50 }
 0x2bf   : > { %17678 = vmatmul.mubr.f32.vlgmr.msra.gmra.mrb[6].mxu1 %v22553_v22 }
 0x2c0   : > { %19825 = vmatpush3.bf16.msra.mxu1 %v22584_v50  ;;  %17684 = vmatprep.mubr.f32.mxu1 %v22542_v24  ;;  %v305_v50 = vld [vmem:[%s22058_s9 + $0x38] sm:$0xff] }
 0x2c1   : > { %19827 = vmatprep.subr.bf16.mxu1 %v22579_v62 }
 0x2c7   : > { %17685 = vmatmul.mubr.f32.vlgmr.msra.gmra.mrb[6].mxu1 %v22556_v29 }
 0x2c8   : > { %19829 = vmatpush3.bf16.msra.mxu1 %v22579_v62  ;;  %17691 = vmatprep.mubr.f32.mxu1 %v22545_v34 }
 0x2c9   : > { %19831 = vmatprep.subr.bf16.mxu1 %v22588_v25 }
 0x2cf   : > { %17692 = vmatmul.mubr.f32.vlgmr.msra.gmra.mrb[6].mxu1 %v22559_v11 }
 0x2d0   : > { %19833 = vmatpush3.bf16.msra.mxu1 %v22588_v25  ;;  %17698 = vmatprep.mubr.f32.mxu1 %v22539_v3  ;;  %v22731_v25 = vand.u32 4294901760, %v305_v50 }
 0x2d1   : > { %19835 = vmatprep.subr.bf16.mxu1 %v22579_v62 }
 0x2d2   : > { %v22747_v0 = vsub.f32 %v305_v50, %v22731_v25 }
 0x2d4   : > { %v3434_v50 = vand.u32 4294901760, %v22747_v0 }
 0x2d7   : > { %17699 = vmatmul.mubr.f32.vlgmr.msra.gmra.mrb[6].mxu1 %v22553_v22 }
 0x2d8   : > { %19837 = vmatpush3.bf16.msra.mxu1 %v22579_v62  ;;  %17705 = vmatprep.mubr.f32.mxu1 %v22539_v3  ;;  %v304_v62 = vld [vmem:[%s22058_s9 + $0x30] sm:$0xff] }
 0x2d9   : > { %19839 = vmatprep.subr.bf16.mxu1 %v22072_v10  ;;  %v22720_v41 = vand.u32 4294901760, %v304_v62 }
 0x2db   : > { %v22739_v43 = vsub.f32 %v304_v62, %v22720_v41  ;;  %v3396_v62 = vand.u32 4294901760, %v3395_v21 }
 0x2dd   : > { %v3424_v20 = vand.u32 4294901760, %v22739_v43 }
 0x2df   : > { %17706 = vmatmul.mubr.f32.vlgmr.msra.gmra.mrb[6].mxu1 %v22553_v22  ;;  %v3425_v44 = vsub.f32 %v22739_v43, %v3424_v20 }
 0x2e0   : > { %19841 = vmatpush3.bf16.msra.mxu1 %v22072_v10  ;;  %17740 = vmatprep.mubr.f32.mxu1 %v3366_v8  ;;  %v3414_v8 = vand.u32 4294901760, %v22729_v58 }
 0x2e1   : > { %19843 = vmatprep.subr.bf16.mxu1 %v22074_v13  ;;  %v3426_v21 = vand.u32 4294901760, %v3425_v44 }
 0x2e2   : > { %v3415_v4 = vsub.f32 %v22729_v58, %v3414_v8 }
 0x2e4   : > { %19845 = vmatpush3.bf16.msra.mxu1 %v22074_v13  ;;  %v3416_v7 = vand.u32 4294901760, %v3415_v4  ;;  %v24650_v4 = vand.u32 4294901760, %v22718_v57 }
 0x2e5   : > { %19847 = vmatprep.subr.bf16.mxu1 %v24618_v5 }
 0x2e8   : > { %19849 = vmatpush3.bf16.msra.mxu1 %v24618_v5 }
 0x2e9   : > { %19851 = vmatprep.subr.bf16.mxu1 %v24620_v15 }
 0x2ec   : > { %19853 = vmatpush3.bf16.msra.mxu1 %v24620_v15 }
 0x2ed   : > { %19855 = vmatprep.subr.bf16.mxu1 %v24622_v61 }
 0x2f0   : > { %19857 = vmatpush3.bf16.msra.mxu1 %v24622_v61 }
 0x2f1   : > { %19859 = vmatprep.subr.bf16.mxu1 %v24623_v6 }
 0x2f4   : > { %19861 = vmatpush3.bf16.msra.mxu1 %v24623_v6 }
 0x2f5   : > { %19863 = vmatprep.subr.bf16.mxu1 %v24624_v37 }
 0x2f8   : > { %19865 = vmatpush3.bf16.msra.mxu1 %v24624_v37 }
 0x2f9   : > { %19867 = vmatprep.subr.bf16.mxu1 %v24625_v32 }
 0x2fc   : > { %19869 = vmatpush3.bf16.msra.mxu1 %v24625_v32 }
 0x2fd   : > { %19871 = vmatprep.subr.bf16.mxu1 %v24643_v47 }
 0x2ff   : > { %17741 = vmatmul.mubr.f32.vlgmr.msra.gmra.mrb[8].mxu1 %v3376_v28  ;;  %v3435_v28 = vsub.f32 %v22747_v0, %v3434_v50 }
 0x300   : > { %19873 = vmatpush3.bf16.msra.mxu1 %v24643_v47  ;;  %17743 = vmatprep.mubr.f32.mxu1 %v3386_v1 }
 0x301   : > { %19875 = vmatprep.subr.bf16.mxu1 %v22248_v59  ;;  %v3436_v1 = vand.u32 4294901760, %v3435_v28  ;;  %v21570_v28 = vld [vmem:[%s22051_s11 + $0x10] sm:$0xff] }
 0x303   : > { %17744 = vmatmul.mubr.f32.gmra.mrb[10].mxu1 %v3396_v62 }
 0x304   : > { %19877 = vmatpush3.bf16.msra.mxu1 %v22248_v59  ;;  %17746 = vmatprep.mubr.f32.mxu1 %v3406_v53  ;;  %v24651_v53 = vld [vmem:[#allocation26_spill] sm:$0xff] }
 0x305   : > { %19879 = vmatprep.subr.bf16.mxu1 %v22281_v19 }
 0x307   : > { %17747 = vmatmul.mubr.f32.gmra.mrb[12].mxu1 %v3416_v7 }
 0x308   : > { %19881 = vmatpush3.bf16.msra.mxu1 %v22281_v19  ;;  %17749 = vmatprep.mubr.f32.mxu1 %v3426_v21  ;;  %v6233_v21 = vmul.f32 %v21570_v28, %v21570_v28  ;;  %v21574_v28 = vld [vmem:[%s22051_s11 + $0x30] sm:$0xff] }
 0x309   : > { %19883 = vmatprep.subr.bf16.mxu1 %v22370_v12 }
 0x30b   : > { %17750 = vmatmul.mubr.f32.gmra.mrb[14].mxu1 %v3436_v1  ;;  %v21571_v1 = vld [vmem:[%s22051_s11 + $0x18] sm:$0xff] }
 0x30c   : > { %19885 = vmatpush3.bf16.msra.mxu1 %v22370_v12  ;;  %17784 = vmatprep.mubr.f32.mxu1 %v22661_v2 }
 0x30d   : > { %19887 = vmatprep.subr.bf16.mxu1 %v22374_v49 }
 0x310   : > { %19889 = vmatpush3.bf16.msra.mxu1 %v22374_v49 }
 0x311   : > { %19891 = vmatprep.subr.bf16.mxu1 %v22379_v38 }
 0x314   : > { %19893 = vmatpush3.bf16.msra.mxu1 %v22379_v38 }
 0x315   : > { %19895 = vmatprep.subr.bf16.mxu1 %v22387_v42 }
 0x318   : > { %19897 = vmatpush3.bf16.msra.mxu1 %v22387_v42 }
 0x319   : > { %19899 = vmatprep.subr.bf16.mxu1 %v22391_v33 }
 0x31c   : > { %19901 = vmatpush3.bf16.msra.mxu1 %v22391_v33 }
 0x31d   : > { %19903 = vmatprep.subr.bf16.mxu1 %v22397_v40 }
 0x31f   : > { %17785 = vmatmul.mubr.f32.vlgmr.msra.gmra.mrb[8].mxu1 %v22687_v31 }
 0x320   : > { %19905 = vmatpush3.bf16.msra.mxu1 %v22397_v40  ;;  %17787 = vmatprep.mubr.f32.mxu1 %v22690_v30 }
 0x321   : > { %19907 = vmatprep.subr.bf16.mxu1 %v22403_v39 }
 0x323   : > { %17788 = vmatmul.mubr.f32.gmra.mrb[10].mxu1 %v22698_v48 }
 0x324   : > { %19909 = vmatpush3.bf16.msra.mxu1 %v22403_v39  ;;  %17790 = vmatprep.mubr.f32.mxu1 %v22704_v17 }
 0x325   : > { %19911 = vmatprep.subr.bf16.mxu1 %v22411_v26 }
 0x327   : > { %17791 = vmatmul.mubr.f32.gmra.mrb[12].mxu1 %v22713_v54 }
 0x328   : > { %19913 = vmatpush3.bf16.msra.mxu1 %v22411_v26  ;;  %17793 = vmatprep.mubr.f32.mxu1 %v22720_v41 }
 0x329   : > { %19915 = vmatprep.subr.bf16.mxu1 %v22419_v27 }
 0x32b   : > { %17794 = vmatmul.mubr.f32.gmra.mrb[14].mxu1 %v22731_v25 }
 0x32c   : > { %19917 = vmatpush3.bf16.msra.mxu1 %v22419_v27  ;;  %17828 = vmatprep.mubr.f32.mxu1 %v22667_v52  ;;  %v24648_v52 = vld [vmem:[#allocation25_spill] sm:$0xff] }
 0x32d   : > { %19919 = vmatprep.subr.bf16.mxu1 %v22427_v35 }
 0x32e   : > { %v22798_v7 = vpop.f32.mrb[0].mxu1 }
 0x32f   : > { %24644 = vst [vmem:[#allocation22_spill] sm:$0xff] %v22798_v7  ;;  %v22800_v44 = vpop.f32.mrb[1].mxu1 }
 0x330   : > { %24645 = vst [vmem:[#allocation33_spill] sm:$0xff] %v22800_v44  ;;  %19921 = vmatpush3.bf16.msra.mxu1 %v22427_v35 }
 0x331   : > { %19923 = vmatprep.subr.bf16.mxu1 %v22435_v36 }
 0x334   : > { %19925 = vmatpush3.bf16.msra.mxu1 %v22435_v36 }
 0x335   : > { %19927 = vmatprep.subr.bf16.mxu1 %v22441_v45 }
 0x338   : > { %19929 = vmatpush3.bf16.msra.mxu1 %v22441_v45 }
 0x339   : > { %19931 = vmatprep.subr.bf16.mxu1 %v22447_v46 }
 0x33c   : > { %19933 = vmatpush3.bf16.msra.mxu1 %v22447_v46 }
 0x33d   : > { %19935 = vmatprep.subr.bf16.mxu1 %v22072_v10 }
 0x33f   : > { %17829 = vmatmul.mubr.f32.vlgmr.msra.gmra.mrb[8].mxu1 %v22696_v18  ;;  %v24652_v18 = vld [vmem:[#allocation27_spill] sm:$0xff] }
 0x340   : > { %19937 = vmatpush3.bf16.msra.mxu1 %v22072_v10  ;;  %17831 = vmatprep.mubr.f32.mxu1 %v22702_v60  ;;  %v24653_v60 = vld [vmem:[#allocation28_spill] sm:$0xff] }
 0x341   : > { %19939 = vmatprep.subr.bf16.mxu1 %v22074_v13 }
 0x343   : > { %17832 = vmatmul.mubr.f32.gmra.mrb[10].mxu1 %v22711_v56 }
 0x344   : > { %19941 = vmatpush3.bf16.msra.mxu1 %v22074_v13  ;;  %17834 = vmatprep.mubr.f32.mxu1 %v22718_v57 }
 0x345   : > { %19943 = vmatprep.subr.bf16.mxu1 %v24618_v5 }
 0x347   : > { %17835 = vmatmul.mubr.f32.gmra.mrb[12].mxu1 %v22729_v58 }
 0x348   : > { %19945 = vmatpush3.bf16.msra.mxu1 %v24618_v5  ;;  %17837 = vmatprep.mubr.f32.mxu1 %v22739_v43  ;;  %v21568_v43 = vld [vmem:[%s22051_s11] sm:$0xff] }
 0x349   : > { %19947 = vmatprep.subr.bf16.mxu1 %v24620_v15 }
 0x34b   : > { %17838 = vmatmul.mubr.f32.gmra.mrb[14].mxu1 %v22747_v0 }
 0x34c   : > { %19949 = vmatpush3.bf16.msra.mxu1 %v24620_v15  ;;  %17872 = vmatprep.mubr.f32.mxu1 %v3364_v51  ;;  %v24649_v51 = vand.u32 4294901760, %v22711_v56  ;;  %v24655_v56 = vld [vmem:[#allocation30_spill] sm:$0xff] }
 0x34d   : > { %19951 = vmatprep.subr.bf16.mxu1 %v24622_v61 }
 0x350   : > { %19953 = vmatpush3.bf16.msra.mxu1 %v24622_v61 }
 0x351   : > { %19955 = vmatprep.subr.bf16.mxu1 %v24623_v6 }
 0x354   : > { %19957 = vmatpush3.bf16.msra.mxu1 %v24623_v6 }
 0x355   : > { %19959 = vmatprep.subr.bf16.mxu1 %v24624_v37 }
 0x358   : > { %19961 = vmatpush3.bf16.msra.mxu1 %v24624_v37 }
 0x359   : > { %19963 = vmatprep.subr.bf16.mxu1 %v24625_v32 }
 0x35a   : > { %v22833_v14 = vpop.f32.mrb[2].mxu1 }
 0x35b   : > { %24646 = vst [vmem:[#allocation34_spill] sm:$0xff] %v22833_v14  ;;  %v22835_v62 = vpop.f32.mrb[3].mxu1 }
 0x35c   : > { %24647 = vst [vmem:[#allocation35_spill] sm:$0xff] %v22835_v62  ;;  %19965 = vmatpush3.bf16.msra.mxu1 %v24625_v32 }
 0x35d   : > { %19967 = vmatprep.subr.bf16.mxu1 %v24626_v55 }
 0x35f   : > { %17873 = vmatmul.mubr.f32.vlgmr.msra.gmra.mrb[8].mxu1 %v3374_v16  ;;  %v24654_v16 = vld [vmem:[#allocation29_spill] sm:$0xff] }
 0x360   : > { %19969 = vmatpush3.bf16.msra.mxu1 %v24626_v55  ;;  %17875 = vmatprep.mubr.f32.mxu1 %v3384_v63  ;;  %v24656_v63 = vld [vmem:[#allocation31_spill] sm:$0xff] }
 0x361   : > { %19971 = vmatprep.subr.bf16.mxu1 %v24648_v52 }
 0x363   : > { %17876 = vmatmul.mubr.f32.gmra.mrb[10].mxu1 %v24649_v51  ;;  %v6234_v51 = vmul.f32 %v21571_v1, %v21571_v1  ;;  %v6237_v1 = vmul.f32 %v21574_v28, %v21574_v28 }
 0x364   : > { %19973 = vmatpush3.bf16.msra.mxu1 %v24648_v52  ;;  %17878 = vmatprep.mubr.f32.mxu1 %v24650_v4  ;;  %v21572_v4 = vld [vmem:[%s22051_s11 + $0x20] sm:$0xff] }
 0x365   : > { %19975 = vmatprep.subr.bf16.mxu1 %v24651_v53  ;;  %v22961_v14 = vand.u32 4294901760, %v6237_v1 }
 0x367   : > { %17879 = vmatmul.mubr.f32.gmra.mrb[12].mxu1 %v3414_v8  ;;  %v6231_v8 = vmul.f32 %v21568_v43, %v21568_v43  ;;  %v22979_v7 = vsub.f32 %v6237_v1, %v22961_v14 }
 0x368   : > { %19977 = vmatpush3.bf16.msra.mxu1 %v24651_v53  ;;  %17881 = vmatprep.mubr.f32.mxu1 %v3424_v20 }
 0x369   : > { %19979 = vmatprep.subr.bf16.mxu1 %v24652_v18  ;;  %v22896_v0 = vand.u32 4294901760, %v6231_v8  ;;  %v6382_v29 = vand.u32 4294901760, %v22979_v7 }
 0x36b   : > { %17882 = vmatmul.mubr.f32.gmra.mrb[14].mxu1 %v3434_v50  ;;  %v21569_v50 = vld [vmem:[%s22051_s11 + $0x8] sm:$0xff] }
 0x36c   : > { %19981 = vmatpush3.bf16.msra.mxu1 %v24652_v18  ;;  %17916 = vmatprep.mubr.f32.mxu1 %v22661_v2 }
 0x36d   : > { %19983 = vmatprep.subr.bf16.mxu1 %v24653_v60 }
 0x370   : > { %19985 = vmatpush3.bf16.msra.mxu1 %v24653_v60 }
 0x371   : > { %19987 = vmatprep.subr.bf16.mxu1 %v24654_v16 }
 0x374   : > { %19989 = vmatpush3.bf16.msra.mxu1 %v24654_v16 }
 0x375   : > { %19991 = vmatprep.subr.bf16.mxu1 %v24655_v56 }
 0x378   : > { %19993 = vmatpush3.bf16.msra.mxu1 %v24655_v56 }
 0x379   : > { %19995 = vmatprep.subr.bf16.mxu1 %v24656_v63 }
 0x37c   : > { %19997 = vmatpush3.bf16.msra.mxu1 %v24656_v63 }
 0x37d   : > { %19999 = vmatprep.subr.bf16.mxu1 %v22072_v10 }
 0x37f   : > { %17917 = vmatmul.mubr.f32.vlgmr.msra.gmra.mrb[8].mxu1 %v22687_v31 }
 0x380   : > { %20001 = vmatpush3.bf16.msra.mxu1 %v22072_v10  ;;  %17919 = vmatprep.mubr.f32.mxu1 %v22690_v30 }
 0x381   : > { %20003 = vmatprep.subr.bf16.mxu1 %v22074_v13 }
 0x383   : > { %17920 = vmatmul.mubr.f32.gmra.mrb[10].mxu1 %v22698_v48 }
 0x384   : > { %20005 = vmatpush3.bf16.msra.mxu1 %v22074_v13  ;;  %17922 = vmatprep.mubr.f32.mxu1 %v22704_v17 }
 0x385   : > { %20007 = vmatprep.subr.bf16.mxu1 %v24618_v5 }
 0x386   : > { %v22878_v57 = vpop.f32.mrb[4].mxu1 }
 0x387   : > { %24657 = vst [vmem:[#allocation36_spill] sm:$0xff] %v22878_v57  ;;  %v22880_v58 = vpop.f32.mrb[5].mxu1  ;;  %17923 = vmatmul.mubr.f32.gmra.mrb[12].mxu1 %v22713_v54  ;;  %v21575_v57 = vld [vmem:[%s22051_s11 + $0x38] sm:$0xff] }
 0x388   : > { %24658 = vst [vmem:[#allocation37_spill] sm:$0xff] %v22880_v58  ;;  %20009 = vmatpush3.bf16.msra.mxu1 %v24618_v5  ;;  %17925 = vmatprep.mubr.f32.mxu1 %v22720_v41 }
 0x389   : > { %20011 = vmatprep.subr.bf16.mxu1 %v24620_v15 }
 0x38b   : > { %17926 = vmatmul.mubr.f32.gmra.mrb[14].mxu1 %v22731_v25 }
 0x38c   : > { %20013 = vmatpush3.bf16.msra.mxu1 %v24620_v15  ;;  %17960 = vmatprep.mubr.f32.mxu1 %v22661_v2  ;;  %v22901_v2 = vsub.f32 %v6231_v8, %v22896_v0  ;;  %v22934_v8 = vand.u32 4294901760, %v6234_v51 }
 0x38d   : > { %20015 = vmatprep.subr.bf16.mxu1 %v24622_v61 }
 0x38e   : > { %v24495_v20 = vand.u32 4294901760, %v22901_v2  ;;  %v22951_v58 = vsub.f32 %v6234_v51, %v22934_v8 }
 0x390   : > { %20017 = vmatpush3.bf16.msra.mxu1 %v24622_v61 }
 0x391   : > { %20019 = vmatprep.subr.bf16.mxu1 %v24623_v6 }
 0x394   : > { %20021 = vmatpush3.bf16.msra.mxu1 %v24623_v6 }
 0x395   : > { %20023 = vmatprep.subr.bf16.mxu1 %v24624_v37 }
 0x398   : > { %20025 = vmatpush3.bf16.msra.mxu1 %v24624_v37 }
 0x399   : > { %20027 = vmatprep.subr.bf16.mxu1 %v24625_v32 }
 0x39c   : > { %20029 = vmatpush3.bf16.msra.mxu1 %v24625_v32 }
 0x39d   : > { %20127 = vmatprep.subr.bf16.mxu1 %v22072_v10 }
 0x39f   : > { %17961 = vmatmul.mubr.f32.vlgmr.msra.gmra.mrb[8].mxu1 %v22687_v31  ;;  %v6323_v31 = vsub.f32 %v22901_v2, %v24495_v20 }
 0x3a0   : > { %20129 = vmatpush3.bf16.msra.mxu1 %v22072_v10  ;;  %17963 = vmatprep.mubr.f32.mxu1 %v22690_v30  ;;  %v6232_v30 = vmul.f32 %v21569_v50, %v21569_v50 }
 0x3a1   : > { %20131 = vmatprep.subr.bf16.mxu1 %v22074_v13 }
 0x3a3   : > { %17964 = vmatmul.mubr.f32.gmra.mrb[10].mxu1 %v22698_v48  ;;  %v6324_v48 = vand.u32 4294901760, %v6323_v31  ;;  %v21573_v31 = vld [vmem:[%s22051_s11 + $0x28] sm:$0xff] }
 0x3a4   : > { %20133 = vmatpush3.bf16.msra.mxu1 %v22074_v13  ;;  %17966 = vmatprep.mubr.f32.mxu1 %v22704_v17  ;;  %v22922_v17 = vand.u32 4294901760, %v6232_v30 }
 0x3a5   : > { %20135 = vmatprep.subr.bf16.mxu1 %v24618_v5 }
 0x3a6   : > { %v22932_v43 = vsub.f32 %v6232_v30, %v22922_v17 }
 0x3a7   : > { %17967 = vmatmul.mubr.f32.gmra.mrb[12].mxu1 %v22713_v54  ;;  %v22927_v54 = vand.u32 4294901760, %v6233_v21 }
 0x3a8   : > { %20137 = vmatpush3.bf16.msra.mxu1 %v24618_v5  ;;  %17969 = vmatprep.mubr.f32.mxu1 %v22720_v41  ;;  %v6235_v41 = vmul.f32 %v21572_v4, %v21572_v4  ;;  %v24504_v30 = vand.u32 4294901760, %v22932_v43 }
 0x3a9   : > { %20139 = vmatprep.subr.bf16.mxu1 %v24620_v15  ;;  %v22939_v50 = vsub.f32 %v6233_v21, %v22927_v54  ;;  %v6238_v21 = vmul.f32 %v21575_v57, %v21575_v57 }
 0x3aa   : > { %v6333_v51 = vsub.f32 %v22932_v43, %v24504_v30 }
 0x3ab   : > { %17970 = vmatmul.mubr.f32.gmra.mrb[14].mxu1 %v22731_v25  ;;  %v6236_v25 = vmul.f32 %v21573_v31, %v21573_v31  ;;  %v24509_v62 = vand.u32 4294901760, %v22939_v50  ;;  %v22971_v57 = vand.u32 4294901760, %v6238_v21 }
 0x3ac   : > { %20141 = vmatpush3.bf16.msra.mxu1 %v24620_v15  ;;  %18172 = vmatprep.mubr.f32.mxu1 %v6324_v48  ;;  %v22941_v48 = vand.u32 4294901760, %v6235_v41  ;;  %v6334_v30 = vand.u32 4294901760, %v6333_v51 }
 0x3ad   : > { %20143 = vmatprep.subr.bf16.mxu1 %v24622_v61  ;;  %v22953_v31 = vand.u32 4294901760, %v6236_v25  ;;  %v22987_v34 = vsub.f32 %v6238_v21, %v22971_v57 }
 0x3ae   : > { %v22959_v28 = vsub.f32 %v6235_v41, %v22941_v48  ;;  %v6343_v41 = vsub.f32 %v22939_v50, %v24509_v62 }
 0x3af   : > { %v6392_v21 = vand.u32 4294901760, %v22987_v34 }
 0x3b0   : > { %20145 = vmatpush3.bf16.msra.mxu1 %v24622_v61  ;;  %v24513_v44 = vand.u32 4294901760, %v22959_v28  ;;  %v6344_v62 = vand.u32 4294901760, %v6343_v41 }
 0x3b1   : > { %20147 = vmatprep.subr.bf16.mxu1 %v24623_v6 }
 0x3b2   : > { %v22945_v4 = vpop.f32.mrb[6].mxu1  ;;  %v6363_v1 = vsub.f32 %v22959_v28, %v24513_v44  ;;  %v6383_v44 = vsub.f32 %v22979_v7, %v6382_v29 }
 0x3b3   : > { %24659 = vst [vmem:[#allocation38_spill] sm:$0xff] %v22945_v4  ;;  %v22947_v20 = vpop.f32.mrb[7].mxu1  ;;  %v22969_v4 = vsub.f32 %v6236_v25, %v22953_v31 }
 0x3b4   : > { %24660 = vst [vmem:[#allocation39_spill] sm:$0xff] %v22947_v20  ;;  %20149 = vmatpush3.bf16.msra.mxu1 %v24623_v6  ;;  %v24512_v20 = vand.u32 4294901760, %v22951_v58  ;;  %v6364_v41 = vand.u32 4294901760, %v6363_v1  ;;  %v24665_v1 = vand.u32 4294901760, %v22959_v28 }
 0x3b5   : > { %20151 = vmatprep.subr.bf16.mxu1 %v24624_v37  ;;  %v6372_v11 = vand.u32 4294901760, %v22969_v4 }
 0x3b6   : > { %v6353_v25 = vsub.f32 %v22951_v58, %v24512_v20 }
 0x3b7   : > { %v6373_v20 = vsub.f32 %v22969_v4, %v6372_v11 }
 0x3b8   : > { %20153 = vmatpush3.bf16.msra.mxu1 %v24624_v37  ;;  %v6354_v51 = vand.u32 4294901760, %v6353_v25  ;;  %v6384_v25 = vand.u32 4294901760, %v6383_v44  ;;  %v24662_v44 = vand.u32 4294901760, %v22932_v43 }
 0x3b9   : > { %20155 = vmatprep.subr.bf16.mxu1 %v24625_v32  ;;  %v6374_v24 = vand.u32 4294901760, %v6373_v20  ;;  %v24664_v20 = vand.u32 4294901760, %v22951_v58 }
 0x3bc   : > { %20157 = vmatpush3.bf16.msra.mxu1 %v24625_v32 }
 0x3bd   : > { %20159 = vmatprep.subr.bf16.mxu1 %v24643_v47 }
 0x3bf   : > { %18173 = vmatmul.mubr.f32.vlgmr.msra.gmra.mrb[16].mxu1 %v6334_v30  ;;  %v6393_v30 = vsub.f32 %v22987_v34, %v6392_v21 }
 0x3c0   : > { %20161 = vmatpush3.bf16.msra.mxu1 %v24643_v47  ;;  %18175 = vmatprep.mubr.f32.mxu1 %v6344_v62 }
 0x3c1   : > { %20163 = vmatprep.subr.bf16.mxu1 %v22248_v59  ;;  %v6394_v62 = vand.u32 4294901760, %v6393_v30 }
 0x3c3   : > { %18176 = vmatmul.mubr.f32.gmra.mrb[18].mxu1 %v6354_v51 }
 0x3c4   : > { %20165 = vmatpush3.bf16.msra.mxu1 %v22248_v59  ;;  %18178 = vmatprep.mubr.f32.mxu1 %v6364_v41 }
 0x3c5   : > { %20167 = vmatprep.subr.bf16.mxu1 %v22281_v19 }
 0x3c7   : > { %18179 = vmatmul.mubr.f32.gmra.mrb[20].mxu1 %v6374_v24  ;;  %v24661_v24 = vand.u32 4294901760, %v22901_v2 }
 0x3c8   : > { %20169 = vmatpush3.bf16.msra.mxu1 %v22281_v19  ;;  %18181 = vmatprep.mubr.f32.mxu1 %v6384_v25 }
 0x3c9   : > { %20171 = vmatprep.subr.bf16.mxu1 %v22370_v12 }
 0x3cb   : > { %18182 = vmatmul.mubr.f32.gmra.mrb[22].mxu1 %v6394_v62 }
 0x3cc   : > { %20173 = vmatpush3.bf16.msra.mxu1 %v22370_v12  ;;  %18216 = vmatprep.mubr.f32.mxu1 %v22896_v0 }
 0x3cd   : > { %20175 = vmatprep.subr.bf16.mxu1 %v22374_v49 }
 0x3d0   : > { %20177 = vmatpush3.bf16.msra.mxu1 %v22374_v49 }
 0x3d1   : > { %20179 = vmatprep.subr.bf16.mxu1 %v22379_v38 }
 0x3d4   : > { %20181 = vmatpush3.bf16.msra.mxu1 %v22379_v38 }
 0x3d5   : > { %20183 = vmatprep.subr.bf16.mxu1 %v22387_v42 }
 0x3d8   : > { %20185 = vmatpush3.bf16.msra.mxu1 %v22387_v42 }
 0x3d9   : > { %20187 = vmatprep.subr.bf16.mxu1 %v22391_v33 }
 0x3dc   : > { %20189 = vmatpush3.bf16.msra.mxu1 %v22391_v33 }
 0x3dd   : > { %20191 = vmatprep.subr.bf16.mxu1 %v22397_v40 }
 0x3df   : > { %18217 = vmatmul.mubr.f32.vlgmr.msra.gmra.mrb[16].mxu1 %v22922_v17 }
 0x3e0   : > { %20193 = vmatpush3.bf16.msra.mxu1 %v22397_v40  ;;  %18219 = vmatprep.mubr.f32.mxu1 %v22927_v54 }
 0x3e1   : > { %20195 = vmatprep.subr.bf16.mxu1 %v22403_v39 }
 0x3e3   : > { %18220 = vmatmul.mubr.f32.gmra.mrb[18].mxu1 %v22934_v8 }
 0x3e4   : > { %20197 = vmatpush3.bf16.msra.mxu1 %v22403_v39  ;;  %18222 = vmatprep.mubr.f32.mxu1 %v22941_v48 }
 0x3e5   : > { %20199 = vmatprep.subr.bf16.mxu1 %v22411_v26 }
 0x3e7   : > { %18223 = vmatmul.mubr.f32.gmra.mrb[20].mxu1 %v22953_v31 }
 0x3e8   : > { %20201 = vmatpush3.bf16.msra.mxu1 %v22411_v26  ;;  %18225 = vmatprep.mubr.f32.mxu1 %v22961_v14 }
 0x3e9   : > { %20203 = vmatprep.subr.bf16.mxu1 %v22419_v27 }
 0x3eb   : > { %18226 = vmatmul.mubr.f32.gmra.mrb[22].mxu1 %v22971_v57 }
 0x3ec   : > { %20205 = vmatpush3.bf16.msra.mxu1 %v22419_v27  ;;  %18260 = vmatprep.mubr.f32.mxu1 %v22901_v2  ;;  %v24663_v2 = vand.u32 4294901760, %v22939_v50 }
 0x3ed   : > { %20207 = vmatprep.subr.bf16.mxu1 %v22427_v35 }
 0x3f0   : > { %20209 = vmatpush3.bf16.msra.mxu1 %v22427_v35 }
 0x3f1   : > { %20211 = vmatprep.subr.bf16.mxu1 %v22435_v36 }
 0x3f4   : > { %20213 = vmatpush3.bf16.msra.mxu1 %v22435_v36 }
 0x3f5   : > { %20215 = vmatprep.subr.bf16.mxu1 %v22441_v45 }
 0x3f8   : > { %20217 = vmatpush3.bf16.msra.mxu1 %v22441_v45 }
 0x3f9   : > { %20219 = vmatprep.subr.bf16.mxu1 %v22447_v46 }
 0x3fc   : > { %20221 = vmatpush3.bf16.msra.mxu1 %v22447_v46 }
 0x3fd   : > { %20223 = vmatprep.subr.bf16.mxu1 %v22072_v10 }
 0x3ff   : > { %18261 = vmatmul.mubr.f32.vlgmr.msra.gmra.mrb[16].mxu1 %v22932_v43 }
 0x400   : > { %20225 = vmatpush3.bf16.msra.mxu1 %v22072_v10  ;;  %18263 = vmatprep.mubr.f32.mxu1 %v22939_v50 }
 0x401   : > { %20227 = vmatprep.subr.bf16.mxu1 %v22074_v13 }
 0x403   : > { %18264 = vmatmul.mubr.f32.gmra.mrb[18].mxu1 %v22951_v58 }
 0x404   : > { %20229 = vmatpush3.bf16.msra.mxu1 %v22074_v13  ;;  %18266 = vmatprep.mubr.f32.mxu1 %v22959_v28 }
 0x405   : > { %20231 = vmatprep.subr.bf16.mxu1 %v24618_v5 }
 0x407   : > { %18267 = vmatmul.mubr.f32.gmra.mrb[20].mxu1 %v22969_v4 }
 0x408   : > { %20233 = vmatpush3.bf16.msra.mxu1 %v24618_v5  ;;  %18269 = vmatprep.mubr.f32.mxu1 %v22979_v7 }
 0x409   : > { %20235 = vmatprep.subr.bf16.mxu1 %v24620_v15 }
 0x40b   : > { %18270 = vmatmul.mubr.f32.gmra.mrb[22].mxu1 %v22987_v34 }
 0x40c   : > { %20237 = vmatpush3.bf16.msra.mxu1 %v24620_v15  ;;  %18304 = vmatprep.mubr.f32.mxu1 %v24661_v24 }
 0x40d   : > { %20239 = vmatprep.subr.bf16.mxu1 %v24622_v61 }
 0x410   : > { %20241 = vmatpush3.bf16.msra.mxu1 %v24622_v61 }
 0x411   : > { %20243 = vmatprep.subr.bf16.mxu1 %v24623_v6 }
 0x414   : > { %20245 = vmatpush3.bf16.msra.mxu1 %v24623_v6 }
 0x415   : > { %20247 = vmatprep.subr.bf16.mxu1 %v24624_v37 }
 0x418   : > { %20249 = vmatpush3.bf16.msra.mxu1 %v24624_v37 }
 0x419   : > { %20251 = vmatprep.subr.bf16.mxu1 %v24625_v32 }
 0x41c   : > { %20253 = vmatpush3.bf16.msra.mxu1 %v24625_v32 }
 0x41d   : > { %20255 = vmatprep.subr.bf16.mxu1 %v24626_v55 }
 0x41f   : > { %18305 = vmatmul.mubr.f32.vlgmr.msra.gmra.mrb[16].mxu1 %v24662_v44 }
 0x420   : > { %20257 = vmatpush3.bf16.msra.mxu1 %v24626_v55  ;;  %18307 = vmatprep.mubr.f32.mxu1 %v24663_v2 }
 0x421   : > { %20259 = vmatprep.subr.bf16.mxu1 %v24648_v52 }
 0x423   : > { %18308 = vmatmul.mubr.f32.gmra.mrb[18].mxu1 %v24664_v20 }
 0x424   : > { %20261 = vmatpush3.bf16.msra.mxu1 %v24648_v52  ;;  %18310 = vmatprep.mubr.f32.mxu1 %v24665_v1 }
 0x425   : > { %20263 = vmatprep.subr.bf16.mxu1 %v24651_v53 }
 0x427   : > { %18311 = vmatmul.mubr.f32.gmra.mrb[20].mxu1 %v6372_v11 }
 0x428   : > { %20265 = vmatpush3.bf16.msra.mxu1 %v24651_v53  ;;  %18313 = vmatprep.mubr.f32.mxu1 %v6382_v29 }
 0x429   : > { %20267 = vmatprep.subr.bf16.mxu1 %v24652_v18 }
 0x42b   : > { %18314 = vmatmul.mubr.f32.gmra.mrb[22].mxu1 %v6392_v21 }
 0x42c   : > { %20269 = vmatpush3.bf16.msra.mxu1 %v24652_v18  ;;  %18348 = vmatprep.mubr.f32.mxu1 %v22896_v0 }
 0x42d   : > { %20271 = vmatprep.subr.bf16.mxu1 %v24653_v60 }
 0x430   : > { %20273 = vmatpush3.bf16.msra.mxu1 %v24653_v60 }
 0x431   : > { %20275 = vmatprep.subr.bf16.mxu1 %v24654_v16 }
 0x434   : > { %20277 = vmatpush3.bf16.msra.mxu1 %v24654_v16 }
 0x435   : > { %20279 = vmatprep.subr.bf16.mxu1 %v24655_v56 }
 0x438   : > { %20281 = vmatpush3.bf16.msra.mxu1 %v24655_v56 }
 0x439   : > { %20283 = vmatprep.subr.bf16.mxu1 %v24656_v63 }
 0x43c   : > { %20285 = vmatpush3.bf16.msra.mxu1 %v24656_v63 }
 0x43d   : > { %20287 = vmatprep.subr.bf16.mxu1 %v22072_v10 }
 0x43f   : > { %18349 = vmatmul.mubr.f32.vlgmr.msra.gmra.mrb[16].mxu1 %v22922_v17 }
 0x440   : > { %20289 = vmatpush3.bf16.msra.mxu1 %v22072_v10  ;;  %18351 = vmatprep.mubr.f32.mxu1 %v22927_v54 }
 0x441   : > { %20291 = vmatprep.subr.bf16.mxu1 %v22074_v13 }
 0x443   : > { %18352 = vmatmul.mubr.f32.gmra.mrb[18].mxu1 %v22934_v8 }
 0x444   : > { %20293 = vmatpush3.bf16.msra.mxu1 %v22074_v13  ;;  %18354 = vmatprep.mubr.f32.mxu1 %v22941_v48 }
 0x445   : > { %20295 = vmatprep.subr.bf16.mxu1 %v24618_v5 }
 0x447   : > { %18355 = vmatmul.mubr.f32.gmra.mrb[20].mxu1 %v22953_v31 }
 0x448   : > { %20297 = vmatpush3.bf16.msra.mxu1 %v24618_v5  ;;  %18357 = vmatprep.mubr.f32.mxu1 %v22961_v14 }
 0x449   : > { %20299 = vmatprep.subr.bf16.mxu1 %v24620_v15 }
 0x44b   : > { %18358 = vmatmul.mubr.f32.gmra.mrb[22].mxu1 %v22971_v57 }
 0x44c   : > { %20301 = vmatpush3.bf16.msra.mxu1 %v24620_v15  ;;  %18392 = vmatprep.mubr.f32.mxu1 %v22896_v0 }
 0x44d   : > { %20303 = vmatprep.subr.bf16.mxu1 %v24622_v61 }
 0x450   : > { %20305 = vmatpush3.bf16.msra.mxu1 %v24622_v61 }
 0x451   : > { %20307 = vmatprep.subr.bf16.mxu1 %v24623_v6 }
 0x454   : > { %20309 = vmatpush3.bf16.msra.mxu1 %v24623_v6 }
 0x455   : > { %20311 = vmatprep.subr.bf16.mxu1 %v24624_v37 }
 0x458   : > { %20313 = vmatpush3.bf16.msra.mxu1 %v24624_v37 }
 0x459   : > { %20315 = vmatprep.subr.bf16.mxu1 %v24625_v32 }
 0x45c   : > { %20317 = vmatpush3.bf16.msra.mxu1 %v24625_v32 }
 0x45f   : > { %18393 = vmatmul.mubr.f32.vlgmr.msra.gmra.mrb[16].mxu1 %v22922_v17 }
 0x460   : > { %18395 = vmatprep.mubr.f32.mxu1 %v22927_v54 }
 0x463   : > { %18396 = vmatmul.mubr.f32.gmra.mrb[18].mxu1 %v22934_v8 }
 0x464   : > { %18398 = vmatprep.mubr.f32.mxu1 %v22941_v48 }
 0x467   : > { %18399 = vmatmul.mubr.f32.gmra.mrb[20].mxu1 %v22953_v31 }
 0x468   : > { %18401 = vmatprep.mubr.f32.mxu1 %v22961_v14 }
 0x46b   : > { %18402 = vmatmul.mubr.f32.gmra.mrb[22].mxu1 %v22971_v57 }
 0x46c   : > { %18408 = vmatprep.mubr.f32.mxu1 %v22549_v9 }
 0x472   : > { %v17962_v34 = vpop.f32.mrb[8].mxu1 }
 0x473   : > { %v4227_v29 = vand.u32 4294901760, %v17962_v34  ;;  %v4177_v11 = vpop.f32.mrb[9].mxu1 }
 0x474   : > { %v4224_v7 = vand.u32 4294901760, %v4177_v11 }
 0x475   : > { %v4319_v58 = vsub.f32 %v17962_v34, %v4227_v29 }
 0x476   : > { %v23133_v0 = vpack.c.bf16 %v4227_v29, %v4224_v7  ;;  %v4312_v17 = vsub.f32 %v4177_v11, %v4224_v7  ;;  %v17965_v54 = vpop.f32.mrb[10].mxu1 }
 0x477   : > { %v4320_v43 = vand.u32 4294901760, %v4319_v58  ;;  %v4729_v8 = vand.u32 4294901760, %v17965_v54  ;;  %v4189_v50 = vpop.f32.mrb[11].mxu1 }
 0x478   : > { %v4313_v48 = vand.u32 4294901760, %v4312_v17  ;;  %v4726_v4 = vand.u32 4294901760, %v4189_v50  ;;  %20031 = vmatprep.subr.bf16.mxu0 %v23133_v0  ;;  %v20038_v14 = vpack.c.bf16 %v4319_v58, %v4312_v17 }
 0x479   : > { %v4321_v31 = vsub.f32 %v4319_v58, %v4320_v43  ;;  %v4821_v28 = vsub.f32 %v17965_v54, %v4729_v8  ;;  %20033 = vmatpush3.bf16.msra.mxu0 %v23133_v0 }
 0x47a   : > { %v4314_v57 = vsub.f32 %v4312_v17, %v4313_v48  ;;  %v23137_v51 = vpack.c.bf16 %v4729_v8, %v4726_v4  ;;  %v4814_v21 = vsub.f32 %v4189_v50, %v4726_v4  ;;  %v17968_v41 = vpop.f32.mrb[12].mxu1  ;;  %v20046_v30 = vpack.c.bf16 %v4320_v43, %v4313_v48 }
 0x47b   : > { %v4822_v25 = vand.u32 4294901760, %v4821_v28  ;;  %v5231_v62 = vand.u32 4294901760, %v17968_v41  ;;  %v4201_v24 = vpop.f32.mrb[13].mxu1  ;;  %v4322_v44 = vand.u32 4294901760, %v4321_v31 }
 0x47c   : > { %v4815_v2 = vand.u32 4294901760, %v4814_v21  ;;  %v5228_v20 = vand.u32 4294901760, %v4201_v24  ;;  %17977 = vmatmul.mubr.f32.vlgmr.msra.gmra.mrb[8].mxu0 %v22566_v23  ;;  %v4315_v1 = vand.u32 4294901760, %v4314_v57  ;;  %v23140_v34 = vpack.c.bf16 %v4821_v28, %v4814_v21 }
 0x47d   : > { %v4823_v29 = vsub.f32 %v4821_v28, %v4822_v25  ;;  %v5323_v11 = vsub.f32 %v17968_v41, %v5231_v62  ;;  %17983 = vmatprep.mubr.f32.mxu0 %v22539_v3 }
 0x47e   : > { %v4816_v7 = vsub.f32 %v4814_v21, %v4815_v2  ;;  %v23143_v58 = vpack.c.bf16 %v5231_v62, %v5228_v20  ;;  %v5316_v17 = vsub.f32 %v4201_v24, %v5228_v20  ;;  %v17971_v54 = vpop.f32.mrb[14].mxu1  ;;  %v20034_v43 = vpack.c.bf16 %v4322_v44, %v4315_v1 }
 0x47f   : > { %v5324_v8 = vand.u32 4294901760, %v5323_v11  ;;  %v5733_v50 = vand.u32 4294901760, %v17971_v54  ;;  %v4213_v48 = vpop.f32.mrb[15].mxu1  ;;  %v4824_v4 = vand.u32 4294901760, %v4823_v29  ;;  %v20070_v31 = vpack.c.bf16 %v4822_v25, %v4815_v2 }
 0x480   : > { %v5317_v63 = vand.u32 4294901760, %v5316_v17  ;;  %v5730_v56 = vand.u32 4294901760, %v4213_v48  ;;  %20035 = vmatprep.subr.bf16.mxu0 %v20034_v43  ;;  %v4817_v57 = vand.u32 4294901760, %v4816_v7  ;;  %v23145_v16 = vpack.c.bf16 %v5323_v11, %v5316_v17 }
 0x481   : > { %v5325_v28 = vsub.f32 %v5323_v11, %v5324_v8  ;;  %v5825_v41 = vsub.f32 %v17971_v54, %v5733_v50  ;;  %20037 = vmatpush3.bf16.msra.mxu0 %v20034_v43  ;;  %v24666_v11 = vld [vmem:[#allocation23_spill] sm:$0xff] }
 0x482   : > { %v5318_v21 = vsub.f32 %v5316_v17, %v5317_v63  ;;  %v23147_v62 = vpack.c.bf16 %v5733_v50, %v5730_v56  ;;  %v5818_v24 = vsub.f32 %v4213_v48, %v5730_v56  ;;  %20039 = vmatprep.subr.bf16.mxu0 %v20038_v14  ;;  %v20058_v44 = vpack.c.bf16 %v4824_v4, %v4817_v57  ;;  %v24668_v48 = vld [vmem:[#allocation17_spill] sm:$0xff] }
 0x483   : > { %v5826_v20 = vand.u32 4294901760, %v5825_v41  ;;  %v5326_v1 = vand.u32 4294901760, %v5325_v28  ;;  %v23149_v60 = vpack.c.bf16 %v5324_v8, %v5317_v63  ;;  %v24667_v8 = vld [vmem:[#allocation20_spill] sm:$0xff] }
 0x484   : > { %v5819_v25 = vand.u32 4294901760, %v5818_v24  ;;  %17984 = vmatmul.mubr.f32.vlgmr.msra.gmra.mrb[8].mxu0 %v22553_v22  ;;  %v5319_v2 = vand.u32 4294901760, %v5318_v21  ;;  %v23152_v29 = vpack.c.bf16 %v5825_v41, %v5818_v24 }
 0x485   : > { %v5827_v7 = vsub.f32 %v5825_v41, %v5826_v20  ;;  %20041 = vmatpush3.bf16.msra.mxu0 %v20038_v14  ;;  %17990 = vmatprep.mubr.f32.mxu0 %v24666_v11  ;;  %v24669_v14 = vld [vmem:[#allocation21_spill] sm:$0xff] }
 0x486   : > { %v5820_v17 = vsub.f32 %v5818_v24, %v5819_v25  ;;  %20043 = vmatprep.subr.bf16.mxu0 %v23133_v0  ;;  %v20082_v56 = vpack.c.bf16 %v5326_v1, %v5319_v2  ;;  %v23156_v54 = vpack.c.bf16 %v5826_v20, %v5819_v25 }
 0x487   : > { %v5828_v43 = vand.u32 4294901760, %v5827_v7 }
 0x488   : > { %v5821_v50 = vand.u32 4294901760, %v5820_v17 }
 0x48a   : > { %v23158_v63 = vpack.c.bf16 %v5828_v43, %v5821_v50 }
 0x48c   : > { %17991 = vmatmul.mubr.f32.vlgmr.msra.gmra.mrb[8].mxu0 %v24667_v8 }
 0x48d   : > { %20045 = vmatpush3.bf16.msra.mxu0 %v23133_v0  ;;  %17997 = vmatprep.mubr.f32.mxu0 %v24668_v48 }
 0x48e   : > { %20047 = vmatprep.subr.bf16.mxu0 %v20046_v30 }
 0x494   : > { %17998 = vmatmul.mubr.f32.vlgmr.msra.gmra.mrb[8].mxu0 %v24669_v14 }
 0x495   : > { %20049 = vmatpush3.bf16.msra.mxu0 %v20046_v30  ;;  %18004 = vmatprep.mubr.f32.mxu0 %v22539_v3 }
 0x496   : > { %20051 = vmatprep.subr.bf16.mxu0 %v23133_v0 }
 0x49c   : > { %18005 = vmatmul.mubr.f32.vlgmr.msra.gmra.mrb[8].mxu0 %v22553_v22 }
 0x49d   : > { %20053 = vmatpush3.bf16.msra.mxu0 %v23133_v0  ;;  %18011 = vmatprep.mubr.f32.mxu0 %v22539_v3 }
 0x49e   : > { %20055 = vmatprep.subr.bf16.mxu0 %v23137_v51 }
 0x4a4   : > { %18012 = vmatmul.mubr.f32.vlgmr.msra.gmra.mrb[8].mxu0 %v22553_v22 }
 0x4a5   : > { %20057 = vmatpush3.bf16.msra.mxu0 %v23137_v51  ;;  %18018 = vmatprep.mubr.f32.mxu0 %v22549_v9 }
 0x4a6   : > { %20059 = vmatprep.subr.bf16.mxu0 %v20058_v44 }
 0x4a8   : > { %18019 = vmatmul.mubr.f32.vlgmr.msra.gmra.mrb[10].mxu0 %v22566_v23 }
 0x4a9   : > { %20061 = vmatpush3.bf16.msra.mxu0 %v20058_v44  ;;  %18025 = vmatprep.mubr.f32.mxu0 %v22539_v3 }
 0x4aa   : > { %20063 = vmatprep.subr.bf16.mxu0 %v23140_v34 }
 0x4b0   : > { %18026 = vmatmul.mubr.f32.vlgmr.msra.gmra.mrb[10].mxu0 %v22553_v22 }
 0x4b1   : > { %20065 = vmatpush3.bf16.msra.mxu0 %v23140_v34  ;;  %18032 = vmatprep.mubr.f32.mxu0 %v24666_v11 }
 0x4b2   : > { %20067 = vmatprep.subr.bf16.mxu0 %v23137_v51 }
 0x4b8   : > { %18033 = vmatmul.mubr.f32.vlgmr.msra.gmra.mrb[10].mxu0 %v24667_v8 }
 0x4b9   : > { %20069 = vmatpush3.bf16.msra.mxu0 %v23137_v51  ;;  %18039 = vmatprep.mubr.f32.mxu0 %v24668_v48 }
 0x4ba   : > { %20071 = vmatprep.subr.bf16.mxu0 %v20070_v31 }
 0x4c0   : > { %18040 = vmatmul.mubr.f32.vlgmr.msra.gmra.mrb[10].mxu0 %v24669_v14 }
 0x4c1   : > { %20073 = vmatpush3.bf16.msra.mxu0 %v20070_v31  ;;  %18046 = vmatprep.mubr.f32.mxu0 %v22539_v3 }
 0x4c2   : > { %20075 = vmatprep.subr.bf16.mxu0 %v23137_v51 }
 0x4c8   : > { %18047 = vmatmul.mubr.f32.vlgmr.msra.gmra.mrb[10].mxu0 %v22553_v22 }
 0x4c9   : > { %20077 = vmatpush3.bf16.msra.mxu0 %v23137_v51  ;;  %18053 = vmatprep.mubr.f32.mxu0 %v22539_v3 }
 0x4ca   : > { %20079 = vmatprep.subr.bf16.mxu0 %v23143_v58 }
 0x4d0   : > { %18054 = vmatmul.mubr.f32.vlgmr.msra.gmra.mrb[10].mxu0 %v22553_v22 }
 0x4d1   : > { %20081 = vmatpush3.bf16.msra.mxu0 %v23143_v58  ;;  %18060 = vmatprep.mubr.f32.mxu0 %v22549_v9 }
 0x4d2   : > { %20083 = vmatprep.subr.bf16.mxu0 %v20082_v56 }
 0x4d4   : > { %18061 = vmatmul.mubr.f32.vlgmr.msra.gmra.mrb[12].mxu0 %v22566_v23 }
 0x4d5   : > { %20085 = vmatpush3.bf16.msra.mxu0 %v20082_v56  ;;  %18067 = vmatprep.mubr.f32.mxu0 %v22539_v3 }
 0x4d6   : > { %20087 = vmatprep.subr.bf16.mxu0 %v23145_v16 }
 0x4dc   : > { %18068 = vmatmul.mubr.f32.vlgmr.msra.gmra.mrb[12].mxu0 %v22553_v22 }
 0x4dd   : > { %20089 = vmatpush3.bf16.msra.mxu0 %v23145_v16  ;;  %18074 = vmatprep.mubr.f32.mxu0 %v24666_v11 }
 0x4de   : > { %20091 = vmatprep.subr.bf16.mxu0 %v23143_v58 }
 0x4e4   : > { %18075 = vmatmul.mubr.f32.vlgmr.msra.gmra.mrb[12].mxu0 %v24667_v8 }
 0x4e5   : > { %20093 = vmatpush3.bf16.msra.mxu0 %v23143_v58  ;;  %18081 = vmatprep.mubr.f32.mxu0 %v24668_v48 }
 0x4e6   : > { %20095 = vmatprep.subr.bf16.mxu0 %v23149_v60 }
 0x4ec   : > { %18082 = vmatmul.mubr.f32.vlgmr.msra.gmra.mrb[12].mxu0 %v24669_v14 }
 0x4ed   : > { %20097 = vmatpush3.bf16.msra.mxu0 %v23149_v60  ;;  %18088 = vmatprep.mubr.f32.mxu0 %v22539_v3 }
 0x4ee   : > { %20099 = vmatprep.subr.bf16.mxu0 %v23143_v58 }
 0x4f4   : > { %18089 = vmatmul.mubr.f32.vlgmr.msra.gmra.mrb[12].mxu0 %v22553_v22 }
 0x4f5   : > { %20101 = vmatpush3.bf16.msra.mxu0 %v23143_v58  ;;  %18095 = vmatprep.mubr.f32.mxu0 %v22539_v3 }
 0x4f6   : > { %20103 = vmatprep.subr.bf16.mxu0 %v23147_v62 }
 0x4fc   : > { %18096 = vmatmul.mubr.f32.vlgmr.msra.gmra.mrb[12].mxu0 %v22553_v22 }
 0x4fd   : > { %20105 = vmatpush3.bf16.msra.mxu0 %v23147_v62  ;;  %18102 = vmatprep.mubr.f32.mxu0 %v22549_v9 }
 0x4fe   : > { %20107 = vmatprep.subr.bf16.mxu0 %v23158_v63 }
 0x500   : > { %18103 = vmatmul.mubr.f32.vlgmr.msra.gmra.mrb[14].mxu0 %v22566_v23 }
 0x501   : > { %20109 = vmatpush3.bf16.msra.mxu0 %v23158_v63  ;;  %18109 = vmatprep.mubr.f32.mxu0 %v22539_v3 }
 0x502   : > { %20111 = vmatprep.subr.bf16.mxu0 %v23152_v29 }
 0x508   : > { %18110 = vmatmul.mubr.f32.vlgmr.msra.gmra.mrb[14].mxu0 %v22553_v22 }
 0x509   : > { %20113 = vmatpush3.bf16.msra.mxu0 %v23152_v29  ;;  %18116 = vmatprep.mubr.f32.mxu0 %v24666_v11 }
 0x50a   : > { %20115 = vmatprep.subr.bf16.mxu0 %v23147_v62 }
 0x510   : > { %18117 = vmatmul.mubr.f32.vlgmr.msra.gmra.mrb[14].mxu0 %v24667_v8 }
 0x511   : > { %20117 = vmatpush3.bf16.msra.mxu0 %v23147_v62  ;;  %18123 = vmatprep.mubr.f32.mxu0 %v24668_v48 }
 0x512   : > { %20119 = vmatprep.subr.bf16.mxu0 %v23156_v54 }
 0x518   : > { %18124 = vmatmul.mubr.f32.vlgmr.msra.gmra.mrb[14].mxu0 %v24669_v14 }
 0x519   : > { %20121 = vmatpush3.bf16.msra.mxu0 %v23156_v54  ;;  %18130 = vmatprep.mubr.f32.mxu0 %v22539_v3 }
 0x51a   : > { %20123 = vmatprep.subr.bf16.mxu0 %v23147_v62 }
 0x520   : > { %18131 = vmatmul.mubr.f32.vlgmr.msra.gmra.mrb[14].mxu0 %v22553_v22 }
 0x521   : > { %20125 = vmatpush3.bf16.msra.mxu0 %v23147_v62  ;;  %18137 = vmatprep.mubr.f32.mxu0 %v22539_v3 }
 0x528   : > { %18138 = vmatmul.mubr.f32.vlgmr.msra.gmra.mrb[14].mxu0 %v22553_v22 }
 0x529   : > { %18415 = vmatprep.mubr.f32.mxu0 %v22539_v3 }
 0x532   : > { %v18394_v60 = vpop.f32.mrb[16].mxu1 }
 0x533   : > { %v7185_v16 = vand.u32 4294901760, %v18394_v60  ;;  %v7135_v0 = vpop.f32.mrb[17].mxu1 }
 0x534   : > { %v7182_v51 = vand.u32 4294901760, %v7135_v0 }
 0x535   : > { %v7277_v30 = vsub.f32 %v18394_v60, %v7185_v16 }
 0x536   : > { %v23237_v34 = vpack.c.bf16 %v7185_v16, %v7182_v51  ;;  %v7270_v58 = vsub.f32 %v7135_v0, %v7182_v51  ;;  %v18397_v4 = vpop.f32.mrb[18].mxu1 }
 0x537   : > { %v7278_v31 = vand.u32 4294901760, %v7277_v30  ;;  %v7687_v57 = vand.u32 4294901760, %v18397_v4  ;;  %v7147_v28 = vpop.f32.mrb[19].mxu1 }
 0x538   : > { %v7271_v41 = vand.u32 4294901760, %v7270_v58  ;;  %v7684_v21 = vand.u32 4294901760, %v7147_v28  ;;  %20319 = vmatprep.subr.bf16.mxu1 %v23237_v34  ;;  %v20326_v62 = vpack.c.bf16 %v7277_v30, %v7270_v58 }
 0x539   : > { %v7279_v24 = vsub.f32 %v7277_v30, %v7278_v31  ;;  %v7779_v44 = vsub.f32 %v18397_v4, %v7687_v57  ;;  %20321 = vmatpush3.bf16.msra.mxu1 %v23237_v34 }
 0x53a   : > { %v7272_v20 = vsub.f32 %v7270_v58, %v7271_v41  ;;  %v23241_v1 = vpack.c.bf16 %v7687_v57, %v7684_v21  ;;  %v7772_v25 = vsub.f32 %v7147_v28, %v7684_v21  ;;  %v18400_v2 = vpop.f32.mrb[20].mxu1  ;;  %v20334_v29 = vpack.c.bf16 %v7278_v31, %v7271_v41 }
 0x53b   : > { %v7780_v7 = vand.u32 4294901760, %v7779_v44  ;;  %v8189_v17 = vand.u32 4294901760, %v18400_v2  ;;  %v7159_v56 = vpop.f32.mrb[21].mxu1  ;;  %v7280_v54 = vand.u32 4294901760, %v7279_v24 }
 0x53c   : > { %v7773_v43 = vand.u32 4294901760, %v7772_v25  ;;  %v8186_v50 = vand.u32 4294901760, %v7159_v56  ;;  %v7273_v63 = vand.u32 4294901760, %v7272_v20  ;;  %18409 = vmatmul.mubr.f32.vlgmr.msra.gmra.mrb[24].mxu1 %v22566_v23  ;;  %v23244_v60 = vpack.c.bf16 %v7779_v44, %v7772_v25 }
 0x53d   : > { %v7781_v16 = vsub.f32 %v7779_v44, %v7780_v7  ;;  %v8281_v0 = vsub.f32 %v18400_v2, %v8189_v17  ;;  %18840 = vmatprep.mubr.f32.mxu1 %v22549_v9 }
 0x53e   : > { %v7774_v51 = vsub.f32 %v7772_v25, %v7773_v43  ;;  %v23247_v30 = vpack.c.bf16 %v8189_v17, %v8186_v50  ;;  %v8274_v58 = vsub.f32 %v7159_v56, %v8186_v50  ;;  %v18403_v4 = vpop.f32.mrb[22].mxu1  ;;  %v20322_v31 = vpack.c.bf16 %v7280_v54, %v7273_v63 }
 0x53f   : > { %v8282_v57 = vand.u32 4294901760, %v8281_v0  ;;  %v8691_v28 = vand.u32 4294901760, %v18403_v4  ;;  %v7171_v41 = vpop.f32.mrb[23].mxu1  ;;  %v7782_v21 = vand.u32 4294901760, %v7781_v16  ;;  %v23249_v24 = vpack.c.bf16 %v7780_v7, %v7773_v43 }
 0x540   : > { %v8275_v20 = vand.u32 4294901760, %v8274_v58  ;;  %v8688_v18 = vand.u32 4294901760, %v7171_v41  ;;  %20323 = vmatprep.subr.bf16.mxu0 %v20322_v31  ;;  %v7775_v53 = vand.u32 4294901760, %v7774_v51  ;;  %v23251_v44 = vpack.c.bf16 %v8281_v0, %v8274_v58 }
 0x541   : > { %v8283_v2 = vsub.f32 %v8281_v0, %v8282_v57  ;;  %v8783_v52 = vsub.f32 %v18403_v4, %v8691_v28  ;;  %20325 = vmatpush3.bf16.msra.mxu0 %v20322_v31 }
 0x542   : > { %v8276_v25 = vsub.f32 %v8274_v58, %v8275_v20  ;;  %v23253_v17 = vpack.c.bf16 %v8691_v28, %v8688_v18  ;;  %v8776_v56 = vsub.f32 %v7171_v41, %v8688_v18  ;;  %20327 = vmatprep.subr.bf16.mxu0 %v20326_v62  ;;  %v20346_v54 = vpack.c.bf16 %v7782_v21, %v7775_v53  ;;  %v24673_v28 = vld [vmem:[#allocation33_spill] sm:$0xff] }
 0x543   : > { %v8784_v50 = vand.u32 4294901760, %v8783_v52  ;;  %v8284_v63 = vand.u32 4294901760, %v8283_v2  ;;  %v23255_v16 = vpack.c.bf16 %v8282_v57, %v8275_v20 }
 0x544   : > { %v8777_v7 = vand.u32 4294901760, %v8776_v56  ;;  %18416 = vmatmul.mubr.f32.vlgmr.msra.gmra.mrb[16].mxu0 %v22553_v22  ;;  %v8277_v43 = vand.u32 4294901760, %v8276_v25  ;;  %v23258_v51 = vpack.c.bf16 %v8783_v52, %v8776_v56 }
 0x545   : > { %v8785_v55 = vsub.f32 %v8783_v52, %v8784_v50  ;;  %20329 = vmatpush3.bf16.msra.mxu0 %v20326_v62  ;;  %18422 = vmatprep.mubr.f32.mxu0 %v24666_v11  ;;  %v24670_v52 = vld [vmem:[#allocation22_spill] sm:$0xff] }
 0x546   : > { %v8778_v0 = vsub.f32 %v8776_v56, %v8777_v7  ;;  %20331 = vmatprep.subr.bf16.mxu0 %v23237_v34  ;;  %v20370_v18 = vpack.c.bf16 %v8284_v63, %v8277_v43  ;;  %v23262_v58 = vpack.c.bf16 %v8784_v50, %v8777_v7  ;;  %v24682_v63 = vld [vmem:[#allocation35_spill] sm:$0xff] }
 0x547   : > { %v8786_v53 = vand.u32 4294901760, %v8785_v55 }
 0x548   : > { %v8779_v4 = vand.u32 4294901760, %v8778_v0 }
 0x54a   : > { %v23264_v31 = vpack.c.bf16 %v8786_v53, %v8779_v4  ;;  %v24690_v4 = vld [vmem:[#allocation37_spill] sm:$0xff] }
 0x54c   : > { %18423 = vmatmul.mubr.f32.vlgmr.msra.gmra.mrb[16].mxu0 %v24667_v8 }
 0x54d   : > { %20333 = vmatpush3.bf16.msra.mxu0 %v23237_v34  ;;  %18429 = vmatprep.mubr.f32.mxu0 %v24668_v48 }
 0x54e   : > { %20335 = vmatprep.subr.bf16.mxu0 %v20334_v29 }
 0x554   : > { %18430 = vmatmul.mubr.f32.vlgmr.msra.gmra.mrb[16].mxu0 %v24669_v14 }
 0x555   : > { %20337 = vmatpush3.bf16.msra.mxu0 %v20334_v29  ;;  %18436 = vmatprep.mubr.f32.mxu0 %v22539_v3 }
 0x556   : > { %20339 = vmatprep.subr.bf16.mxu0 %v23237_v34 }
 0x55c   : > { %18437 = vmatmul.mubr.f32.vlgmr.msra.gmra.mrb[16].mxu0 %v22553_v22 }
 0x55d   : > { %20341 = vmatpush3.bf16.msra.mxu0 %v23237_v34  ;;  %18443 = vmatprep.mubr.f32.mxu0 %v22539_v3  ;;  %v23288_v34 = vmul.f32 %v24670_v52, %v24670_v52 }
 0x55e   : > { %20343 = vmatprep.subr.bf16.mxu0 %v23241_v1 }
 0x564   : > { %18444 = vmatmul.mubr.f32.vlgmr.msra.gmra.mrb[16].mxu0 %v22553_v22 }
 0x565   : > { %20345 = vmatpush3.bf16.msra.mxu0 %v23241_v1  ;;  %18450 = vmatprep.mubr.f32.mxu0 %v22549_v9 }
 0x566   : > { %20347 = vmatprep.subr.bf16.mxu0 %v20346_v54 }
 0x568   : > { %18451 = vmatmul.mubr.f32.vlgmr.msra.gmra.mrb[18].mxu0 %v22566_v23 }
 0x569   : > { %20349 = vmatpush3.bf16.msra.mxu0 %v20346_v54  ;;  %18457 = vmatprep.mubr.f32.mxu0 %v22539_v3 }
 0x56a   : > { %20351 = vmatprep.subr.bf16.mxu0 %v23244_v60 }
 0x570   : > { %18458 = vmatmul.mubr.f32.vlgmr.msra.gmra.mrb[18].mxu0 %v22553_v22 }
 0x571   : > { %20353 = vmatpush3.bf16.msra.mxu0 %v23244_v60  ;;  %18464 = vmatprep.mubr.f32.mxu0 %v24666_v11  ;;  %v23298_v60 = vmul.f32 %v24673_v28, %v24673_v28 }
 0x572   : > { %20355 = vmatprep.subr.bf16.mxu0 %v23241_v1 }
 0x577   : > { %v18013_v55 = vpop.f32.mrb[8].mxu0 }
 0x578   : > { %v23290_v62 = vmul.f32 %v18013_v55, %v18013_v55  ;;  %v23293_v29 = vmul.f32 %v18013_v55, %v24670_v52  ;;  %v4715_v57 = vpop.f32.mrb[9].mxu0  ;;  %18465 = vmatmul.mubr.f32.vlgmr.msra.gmra.mrb[18].mxu0 %v24667_v8 }
 0x579   : > { %v23300_v41 = vmul.f32 %v4715_v57, %v4715_v57  ;;  %v23303_v21 = vmul.f32 %v4715_v57, %v24673_v28  ;;  %20357 = vmatpush3.bf16.msra.mxu0 %v23241_v1  ;;  %18471 = vmatprep.mubr.f32.mxu0 %v24668_v48 }
 0x57a   : > { %24671 = vst [vmem:[#allocation22_spill] sm:$0xff] %v23290_v62  ;;  %24672 = vst [vmem:[#allocation40_spill] sm:$0xff] %v23293_v29  ;;  %v23309_v20 = vadd.f32 %v23290_v62, %v23288_v34  ;;  %20359 = vmatprep.subr.bf16.mxu0 %v23249_v24 }
 0x57b   : > { %24674 = vst [vmem:[#allocation33_spill] sm:$0xff] %v23300_v41  ;;  %24675 = vst [vmem:[#allocation41_spill] sm:$0xff] %v23303_v21  ;;  %v23314_v2 = vadd.f32 %v23300_v41, %v23298_v60 }
 0x57c   : > { %24676 = vst [vmem:[#allocation42_spill] sm:$0xff] %v23309_v20 }
 0x57d   : > { %24677 = vst [vmem:[#allocation43_spill] sm:$0xff] %v23314_v2 }
 0x580   : > { %18472 = vmatmul.mubr.f32.vlgmr.msra.gmra.mrb[18].mxu0 %v24669_v14 }
 0x581   : > { %20361 = vmatpush3.bf16.msra.mxu0 %v23249_v24  ;;  %18478 = vmatprep.mubr.f32.mxu0 %v22539_v3  ;;  %v24678_v24 = vld [vmem:[#allocation34_spill] sm:$0xff] }
 0x582   : > { %20363 = vmatprep.subr.bf16.mxu0 %v23241_v1  ;;  %v23336_v25 = vmul.f32 %v24678_v24, %v24678_v24 }
 0x584   : > { %24679 = vst [vmem:[#allocation34_spill] sm:$0xff] %v23336_v25 }
 0x588   : > { %18479 = vmatmul.mubr.f32.vlgmr.msra.gmra.mrb[18].mxu0 %v22553_v22 }
 0x589   : > { %20365 = vmatpush3.bf16.msra.mxu0 %v23241_v1  ;;  %18485 = vmatprep.mubr.f32.mxu0 %v22539_v3 }
 0x58a   : > { %20367 = vmatprep.subr.bf16.mxu0 %v23247_v30 }
 0x590   : > { %18486 = vmatmul.mubr.f32.vlgmr.msra.gmra.mrb[18].mxu0 %v22553_v22 }
 0x591   : > { %20369 = vmatpush3.bf16.msra.mxu0 %v23247_v30  ;;  %18492 = vmatprep.mubr.f32.mxu0 %v22549_v9 }
 0x592   : > { %20371 = vmatprep.subr.bf16.mxu0 %v20370_v18 }
 0x594   : > { %18493 = vmatmul.mubr.f32.vlgmr.msra.gmra.mrb[20].mxu0 %v22566_v23 }
 0x595   : > { %20373 = vmatpush3.bf16.msra.mxu0 %v20370_v18  ;;  %18499 = vmatprep.mubr.f32.mxu0 %v22539_v3 }
 0x596   : > { %20375 = vmatprep.subr.bf16.mxu0 %v23251_v44 }
 0x59c   : > { %18500 = vmatmul.mubr.f32.vlgmr.msra.gmra.mrb[20].mxu0 %v22553_v22 }
 0x59d   : > { %20377 = vmatpush3.bf16.msra.mxu0 %v23251_v44  ;;  %18506 = vmatprep.mubr.f32.mxu0 %v24666_v11  ;;  %v23346_v44 = vmul.f32 %v24682_v63, %v24682_v63 }
 0x59e   : > { %20379 = vmatprep.subr.bf16.mxu0 %v23247_v30 }
 0x59f   : > { %24683 = vst [vmem:[#allocation35_spill] sm:$0xff] %v23346_v44 }
 0x5a3   : > { %v18055_v1 = vpop.f32.mrb[10].mxu0 }
 0x5a4   : > { %v23338_v56 = vmul.f32 %v18055_v1, %v18055_v1  ;;  %v23341_v54 = vmul.f32 %v18055_v1, %v24678_v24  ;;  %v5217_v50 = vpop.f32.mrb[11].mxu0  ;;  %18507 = vmatmul.mubr.f32.vlgmr.msra.gmra.mrb[20].mxu0 %v24667_v8  ;;  %v23406_v1 = vld [vmem:[%s22058_s9] sm:$0xff] }
 0x5a5   : > { %v23348_v7 = vmul.f32 %v5217_v50, %v5217_v50  ;;  %v23351_v43 = vmul.f32 %v5217_v50, %v24682_v63  ;;  %20381 = vmatpush3.bf16.msra.mxu0 %v23247_v30  ;;  %18513 = vmatprep.mubr.f32.mxu0 %v24668_v48  ;;  %v9189_v24 = vmul.f32 %v23406_v1, %v23406_v1 }
 0x5a6   : > { %24680 = vst [vmem:[#allocation44_spill] sm:$0xff] %v23338_v56  ;;  %24681 = vst [vmem:[#allocation45_spill] sm:$0xff] %v23341_v54  ;;  %v23357_v0 = vadd.f32 %v23338_v56, %v23336_v25  ;;  %20383 = vmatprep.subr.bf16.mxu0 %v23255_v16  ;;  %v23464_v54 = vld [vmem:[%s22058_s9 + $0x20] sm:$0xff]  ;;  %v24701_v56 = vld [vmem:[#allocation39_spill] sm:$0xff] }
 0x5a7   : > { %24684 = vst [vmem:[#allocation46_spill] sm:$0xff] %v23348_v7  ;;  %24685 = vst [vmem:[#allocation47_spill] sm:$0xff] %v23351_v43  ;;  %v23362_v18 = vadd.f32 %v23348_v7, %v23346_v44  ;;  %v9193_v21 = vmul.f32 %v23464_v54, %v23464_v54  ;;  %v24699_v7 = vld [vmem:[#allocation38_spill] sm:$0xff]  ;;  %v23497_v2 = vmul.f32 %v24701_v56, %v24701_v56 }
 0x5a8   : > { %24686 = vst [vmem:[#allocation48_spill] sm:$0xff] %v23357_v0  ;;  %v23486_v0 = vld [vmem:[%s22058_s9 + $0x30] sm:$0xff] }
 0x5a9   : > { %24687 = vst [vmem:[#allocation49_spill] sm:$0xff] %v23362_v18  ;;  %v23483_v18 = vand.u32 4294901760, %v9193_v21  ;;  %24698 = vst [vmem:[#allocation56_spill] sm:$0xff] %v23486_v0 }
 0x5aa   : > { %24702 = vst [vmem:[#allocation39_spill] sm:$0xff] %v23497_v2 }
 0x5ac   : > { %18514 = vmatmul.mubr.f32.vlgmr.msra.gmra.mrb[20].mxu0 %v24669_v14 }
 0x5ad   : > { %20385 = vmatpush3.bf16.msra.mxu0 %v23255_v16  ;;  %18520 = vmatprep.mubr.f32.mxu0 %v22539_v3  ;;  %v24688_v16 = vld [vmem:[#allocation36_spill] sm:$0xff] }
 0x5ae   : > { %20387 = vmatprep.subr.bf16.mxu0 %v23247_v30  ;;  %v23386_v53 = vmul.f32 %v24688_v16, %v24688_v16 }
 0x5b0   : > { %24689 = vst [vmem:[#allocation36_spill] sm:$0xff] %v23386_v53 }
 0x5b4   : > { %18521 = vmatmul.mubr.f32.vlgmr.msra.gmra.mrb[20].mxu0 %v22553_v22 }
 0x5b5   : > { %20389 = vmatpush3.bf16.msra.mxu0 %v23247_v30  ;;  %18527 = vmatprep.mubr.f32.mxu0 %v22539_v3 }
 0x5b6   : > { %20391 = vmatprep.subr.bf16.mxu0 %v23253_v17 }
 0x5bc   : > { %18528 = vmatmul.mubr.f32.vlgmr.msra.gmra.mrb[20].mxu0 %v22553_v22 }
 0x5bd   : > { %20393 = vmatpush3.bf16.msra.mxu0 %v23253_v17  ;;  %18534 = vmatprep.mubr.f32.mxu0 %v22549_v9 }
 0x5be   : > { %20395 = vmatprep.subr.bf16.mxu0 %v23264_v31 }
 0x5c0   : > { %18535 = vmatmul.mubr.f32.vlgmr.msra.gmra.mrb[22].mxu0 %v22566_v23 }
 0x5c1   : > { %20397 = vmatpush3.bf16.msra.mxu0 %v23264_v31  ;;  %18541 = vmatprep.mubr.f32.mxu0 %v22539_v3  ;;  %v23390_v31 = vmul.f32 %v24690_v4, %v24690_v4 }
 0x5c2   : > { %20399 = vmatprep.subr.bf16.mxu0 %v23258_v51 }
 0x5c3   : > { %24691 = vst [vmem:[#allocation37_spill] sm:$0xff] %v23390_v31 }
 0x5c8   : > { %18542 = vmatmul.mubr.f32.vlgmr.msra.gmra.mrb[22].mxu0 %v22553_v22 }
 0x5c9   : > { %20401 = vmatpush3.bf16.msra.mxu0 %v23258_v51  ;;  %18548 = vmatprep.mubr.f32.mxu0 %v24666_v11 }
 0x5ca   : > { %20403 = vmatprep.subr.bf16.mxu0 %v23253_v17 }
 0x5cf   : > { %v18097_v30 = vpop.f32.mrb[12].mxu0 }
 0x5d0   : > { %v23392_v55 = vmul.f32 %v18097_v30, %v18097_v30  ;;  %v23395_v52 = vmul.f32 %v18097_v30, %v24688_v16  ;;  %v5719_v57 = vpop.f32.mrb[13].mxu0  ;;  %18549 = vmatmul.mubr.f32.vlgmr.msra.gmra.mrb[22].mxu0 %v24667_v8  ;;  %v23419_v30 = vand.u32 4294901760, %v9189_v24 }
 0x5d1   : > { %v23398_v51 = vmul.f32 %v5719_v57, %v5719_v57  ;;  %v23401_v28 = vmul.f32 %v5719_v57, %v24690_v4  ;;  %20405 = vmatpush3.bf16.msra.mxu0 %v23253_v17  ;;  %18555 = vmatprep.mubr.f32.mxu0 %v24668_v48 }
 0x5d2   : > { %24692 = vst [vmem:[#allocation50_spill] sm:$0xff] %v23392_v55  ;;  %24693 = vst [vmem:[#allocation51_spill] sm:$0xff] %v23395_v52  ;;  %v23412_v50 = vadd.f32 %v23392_v55, %v23386_v53  ;;  %20407 = vmatprep.subr.bf16.mxu0 %v23262_v58  ;;  %v23425_v16 = vsub.f32 %v9189_v24, %v23419_v30  ;;  %v23458_v52 = vld [vmem:[%s22058_s9 + $0x18] sm:$0xff] }
 0x5d3   : > { %24694 = vst [vmem:[#allocation52_spill] sm:$0xff] %v23398_v51  ;;  %24695 = vst [vmem:[#allocation53_spill] sm:$0xff] %v23401_v28  ;;  %v23417_v63 = vadd.f32 %v23398_v51, %v23390_v31  ;;  %v9192_v43 = vmul.f32 %v23458_v52, %v23458_v52  ;;  %v23478_v51 = vld [vmem:[%s22058_s9 + $0x28] sm:$0xff] }
 0x5d4   : > { %24696 = vst [vmem:[#allocation54_spill] sm:$0xff] %v23412_v50  ;;  %v24524_v4 = vand.u32 4294901760, %v23425_v16  ;;  %v9194_v55 = vmul.f32 %v23478_v51, %v23478_v51 }
 0x5d5   : > { %24697 = vst [vmem:[#allocation55_spill] sm:$0xff] %v23417_v63  ;;  %v23475_v50 = vand.u32 4294901760, %v9192_v43 }
 0x5d6   : > { %v23509_v11 = vand.u32 4294901760, %v9194_v55 }
 0x5d7   : > { %v23502_v9 = vsub.f32 %v9192_v43, %v23475_v50  ;;  %v23523_v43 = vsub.f32 %v9193_v21, %v23483_v18 }
 0x5d8   : > { %18556 = vmatmul.mubr.f32.vlgmr.msra.gmra.mrb[22].mxu0 %v24669_v14  ;;  %v23541_v21 = vsub.f32 %v9194_v55, %v23509_v11 }
 0x5d9   : > { %20409 = vmatpush3.bf16.msra.mxu0 %v23262_v58  ;;  %18562 = vmatprep.mubr.f32.mxu0 %v22539_v3  ;;  %v9281_v58 = vsub.f32 %v23425_v16, %v24524_v4  ;;  %v23447_v4 = vld [vmem:[%s22058_s9 + $0x10] sm:$0xff] }
 0x5da   : > { %20411 = vmatprep.subr.bf16.mxu0 %v23253_v17 }
 0x5db   : > { %v9282_v57 = vand.u32 4294901760, %v9281_v58  ;;  %v9191_v58 = vmul.f32 %v23447_v4, %v23447_v4 }
 0x5dd   : > { %v23455_v28 = vand.u32 4294901760, %v9191_v58 }
 0x5df   : > { %v23473_v63 = vsub.f32 %v9191_v58, %v23455_v28  ;;  %v23492_v58 = vmul.f32 %v24699_v7, %v24699_v7 }
 0x5e0   : > { %18563 = vmatmul.mubr.f32.vlgmr.msra.gmra.mrb[22].mxu0 %v22553_v22 }
 0x5e1   : > { %20413 = vmatpush3.bf16.msra.mxu0 %v23253_v17  ;;  %18569 = vmatprep.mubr.f32.mxu0 %v22539_v3  ;;  %v23442_v17 = vld [vmem:[%s22058_s9 + $0x8] sm:$0xff]  ;;  %24700 = vst [vmem:[#allocation38_spill] sm:$0xff] %v23492_v58 }
 0x5e2   : > { %20415 = vmatprep.subr.bf16.mxu0 %v22072_v10  ;;  %v9190_v24 = vmul.f32 %v23442_v17, %v23442_v17 }
 0x5e8   : > { %18570 = vmatmul.mubr.f32.vlgmr.msra.gmra.mrb[22].mxu0 %v22553_v22  ;;  %v23512_v22 = vld [vmem:[%s22058_s9 + $0x38] sm:$0xff] }
 0x5e9   : > { %20417 = vmatpush3.bf16.msra.mxu0 %v22072_v10  ;;  %18604 = vmatprep.mubr.f32.mxu0 %v9282_v57  ;;  %v23453_v57 = vand.u32 4294901760, %v9190_v24  ;;  %24705 = vst [vmem:[#allocation59_spill] sm:$0xff] %v23512_v22  ;;  %v9196_v3 = vmul.f32 %v23512_v22, %v23512_v22 }
 0x5ea   : > { %20419 = vmatprep.subr.bf16.mxu0 %v22074_v13 }
 0x5eb   : > { %v23470_v29 = vsub.f32 %v9190_v24, %v23453_v57  ;;  %v9195_v24 = vmul.f32 %v23486_v0, %v23486_v0 }
 0x5ed   : > { %20421 = vmatpush3.bf16.msra.mxu0 %v22074_v13 }
 0x5ee   : > { %20423 = vmatprep.subr.bf16.mxu0 %v24618_v5 }
 0x5f0   : > { %v24734_v53 = vld [vmem:[#allocation59_spill] sm:$0xff] }
 0x5f1   : > { %20425 = vmatpush3.bf16.msra.mxu0 %v24618_v5 }
 0x5f2   : > { %20427 = vmatprep.subr.bf16.mxu0 %v24620_v15 }
 0x5f5   : > { %20429 = vmatpush3.bf16.msra.mxu0 %v24620_v15 }
 0x5f6   : > { %20431 = vmatprep.subr.bf16.mxu0 %v24622_v61 }
 0x5f9   : > { %20433 = vmatpush3.bf16.msra.mxu0 %v24622_v61 }
 0x5fa   : > { %20435 = vmatprep.subr.bf16.mxu0 %v24623_v6 }
 0x5fb   : > { %v18139_v20 = vpop.f32.mrb[14].mxu0 }
 0x5fc   : > { %v23504_v14 = vmul.f32 %v18139_v20, %v18139_v20  ;;  %v23507_v48 = vmul.f32 %v18139_v20, %v24699_v7  ;;  %v6221_v8 = vpop.f32.mrb[15].mxu0  ;;  %v23525_v20 = vand.u32 4294901760, %v9195_v24 }
 0x5fd   : > { %v23516_v23 = vmul.f32 %v6221_v8, %v6221_v8  ;;  %v23519_v62 = vmul.f32 %v6221_v8, %v24701_v56  ;;  %20437 = vmatpush3.bf16.msra.mxu0 %v24623_v6  ;;  %v24710_v8 = vand.u32 4294901760, %v23470_v29 }
 0x5fe   : > { %24703 = vst [vmem:[#allocation57_spill] sm:$0xff] %v23504_v14  ;;  %24704 = vst [vmem:[#allocation58_spill] sm:$0xff] %v23507_v48  ;;  %v23529_v7 = vadd.f32 %v23504_v14, %v23492_v58  ;;  %20439 = vmatprep.subr.bf16.mxu0 %v24624_v37  ;;  %v23543_v48 = vand.u32 4294901760, %v9196_v3 }
 0x5ff   : > { %24706 = vst [vmem:[#allocation60_spill] sm:$0xff] %v23516_v23  ;;  %24707 = vst [vmem:[#allocation61_spill] sm:$0xff] %v23519_v62  ;;  %v23534_v41 = vadd.f32 %v23516_v23, %v23497_v2  ;;  %v9291_v56 = vsub.f32 %v23470_v29, %v24710_v8  ;;  %v24558_v62 = vand.u32 4294901760, %v23502_v9  ;;  %v24559_v23 = vand.u32 4294901760, %v23523_v43 }
 0x600   : > { %24708 = vst [vmem:[#allocation62_spill] sm:$0xff] %v23529_v7  ;;  %v24711_v7 = vand.u32 4294901760, %v23473_v63  ;;  %v24561_v2 = vand.u32 4294901760, %v23541_v21  ;;  %v23559_v22 = vsub.f32 %v9196_v3, %v23543_v48 }
 0x601   : > { %24709 = vst [vmem:[#allocation63_spill] sm:$0xff] %v23534_v41  ;;  %20441 = vmatpush3.bf16.msra.mxu0 %v24624_v37  ;;  %v23551_v41 = vsub.f32 %v9195_v24, %v23525_v20  ;;  %v9292_v8 = vand.u32 4294901760, %v9291_v56  ;;  %v9311_v55 = vsub.f32 %v23502_v9, %v24558_v62  ;;  %v9321_v24 = vsub.f32 %v23523_v43, %v24559_v23 }
 0x602   : > { %v9301_v14 = vsub.f32 %v23473_v63, %v24711_v7  ;;  %20443 = vmatprep.subr.bf16.mxu0 %v24625_v32  ;;  %v9331_v62 = vsub.f32 %v23541_v21, %v24561_v2  ;;  %v9350_v3 = vand.u32 4294901760, %v23559_v22 }
 0x603   : > { %v9340_v58 = vand.u32 4294901760, %v23551_v41  ;;  %v9312_v56 = vand.u32 4294901760, %v9311_v55 }
 0x604   : > { %v9302_v7 = vand.u32 4294901760, %v9301_v14  ;;  %v9322_v14 = vand.u32 4294901760, %v9321_v24  ;;  %v9332_v0 = vand.u32 4294901760, %v9331_v62 }
 0x605   : > { %20445 = vmatpush3.bf16.msra.mxu0 %v24625_v32  ;;  %v9341_v23 = vsub.f32 %v23551_v41, %v9340_v58 }
 0x606   : > { %20447 = vmatprep.subr.bf16.mxu0 %v24643_v47 }
 0x607   : > { %v9342_v55 = vand.u32 4294901760, %v9341_v23 }
 0x608   : > { %18605 = vmatmul.mubr.f32.vlgmr.msra.gmra.mrb[24].mxu0 %v9292_v8  ;;  %v9351_v8 = vsub.f32 %v23559_v22, %v9350_v3 }
 0x609   : > { %20449 = vmatpush3.bf16.msra.mxu0 %v24643_v47  ;;  %18607 = vmatprep.mubr.f32.mxu0 %v9302_v7 }
 0x60a   : > { %20451 = vmatprep.subr.bf16.mxu0 %v22248_v59  ;;  %v9352_v24 = vand.u32 4294901760, %v9351_v8  ;;  %v24718_v8 = vld [vmem:[#allocation25_spill] sm:$0xff] }
 0x60c   : > { %18608 = vmatmul.mubr.f32.gmra.mrb[26].mxu0 %v9312_v56 }
 0x60d   : > { %20453 = vmatpush3.bf16.msra.mxu0 %v22248_v59  ;;  %18610 = vmatprep.mubr.f32.mxu0 %v9322_v14  ;;  %v24721_v14 = vld [vmem:[#allocation26_spill] sm:$0xff] }
 0x60e   : > { %20455 = vmatprep.subr.bf16.mxu0 %v22281_v19 }
 0x60f   : > { %v18410_v7 = vpop.f32.mrb[24].mxu1 }
 0x610   : > { %18611 = vmatmul.mubr.f32.gmra.mrb[28].mxu0 %v9332_v0  ;;  %v7254_v2 = vpop.f32.mrb[25].mxu1 }
 0x611   : > { %20457 = vmatpush3.bf16.msra.mxu0 %v22281_v19  ;;  %18613 = vmatprep.mubr.f32.mxu0 %v9342_v55 }
 0x612   : > { %20459 = vmatprep.subr.bf16.mxu0 %v22370_v12 }
 0x614   : > { %18614 = vmatmul.mubr.f32.gmra.mrb[30].mxu0 %v9352_v24  ;;  %v24720_v24 = vand.u32 4294901760, %v23523_v43 }
 0x615   : > { %20461 = vmatpush3.bf16.msra.mxu0 %v22370_v12  ;;  %18648 = vmatprep.mubr.f32.mxu0 %v23419_v30 }
 0x616   : > { %20463 = vmatprep.subr.bf16.mxu0 %v22374_v49 }
 0x619   : > { %20465 = vmatpush3.bf16.msra.mxu0 %v22374_v49 }
 0x61a   : > { %20467 = vmatprep.subr.bf16.mxu0 %v22379_v38 }
 0x61d   : > { %20469 = vmatpush3.bf16.msra.mxu0 %v22379_v38 }
 0x61e   : > { %20471 = vmatprep.subr.bf16.mxu0 %v22387_v42 }
 0x621   : > { %20473 = vmatpush3.bf16.msra.mxu0 %v22387_v42 }
 0x622   : > { %20475 = vmatprep.subr.bf16.mxu0 %v22391_v33 }
 0x625   : > { %20477 = vmatpush3.bf16.msra.mxu0 %v22391_v33 }
 0x626   : > { %20479 = vmatprep.subr.bf16.mxu0 %v22397_v40 }
 0x628   : > { %18649 = vmatmul.mubr.f32.vlgmr.msra.gmra.mrb[24].mxu0 %v23453_v57 }
 0x629   : > { %20481 = vmatpush3.bf16.msra.mxu0 %v22397_v40  ;;  %18651 = vmatprep.mubr.f32.mxu0 %v23455_v28 }
 0x62a   : > { %20483 = vmatprep.subr.bf16.mxu0 %v22403_v39 }
 0x62c   : > { %18652 = vmatmul.mubr.f32.gmra.mrb[26].mxu0 %v23475_v50 }
 0x62d   : > { %20485 = vmatpush3.bf16.msra.mxu0 %v22403_v39  ;;  %18654 = vmatprep.mubr.f32.mxu0 %v23483_v18 }
 0x62e   : > { %20487 = vmatprep.subr.bf16.mxu0 %v22411_v26 }
 0x630   : > { %18655 = vmatmul.mubr.f32.gmra.mrb[28].mxu0 %v23509_v11 }
 0x631   : > { %20489 = vmatpush3.bf16.msra.mxu0 %v22411_v26  ;;  %18657 = vmatprep.mubr.f32.mxu0 %v23525_v20 }
 0x632   : > { %20491 = vmatprep.subr.bf16.mxu0 %v22419_v27 }
 0x634   : > { %18658 = vmatmul.mubr.f32.gmra.mrb[30].mxu0 %v23543_v48 }
 0x635   : > { %20493 = vmatpush3.bf16.msra.mxu0 %v22419_v27  ;;  %18692 = vmatprep.mubr.f32.mxu0 %v23425_v16 }
 0x636   : > { %20495 = vmatprep.subr.bf16.mxu0 %v22427_v35 }
 0x637   : > { %v18445_v23 = vpop.f32.mrb[16].mxu0 }
 0x638   : > { %v23610_v62 = vadd.f32 %v18445_v23, %v18410_v7  ;;  %v7673_v0 = vpop.f32.mrb[17].mxu0  ;;  %v24715_v23 = vld [vmem:[#allocation24_spill] sm:$0xff] }
 0x639   : > { %v23612_v56 = vadd.f32 %v7673_v0, %v7254_v2  ;;  %20497 = vmatpush3.bf16.msra.mxu0 %v22427_v35  ;;  %v24712_v2 = vand.u32 4294901760, %v23425_v16  ;;  %v24716_v0 = vand.u32 4294901760, %v23470_v29  ;;  %v24719_v16 = vand.u32 4294901760, %v23502_v9 }
 0x63a   : > { %20499 = vmatprep.subr.bf16.mxu0 %v22435_v36 }
 0x63d   : > { %20501 = vmatpush3.bf16.msra.mxu0 %v22435_v36 }
 0x63e   : > { %20503 = vmatprep.subr.bf16.mxu0 %v22441_v45 }
 0x641   : > { %20505 = vmatpush3.bf16.msra.mxu0 %v22441_v45 }
 0x642   : > { %20507 = vmatprep.subr.bf16.mxu0 %v22447_v46 }
 0x645   : > { %20509 = vmatpush3.bf16.msra.mxu0 %v22447_v46 }
 0x646   : > { %20511 = vmatprep.subr.bf16.mxu0 %v22072_v10 }
 0x648   : > { %18693 = vmatmul.mubr.f32.vlgmr.msra.gmra.mrb[24].mxu0 %v23470_v29  ;;  %v24722_v29 = vand.u32 4294901760, %v23541_v21 }
 0x649   : > { %20513 = vmatpush3.bf16.msra.mxu0 %v22072_v10  ;;  %18695 = vmatprep.mubr.f32.mxu0 %v23473_v63 }
 0x64a   : > { %20515 = vmatprep.subr.bf16.mxu0 %v22074_v13 }
 0x64c   : > { %18696 = vmatmul.mubr.f32.gmra.mrb[26].mxu0 %v23502_v9  ;;  %v24724_v9 = vld [vmem:[#allocation28_spill] sm:$0xff] }
 0x64d   : > { %20517 = vmatpush3.bf16.msra.mxu0 %v22074_v13  ;;  %18698 = vmatprep.mubr.f32.mxu0 %v23523_v43  ;;  %v24725_v43 = vld [vmem:[#allocation29_spill] sm:$0xff] }
 0x64e   : > { %20519 = vmatprep.subr.bf16.mxu0 %v24618_v5 }
 0x650   : > { %18699 = vmatmul.mubr.f32.gmra.mrb[28].mxu0 %v23541_v21  ;;  %v24726_v21 = vld [vmem:[#allocation30_spill] sm:$0xff] }
 0x651   : > { %20521 = vmatpush3.bf16.msra.mxu0 %v24618_v5  ;;  %18701 = vmatprep.mubr.f32.mxu0 %v23551_v41  ;;  %v24727_v41 = vld [vmem:[#allocation31_spill] sm:$0xff] }
 0x652   : > { %20523 = vmatprep.subr.bf16.mxu0 %v24620_v15 }
 0x654   : > { %18702 = vmatmul.mubr.f32.gmra.mrb[30].mxu0 %v23559_v22 }
 0x655   : > { %20525 = vmatpush3.bf16.msra.mxu0 %v24620_v15  ;;  %18736 = vmatprep.mubr.f32.mxu0 %v24712_v2  ;;  %v24717_v2 = vand.u32 4294901760, %v23473_v63  ;;  %v24723_v63 = vld [vmem:[#allocation27_spill] sm:$0xff] }
 0x656   : > { %20527 = vmatprep.subr.bf16.mxu0 %v24622_v61 }
 0x659   : > { %20529 = vmatpush3.bf16.msra.mxu0 %v24622_v61 }
 0x65a   : > { %20531 = vmatprep.subr.bf16.mxu0 %v24623_v6 }
 0x65d   : > { %20533 = vmatpush3.bf16.msra.mxu0 %v24623_v6 }
 0x65e   : > { %20535 = vmatprep.subr.bf16.mxu0 %v24624_v37 }
 0x661   : > { %20537 = vmatpush3.bf16.msra.mxu0 %v24624_v37 }
 0x662   : > { %20539 = vmatprep.subr.bf16.mxu0 %v24625_v32 }
 0x663   : > { %v23649_v55 = vpop.f32.mrb[18].mxu0 }
 0x664   : > { %24713 = vst [vmem:[#allocation64_spill] sm:$0xff] %v23649_v55  ;;  %v23653_v7 = vpop.f32.mrb[19].mxu0 }
 0x665   : > { %24714 = vst [vmem:[#allocation65_spill] sm:$0xff] %v23653_v7  ;;  %20541 = vmatpush3.bf16.msra.mxu0 %v24625_v32 }
 0x666   : > { %20543 = vmatprep.subr.bf16.mxu0 %v24715_v23 }
 0x668   : > { %18737 = vmatmul.mubr.f32.vlgmr.msra.gmra.mrb[24].mxu0 %v24716_v0 }
 0x669   : > { %20545 = vmatpush3.bf16.msra.mxu0 %v24715_v23  ;;  %18739 = vmatprep.mubr.f32.mxu0 %v24717_v2 }
 0x66a   : > { %20547 = vmatprep.subr.bf16.mxu0 %v24718_v8 }
 0x66c   : > { %18740 = vmatmul.mubr.f32.gmra.mrb[26].mxu0 %v24719_v16  ;;  %v21587_v16 = vld [vmem:[%s22051_s11 + $0x18] sm:$0xff] }
 0x66d   : > { %20549 = vmatpush3.bf16.msra.mxu0 %v24718_v8  ;;  %18742 = vmatprep.mubr.f32.mxu0 %v24720_v24  ;;  %v21584_v24 = vld [vmem:[%s22051_s11] sm:$0xff] }
 0x66e   : > { %20551 = vmatprep.subr.bf16.mxu0 %v24721_v14  ;;  %v12147_v0 = vmul.f32 %v21584_v24, %v23406_v1  ;;  %v21586_v24 = vld [vmem:[%s22051_s11 + $0x10] sm:$0xff] }
 0x670   : > { %18743 = vmatmul.mubr.f32.gmra.mrb[28].mxu0 %v24722_v29  ;;  %v23721_v2 = vand.u32 4294901760, %v12147_v0  ;;  %v21585_v29 = vld [vmem:[%s22051_s11 + $0x8] sm:$0xff] }
 0x671   : > { %20553 = vmatpush3.bf16.msra.mxu0 %v24721_v14  ;;  %18745 = vmatprep.mubr.f32.mxu0 %v9340_v58 }
 0x672   : > { %20555 = vmatprep.subr.bf16.mxu0 %v24723_v63 }
 0x674   : > { %18746 = vmatmul.mubr.f32.gmra.mrb[30].mxu0 %v9350_v3 }
 0x675   : > { %20557 = vmatpush3.bf16.msra.mxu0 %v24723_v63  ;;  %18780 = vmatprep.mubr.f32.mxu0 %v23419_v30 }
 0x676   : > { %20559 = vmatprep.subr.bf16.mxu0 %v24724_v9 }
 0x679   : > { %20561 = vmatpush3.bf16.msra.mxu0 %v24724_v9 }
 0x67a   : > { %20563 = vmatprep.subr.bf16.mxu0 %v24725_v43 }
 0x67d   : > { %20565 = vmatpush3.bf16.msra.mxu0 %v24725_v43 }
 0x67e   : > { %20567 = vmatprep.subr.bf16.mxu0 %v24726_v21 }
 0x681   : > { %20569 = vmatpush3.bf16.msra.mxu0 %v24726_v21 }
 0x682   : > { %20571 = vmatprep.subr.bf16.mxu0 %v24727_v41 }
 0x685   : > { %20573 = vmatpush3.bf16.msra.mxu0 %v24727_v41 }
 0x686   : > { %20575 = vmatprep.subr.bf16.mxu0 %v22072_v10 }
 0x688   : > { %18781 = vmatmul.mubr.f32.vlgmr.msra.gmra.mrb[24].mxu0 %v23453_v57 }
 0x689   : > { %20577 = vmatpush3.bf16.msra.mxu0 %v22072_v10  ;;  %18783 = vmatprep.mubr.f32.mxu0 %v23455_v28 }
 0x68a   : > { %20579 = vmatprep.subr.bf16.mxu0 %v22074_v13 }
 0x68c   : > { %18784 = vmatmul.mubr.f32.gmra.mrb[26].mxu0 %v23475_v50 }
 0x68d   : > { %20581 = vmatpush3.bf16.msra.mxu0 %v22074_v13  ;;  %18786 = vmatprep.mubr.f32.mxu0 %v23483_v18 }
 0x68e   : > { %20583 = vmatprep.subr.bf16.mxu0 %v24618_v5 }
 0x68f   : > { %v23698_v22 = vpop.f32.mrb[20].mxu0 }
 0x690   : > { %24728 = vst [vmem:[#allocation24_spill] sm:$0xff] %v23698_v22  ;;  %v23702_v3 = vpop.f32.mrb[21].mxu0  ;;  %18787 = vmatmul.mubr.f32.gmra.mrb[28].mxu0 %v23509_v11 }
 0x691   : > { %24729 = vst [vmem:[#allocation25_spill] sm:$0xff] %v23702_v3  ;;  %20585 = vmatpush3.bf16.msra.mxu0 %v24618_v5  ;;  %18789 = vmatprep.mubr.f32.mxu0 %v23525_v20  ;;  %v21591_v3 = vld [vmem:[%s22051_s11 + $0x38] sm:$0xff] }
 0x692   : > { %20587 = vmatprep.subr.bf16.mxu0 %v24620_v15  ;;  %v12154_v22 = vmul.f32 %v21591_v3, %v24734_v53 }
 0x694   : > { %18790 = vmatmul.mubr.f32.gmra.mrb[30].mxu0 %v23543_v48 }
 0x695   : > { %20589 = vmatpush3.bf16.msra.mxu0 %v24620_v15  ;;  %18824 = vmatprep.mubr.f32.mxu0 %v23419_v30  ;;  %v23726_v30 = vsub.f32 %v12147_v0, %v23721_v2 }
 0x696   : > { %20591 = vmatprep.subr.bf16.mxu0 %v24622_v61 }
 0x697   : > { %v24562_v1 = vand.u32 4294901760, %v23726_v30 }
 0x699   : > { %20593 = vmatpush3.bf16.msra.mxu0 %v24622_v61 }
 0x69a   : > { %20595 = vmatprep.subr.bf16.mxu0 %v24623_v6 }
 0x69d   : > { %20597 = vmatpush3.bf16.msra.mxu0 %v24623_v6 }
 0x69e   : > { %20599 = vmatprep.subr.bf16.mxu0 %v24624_v37 }
 0x6a1   : > { %20601 = vmatpush3.bf16.msra.mxu0 %v24624_v37 }
 0x6a2   : > { %20603 = vmatprep.subr.bf16.mxu0 %v24625_v32 }
 0x6a5   : > { %20605 = vmatpush3.bf16.msra.mxu0 %v24625_v32 }
 0x6a6   : > { %20703 = vmatprep.subr.bf16.mxu0 %v22072_v10 }
 0x6a8   : > { %18825 = vmatmul.mubr.f32.vlgmr.msra.gmra.mrb[24].mxu0 %v23453_v57  ;;  %v12239_v57 = vsub.f32 %v23726_v30, %v24562_v1 }
 0x6a9   : > { %20705 = vmatpush3.bf16.msra.mxu0 %v22072_v10  ;;  %18827 = vmatprep.mubr.f32.mxu0 %v23455_v28  ;;  %v12148_v28 = vmul.f32 %v21585_v29, %v23442_v17  ;;  %v12150_v17 = vmul.f32 %v21587_v16, %v23458_v52 }
 0x6aa   : > { %20707 = vmatprep.subr.bf16.mxu0 %v22074_v13 }
 0x6ab   : > { %v23749_v0 = vand.u32 4294901760, %v12148_v28  ;;  %v23763_v29 = vand.u32 4294901760, %v12150_v17 }
 0x6ac   : > { %18828 = vmatmul.mubr.f32.gmra.mrb[26].mxu0 %v23475_v50  ;;  %v12240_v50 = vand.u32 4294901760, %v12239_v57 }
 0x6ad   : > { %20709 = vmatpush3.bf16.msra.mxu0 %v22074_v13  ;;  %18830 = vmatprep.mubr.f32.mxu0 %v23483_v18  ;;  %v12149_v18 = vmul.f32 %v21586_v24, %v23447_v4  ;;  %v23761_v4 = vsub.f32 %v12148_v28, %v23749_v0 }
 0x6ae   : > { %20711 = vmatprep.subr.bf16.mxu0 %v24618_v5 }
 0x6b0   : > { %18831 = vmatmul.mubr.f32.gmra.mrb[28].mxu0 %v23509_v11  ;;  %v23755_v11 = vand.u32 4294901760, %v12149_v18 }
 0x6b1   : > { %20713 = vmatpush3.bf16.msra.mxu0 %v24618_v5  ;;  %18833 = vmatprep.mubr.f32.mxu0 %v23525_v20  ;;  %v21588_v20 = vld [vmem:[%s22051_s11 + $0x20] sm:$0xff] }
 0x6b2   : > { %20715 = vmatprep.subr.bf16.mxu0 %v24620_v15  ;;  %v12151_v57 = vmul.f32 %v21588_v20, %v23464_v54  ;;  %v23769_v52 = vsub.f32 %v12149_v18, %v23755_v11  ;;  %v24730_v54 = vld [vmem:[#allocation56_spill] sm:$0xff] }
 0x6b4   : > { %18834 = vmatmul.mubr.f32.gmra.mrb[30].mxu0 %v23543_v48  ;;  %v21589_v48 = vld [vmem:[%s22051_s11 + $0x28] sm:$0xff]  ;;  %v23771_v16 = vand.u32 4294901760, %v12151_v57  ;;  %v24571_v58 = vand.u32 4294901760, %v23769_v52 }
 0x6b5   : > { %20717 = vmatpush3.bf16.msra.mxu0 %v24620_v15  ;;  %19036 = vmatprep.mubr.f32.mxu0 %v12240_v50  ;;  %v12152_v24 = vmul.f32 %v21589_v48, %v23478_v51  ;;  %v21590_v50 = vld [vmem:[%s22051_s11 + $0x30] sm:$0xff]  ;;  %v23784_v48 = vsub.f32 %v12150_v17, %v23763_v29  ;;  %v24736_v17 = vand.u32 4294901760, %v23761_v4 }
 0x6b6   : > { %20719 = vmatprep.subr.bf16.mxu0 %v24622_v61  ;;  %v12153_v20 = vmul.f32 %v21590_v50, %v24730_v54  ;;  %v23795_v44 = vsub.f32 %v12151_v57, %v23771_v16  ;;  %v23807_v54 = vand.u32 4294901760, %v12154_v22  ;;  %v12259_v57 = vsub.f32 %v23769_v52, %v24571_v58 }
 0x6b7   : > { %v23786_v18 = vand.u32 4294901760, %v12152_v24  ;;  %v12249_v1 = vsub.f32 %v23761_v4, %v24736_v17  ;;  %v24573_v53 = vand.u32 4294901760, %v23784_v48 }
 0x6b8   : > { %v23797_v31 = vand.u32 4294901760, %v12153_v20  ;;  %v24574_v50 = vand.u32 4294901760, %v23795_v44  ;;  %v23823_v7 = vsub.f32 %v12154_v22, %v23807_v54  ;;  %v12260_v58 = vand.u32 4294901760, %v12259_v57 }
 0x6b9   : > { %20721 = vmatpush3.bf16.msra.mxu0 %v24622_v61  ;;  %v23805_v3 = vsub.f32 %v12152_v24, %v23786_v18  ;;  %v12250_v17 = vand.u32 4294901760, %v12249_v1  ;;  %v12269_v24 = vsub.f32 %v23784_v48, %v24573_v53 }
 0x6ba   : > { %20723 = vmatprep.subr.bf16.mxu0 %v24623_v6  ;;  %v12308_v22 = vand.u32 4294901760, %v23823_v7 }
 0x6bb   : > { %v23776_v28 = vpop.f32.mrb[22].mxu0  ;;  %v12270_v1 = vand.u32 4294901760, %v12269_v24 }
 0x6bc   : > { %24731 = vst [vmem:[#allocation26_spill] sm:$0xff] %v23776_v28  ;;  %v23781_v51 = vpop.f32.mrb[23].mxu0  ;;  %v12288_v28 = vand.u32 4294901760, %v23805_v3 }
 0x6bd   : > { %24733 = vst [vmem:[#allocation27_spill] sm:$0xff] %v23781_v51  ;;  %20725 = vmatpush3.bf16.msra.mxu0 %v24623_v6  ;;  %v23815_v51 = vsub.f32 %v12153_v20, %v23797_v31  ;;  %v12279_v20 = vsub.f32 %v23795_v44, %v24574_v50 }
 0x6be   : > { %20727 = vmatprep.subr.bf16.mxu0 %v24624_v37  ;;  %v12289_v53 = vsub.f32 %v23805_v3, %v12288_v28 }
 0x6bf   : > { %v12298_v25 = vand.u32 4294901760, %v23815_v51  ;;  %v12280_v57 = vand.u32 4294901760, %v12279_v20 }
 0x6c0   : > { %v12290_v55 = vand.u32 4294901760, %v12289_v53 }
 0x6c1   : > { %20729 = vmatpush3.bf16.msra.mxu0 %v24624_v37  ;;  %v12299_v50 = vsub.f32 %v23815_v51, %v12298_v25 }
 0x6c2   : > { %20731 = vmatprep.subr.bf16.mxu0 %v24625_v32 }
 0x6c3   : > { %v12300_v24 = vand.u32 4294901760, %v12299_v50 }
 0x6c5   : > { %20733 = vmatpush3.bf16.msra.mxu0 %v24625_v32 }
 0x6c6   : > { %20735 = vmatprep.subr.bf16.mxu0 %v24643_v47 }
 0x6c8   : > { %19037 = vmatmul.mubr.f32.vlgmr.msra.gmra.mrb[32].mxu0 %v12250_v17  ;;  %v12309_v17 = vsub.f32 %v23823_v7, %v12308_v22 }
 0x6c9   : > { %20737 = vmatpush3.bf16.msra.mxu0 %v24643_v47  ;;  %19039 = vmatprep.mubr.f32.mxu0 %v12260_v58 }
 0x6ca   : > { %20739 = vmatprep.subr.bf16.mxu0 %v22248_v59  ;;  %v12310_v47 = vand.u32 4294901760, %v12309_v17 }
 0x6cc   : > { %19040 = vmatmul.mubr.f32.gmra.mrb[34].mxu0 %v12270_v1 }
 0x6cd   : > { %20741 = vmatpush3.bf16.msra.mxu0 %v22248_v59  ;;  %19042 = vmatprep.mubr.f32.mxu0 %v12280_v57  ;;  %v24737_v59 = vand.u32 4294901760, %v23726_v30 }
 0x6ce   : > { %20743 = vmatprep.subr.bf16.mxu0 %v22281_v19 }
 0x6d0   : > { %19043 = vmatmul.mubr.f32.gmra.mrb[36].mxu0 %v12290_v55 }
 0x6d1   : > { %20745 = vmatpush3.bf16.msra.mxu0 %v22281_v19  ;;  %19045 = vmatprep.mubr.f32.mxu0 %v12300_v24  ;;  %v24738_v19 = vand.u32 4294901760, %v23761_v4 }
 0x6d2   : > { %20747 = vmatprep.subr.bf16.mxu0 %v22370_v12 }
 0x6d4   : > { %19046 = vmatmul.mubr.f32.gmra.mrb[38].mxu0 %v12310_v47 }
 0x6d5   : > { %20749 = vmatpush3.bf16.msra.mxu0 %v22370_v12  ;;  %19080 = vmatprep.mubr.f32.mxu0 %v23721_v2  ;;  %v24739_v12 = vand.u32 4294901760, %v23769_v52 }
 0x6d6   : > { %20751 = vmatprep.subr.bf16.mxu0 %v22374_v49 }
 0x6d9   : > { %20753 = vmatpush3.bf16.msra.mxu0 %v22374_v49  ;;  %v24740_v49 = vand.u32 4294901760, %v23784_v48 }
 0x6da   : > { %20755 = vmatprep.subr.bf16.mxu0 %v22379_v38 }
 0x6dd   : > { %20757 = vmatpush3.bf16.msra.mxu0 %v22379_v38  ;;  %v24741_v38 = vand.u32 4294901760, %v23795_v44 }
 0x6de   : > { %20759 = vmatprep.subr.bf16.mxu0 %v22387_v42 }
 0x6e1   : > { %20761 = vmatpush3.bf16.msra.mxu0 %v22387_v42 }
 0x6e2   : > { %20763 = vmatprep.subr.bf16.mxu0 %v22391_v33 }
 0x6e5   : > { %20765 = vmatpush3.bf16.msra.mxu0 %v22391_v33 }
 0x6e6   : > { %20767 = vmatprep.subr.bf16.mxu0 %v22397_v40 }
 0x6e8   : > { %19081 = vmatmul.mubr.f32.vlgmr.msra.gmra.mrb[32].mxu0 %v23749_v0 }
 0x6e9   : > { %20769 = vmatpush3.bf16.msra.mxu0 %v22397_v40  ;;  %19083 = vmatprep.mubr.f32.mxu0 %v23755_v11 }
 0x6ea   : > { %20771 = vmatprep.subr.bf16.mxu0 %v22403_v39 }
 0x6ec   : > { %19084 = vmatmul.mubr.f32.gmra.mrb[34].mxu0 %v23763_v29 }
 0x6ed   : > { %20773 = vmatpush3.bf16.msra.mxu0 %v22403_v39  ;;  %19086 = vmatprep.mubr.f32.mxu0 %v23771_v16 }
 0x6ee   : > { %20775 = vmatprep.subr.bf16.mxu0 %v22411_v26 }
 0x6f0   : > { %19087 = vmatmul.mubr.f32.gmra.mrb[36].mxu0 %v23786_v18 }
 0x6f1   : > { %20777 = vmatpush3.bf16.msra.mxu0 %v22411_v26  ;;  %19089 = vmatprep.mubr.f32.mxu0 %v23797_v31 }
 0x6f2   : > { %20779 = vmatprep.subr.bf16.mxu0 %v22419_v27 }
 0x6f4   : > { %19090 = vmatmul.mubr.f32.gmra.mrb[38].mxu0 %v23807_v54 }
 0x6f5   : > { %20781 = vmatpush3.bf16.msra.mxu0 %v22419_v27  ;;  %19124 = vmatprep.mubr.f32.mxu0 %v23726_v30 }
 0x6f6   : > { %20783 = vmatprep.subr.bf16.mxu0 %v22427_v35 }
 0x6f9   : > { %20785 = vmatpush3.bf16.msra.mxu0 %v22427_v35 }
 0x6fa   : > { %20787 = vmatprep.subr.bf16.mxu0 %v22435_v36 }
 0x6fd   : > { %20789 = vmatpush3.bf16.msra.mxu0 %v22435_v36 }
 0x6fe   : > { %20791 = vmatprep.subr.bf16.mxu0 %v22441_v45 }
 0x701   : > { %20793 = vmatpush3.bf16.msra.mxu0 %v22441_v45 }
 0x702   : > { %20795 = vmatprep.subr.bf16.mxu0 %v22447_v46 }
 0x705   : > { %20797 = vmatpush3.bf16.msra.mxu0 %v22447_v46 }
 0x706   : > { %20799 = vmatprep.subr.bf16.mxu0 %v22072_v10 }
 0x708   : > { %19125 = vmatmul.mubr.f32.vlgmr.msra.gmra.mrb[32].mxu0 %v23761_v4 }
 0x709   : > { %20801 = vmatpush3.bf16.msra.mxu0 %v22072_v10  ;;  %19127 = vmatprep.mubr.f32.mxu0 %v23769_v52 }
 0x70a   : > { %20803 = vmatprep.subr.bf16.mxu0 %v22074_v13 }
 0x70c   : > { %19128 = vmatmul.mubr.f32.gmra.mrb[34].mxu0 %v23784_v48 }
 0x70d   : > { %20805 = vmatpush3.bf16.msra.mxu0 %v22074_v13  ;;  %19130 = vmatprep.mubr.f32.mxu0 %v23795_v44 }
 0x70e   : > { %20807 = vmatprep.subr.bf16.mxu0 %v24618_v5 }
 0x710   : > { %19131 = vmatmul.mubr.f32.gmra.mrb[36].mxu0 %v23805_v3 }
 0x711   : > { %20809 = vmatpush3.bf16.msra.mxu0 %v24618_v5  ;;  %19133 = vmatprep.mubr.f32.mxu0 %v23815_v51 }
 0x712   : > { %20811 = vmatprep.subr.bf16.mxu0 %v24620_v15 }
 0x714   : > { %19134 = vmatmul.mubr.f32.gmra.mrb[38].mxu0 %v23823_v7 }
 0x715   : > { %20813 = vmatpush3.bf16.msra.mxu0 %v24620_v15  ;;  %19168 = vmatprep.mubr.f32.mxu0 %v24737_v59 }
 0x716   : > { %20815 = vmatprep.subr.bf16.mxu0 %v24622_v61 }
 0x719   : > { %20817 = vmatpush3.bf16.msra.mxu0 %v24622_v61 }
 0x71a   : > { %20819 = vmatprep.subr.bf16.mxu0 %v24623_v6 }
 0x71d   : > { %20821 = vmatpush3.bf16.msra.mxu0 %v24623_v6 }
 0x71e   : > { %20823 = vmatprep.subr.bf16.mxu0 %v24624_v37 }
 0x721   : > { %20825 = vmatpush3.bf16.msra.mxu0 %v24624_v37 }
 0x722   : > { %20827 = vmatprep.subr.bf16.mxu0 %v24625_v32 }
 0x725   : > { %20829 = vmatpush3.bf16.msra.mxu0 %v24625_v32 }
 0x726   : > { %20831 = vmatprep.subr.bf16.mxu0 %v24715_v23 }
 0x728   : > { %19169 = vmatmul.mubr.f32.vlgmr.msra.gmra.mrb[32].mxu0 %v24738_v19 }
 0x729   : > { %20833 = vmatpush3.bf16.msra.mxu0 %v24715_v23  ;;  %19171 = vmatprep.mubr.f32.mxu0 %v24739_v12  ;;  %v24744_v12 = vld [vmem:[#allocation19_spill] sm:$0xff] }
 0x72a   : > { %20835 = vmatprep.subr.bf16.mxu0 %v24718_v8 }
 0x72c   : > { %19172 = vmatmul.mubr.f32.gmra.mrb[34].mxu0 %v24740_v49 }
 0x72d   : > { %20837 = vmatpush3.bf16.msra.mxu0 %v24718_v8  ;;  %19174 = vmatprep.mubr.f32.mxu0 %v24741_v38 }
 0x72e   : > { %20839 = vmatprep.subr.bf16.mxu0 %v24721_v14 }
 0x730   : > { %19175 = vmatmul.mubr.f32.gmra.mrb[36].mxu0 %v12288_v28 }
 0x731   : > { %20841 = vmatpush3.bf16.msra.mxu0 %v24721_v14  ;;  %19177 = vmatprep.mubr.f32.mxu0 %v12298_v25 }
 0x732   : > { %20843 = vmatprep.subr.bf16.mxu0 %v24723_v63 }
 0x734   : > { %19178 = vmatmul.mubr.f32.gmra.mrb[38].mxu0 %v12308_v22 }
 0x735   : > { %20845 = vmatpush3.bf16.msra.mxu0 %v24723_v63  ;;  %19212 = vmatprep.mubr.f32.mxu0 %v23721_v2 }
 0x736   : > { %20847 = vmatprep.subr.bf16.mxu0 %v24724_v9 }
 0x739   : > { %20849 = vmatpush3.bf16.msra.mxu0 %v24724_v9  ;;  %v24742_v9 = vld [vmem:[#allocation32_spill] sm:$0xff] }
 0x73a   : > { %20851 = vmatprep.subr.bf16.mxu0 %v24725_v43 }
 0x73d   : > { %20853 = vmatpush3.bf16.msra.mxu0 %v24725_v43 }
 0x73e   : > { %20855 = vmatprep.subr.bf16.mxu0 %v24726_v21 }
 0x741   : > { %20857 = vmatpush3.bf16.msra.mxu0 %v24726_v21 }
 0x742   : > { %20859 = vmatprep.subr.bf16.mxu0 %v24727_v41 }
 0x745   : > { %20861 = vmatpush3.bf16.msra.mxu0 %v24727_v41 }
 0x746   : > { %20863 = vmatprep.subr.bf16.mxu0 %v22072_v10 }
 0x748   : > { %19213 = vmatmul.mubr.f32.vlgmr.msra.gmra.mrb[32].mxu0 %v23749_v0 }
 0x749   : > { %20865 = vmatpush3.bf16.msra.mxu0 %v22072_v10  ;;  %19215 = vmatprep.mubr.f32.mxu0 %v23755_v11 }
 0x74a   : > { %20867 = vmatprep.subr.bf16.mxu0 %v22074_v13 }
 0x74c   : > { %19216 = vmatmul.mubr.f32.gmra.mrb[34].mxu0 %v23763_v29 }
 0x74d   : > { %20869 = vmatpush3.bf16.msra.mxu0 %v22074_v13  ;;  %19218 = vmatprep.mubr.f32.mxu0 %v23771_v16 }
 0x74e   : > { %20871 = vmatprep.subr.bf16.mxu0 %v24618_v5 }
 0x750   : > { %19219 = vmatmul.mubr.f32.gmra.mrb[36].mxu0 %v23786_v18 }
 0x751   : > { %20873 = vmatpush3.bf16.msra.mxu0 %v24618_v5  ;;  %19221 = vmatprep.mubr.f32.mxu0 %v23797_v31 }
 0x752   : > { %20875 = vmatprep.subr.bf16.mxu0 %v24620_v15 }
 0x754   : > { %19222 = vmatmul.mubr.f32.gmra.mrb[38].mxu0 %v23807_v54 }
 0x755   : > { %20877 = vmatpush3.bf16.msra.mxu0 %v24620_v15  ;;  %19256 = vmatprep.mubr.f32.mxu0 %v23721_v2  ;;  %v24743_v2 = vld [vmem:[#allocation16_spill] sm:$0xff] }
 0x756   : > { %20879 = vmatprep.subr.bf16.mxu0 %v24622_v61 }
 0x759   : > { %20881 = vmatpush3.bf16.msra.mxu0 %v24622_v61 }
 0x75a   : > { %20883 = vmatprep.subr.bf16.mxu0 %v24623_v6 }
 0x75d   : > { %20885 = vmatpush3.bf16.msra.mxu0 %v24623_v6 }
 0x75e   : > { %20887 = vmatprep.subr.bf16.mxu0 %v24624_v37 }
 0x761   : > { %20889 = vmatpush3.bf16.msra.mxu0 %v24624_v37 }
 0x762   : > { %20891 = vmatprep.subr.bf16.mxu0 %v24625_v32 }
 0x765   : > { %20893 = vmatpush3.bf16.msra.mxu0 %v24625_v32 }
 0x768   : > { %19257 = vmatmul.mubr.f32.vlgmr.msra.gmra.mrb[32].mxu0 %v23749_v0 }
 0x769   : > { %19259 = vmatprep.mubr.f32.mxu0 %v23755_v11 }
 0x76c   : > { %19260 = vmatmul.mubr.f32.gmra.mrb[34].mxu0 %v23763_v29 }
 0x76d   : > { %19262 = vmatprep.mubr.f32.mxu0 %v23771_v16 }
 0x770   : > { %19263 = vmatmul.mubr.f32.gmra.mrb[36].mxu0 %v23786_v18 }
 0x771   : > { %19265 = vmatprep.mubr.f32.mxu0 %v23797_v31 }
 0x774   : > { %19266 = vmatmul.mubr.f32.gmra.mrb[38].mxu0 %v23807_v54 }
 0x77b   : > { %v18826_v10 = vpop.f32.mrb[24].mxu0 }
 0x77c   : > { %v10143_v13 = vand.u32 4294901760, %v18826_v10  ;;  %v10093_v42 = vpop.f32.mrb[25].mxu0 }
 0x77d   : > { %v10140_v33 = vand.u32 4294901760, %v10093_v42 }
 0x77e   : > { %v10235_v40 = vsub.f32 %v18826_v10, %v10143_v13 }
 0x77f   : > { %v23968_v39 = vpack.c.bf16 %v10143_v13, %v10140_v33  ;;  %v10228_v26 = vsub.f32 %v10093_v42, %v10140_v33  ;;  %v18829_v27 = vpop.f32.mrb[26].mxu0  ;;  %v24745_v13 = vld [vmem:[#allocation23_spill] sm:$0xff] }
 0x780   : > { %v10236_v35 = vand.u32 4294901760, %v10235_v40  ;;  %v10645_v36 = vand.u32 4294901760, %v18829_v27  ;;  %v10105_v45 = vpop.f32.mrb[27].mxu0 }
 0x781   : > { %v10229_v46 = vand.u32 4294901760, %v10228_v26  ;;  %v10642_v5 = vand.u32 4294901760, %v10105_v45  ;;  %20607 = vmatprep.subr.bf16.mxu1 %v23968_v39  ;;  %v20614_v15 = vpack.c.bf16 %v10235_v40, %v10228_v26 }
 0x782   : > { %v10237_v61 = vsub.f32 %v10235_v40, %v10236_v35  ;;  %v10737_v6 = vsub.f32 %v18829_v27, %v10645_v36  ;;  %20609 = vmatpush3.bf16.msra.mxu1 %v23968_v39 }
 0x783   : > { %v10230_v37 = vsub.f32 %v10228_v26, %v10229_v46  ;;  %v23972_v32 = vpack.c.bf16 %v10645_v36, %v10642_v5  ;;  %v10730_v25 = vsub.f32 %v10105_v45, %v10642_v5  ;;  %v18832_v44 = vpop.f32.mrb[28].mxu0  ;;  %v20622_v31 = vpack.c.bf16 %v10236_v35, %v10229_v46  ;;  %v24746_v36 = vld [vmem:[#allocation20_spill] sm:$0xff]  ;;  %v24747_v45 = vld [vmem:[#allocation17_spill] sm:$0xff]  ;;  %v24749_v5 = vld [vmem:[#allocation18_spill] sm:$0xff] }
 0x784   : > { %v10738_v14 = vand.u32 4294901760, %v10737_v6  ;;  %v11147_v8 = vand.u32 4294901760, %v18832_v44  ;;  %v10117_v55 = vpop.f32.mrb[29].mxu0  ;;  %v10238_v7 = vand.u32 4294901760, %v10237_v61  ;;  %v24748_v46 = vld [vmem:[#allocation21_spill] sm:$0xff] }
 0x785   : > { %v10731_v23 = vand.u32 4294901760, %v10730_v25  ;;  %v11144_v63 = vand.u32 4294901760, %v10117_v55  ;;  %18841 = vmatmul.mubr.f32.vlgmr.msra.gmra.mrb[26].mxu1 %v24742_v9  ;;  %v10231_v43 = vand.u32 4294901760, %v10230_v37  ;;  %v23975_v21 = vpack.c.bf16 %v10737_v6, %v10730_v25 }
 0x786   : > { %v10739_v41 = vsub.f32 %v10737_v6, %v10738_v14  ;;  %v11239_v58 = vsub.f32 %v18832_v44, %v11147_v8  ;;  %18847 = vmatprep.mubr.f32.mxu1 %v24743_v2 }
 0x787   : > { %v10732_v30 = vsub.f32 %v10730_v25, %v10731_v23  ;;  %v23978_v0 = vpack.c.bf16 %v11147_v8, %v11144_v63  ;;  %v11232_v11 = vsub.f32 %v10117_v55, %v11144_v63  ;;  %v18835_v4 = vpop.f32.mrb[30].mxu0  ;;  %v20610_v29 = vpack.c.bf16 %v10238_v7, %v10231_v43 }
 0x788   : > { %v11240_v52 = vand.u32 4294901760, %v11239_v58  ;;  %v11649_v16 = vand.u32 4294901760, %v18835_v4  ;;  %v10129_v28 = vpop.f32.mrb[31].mxu0  ;;  %v10740_v51 = vand.u32 4294901760, %v10739_v41  ;;  %v20646_v48 = vpack.c.bf16 %v10738_v14, %v10731_v23 }
 0x789   : > { %v11233_v18 = vand.u32 4294901760, %v11232_v11  ;;  %v11646_v50 = vand.u32 4294901760, %v10129_v28  ;;  %20611 = vmatprep.subr.bf16.mxu1 %v20610_v29  ;;  %v10733_v54 = vand.u32 4294901760, %v10732_v30  ;;  %v23980_v53 = vpack.c.bf16 %v11239_v58, %v11232_v11 }
 0x78a   : > { %v11241_v3 = vsub.f32 %v11239_v58, %v11240_v52  ;;  %v11741_v20 = vsub.f32 %v18835_v4, %v11649_v16  ;;  %20613 = vmatpush3.bf16.msra.mxu1 %v20610_v29 }
 0x78b   : > { %v11234_v1 = vsub.f32 %v11232_v11, %v11233_v18  ;;  %v23982_v22 = vpack.c.bf16 %v11649_v16, %v11646_v50  ;;  %v11734_v57 = vsub.f32 %v10129_v28, %v11646_v50  ;;  %20615 = vmatprep.subr.bf16.mxu1 %v20614_v15  ;;  %v20634_v17 = vpack.c.bf16 %v10740_v51, %v10733_v54 }
 0x78c   : > { %v11742_v24 = vand.u32 4294901760, %v11741_v20  ;;  %v11242_v47 = vand.u32 4294901760, %v11241_v3  ;;  %v23984_v59 = vpack.c.bf16 %v11240_v52, %v11233_v18 }
 0x78d   : > { %v11735_v19 = vand.u32 4294901760, %v11734_v57  ;;  %18848 = vmatmul.mubr.f32.vlgmr.msra.gmra.mrb[26].mxu1 %v24744_v12  ;;  %v11235_v49 = vand.u32 4294901760, %v11234_v1  ;;  %v23987_v38 = vpack.c.bf16 %v11741_v20, %v11734_v57 }
 0x78e   : > { %v11743_v10 = vsub.f32 %v11741_v20, %v11742_v24  ;;  %20617 = vmatpush3.bf16.msra.mxu1 %v20614_v15  ;;  %18854 = vmatprep.mubr.f32.mxu1 %v24745_v13 }
 0x78f   : > { %v11736_v42 = vsub.f32 %v11734_v57, %v11735_v19  ;;  %20619 = vmatprep.subr.bf16.mxu1 %v23968_v39  ;;  %v20658_v33 = vpack.c.bf16 %v11242_v47, %v11235_v49  ;;  %v23991_v40 = vpack.c.bf16 %v11742_v24, %v11735_v19 }
 0x790   : > { %v11744_v26 = vand.u32 4294901760, %v11743_v10 }
 0x791   : > { %v11737_v27 = vand.u32 4294901760, %v11736_v42 }
 0x793   : > { %v23993_v35 = vpack.c.bf16 %v11744_v26, %v11737_v27 }
 0x795   : > { %18855 = vmatmul.mubr.f32.vlgmr.msra.gmra.mrb[26].mxu1 %v24746_v36 }
 0x796   : > { %20621 = vmatpush3.bf16.msra.mxu1 %v23968_v39  ;;  %18861 = vmatprep.mubr.f32.mxu1 %v24747_v45 }
 0x797   : > { %20623 = vmatprep.subr.bf16.mxu1 %v20622_v31 }
 0x79d   : > { %18862 = vmatmul.mubr.f32.vlgmr.msra.gmra.mrb[26].mxu1 %v24748_v46 }
 0x79e   : > { %20625 = vmatpush3.bf16.msra.mxu1 %v20622_v31  ;;  %18868 = vmatprep.mubr.f32.mxu1 %v24743_v2 }
 0x79f   : > { %20627 = vmatprep.subr.bf16.mxu1 %v23968_v39 }
 0x7a5   : > { %18869 = vmatmul.mubr.f32.vlgmr.msra.gmra.mrb[26].mxu1 %v24744_v12 }
 0x7a6   : > { %20629 = vmatpush3.bf16.msra.mxu1 %v23968_v39  ;;  %18875 = vmatprep.mubr.f32.mxu1 %v24743_v2 }
 0x7a7   : > { %20631 = vmatprep.subr.bf16.mxu1 %v23972_v32 }
 0x7ad   : > { %18876 = vmatmul.mubr.f32.vlgmr.msra.gmra.mrb[26].mxu1 %v24744_v12 }
 0x7ae   : > { %20633 = vmatpush3.bf16.msra.mxu1 %v23972_v32  ;;  %18882 = vmatprep.mubr.f32.mxu1 %v24749_v5 }
 0x7af   : > { %20635 = vmatprep.subr.bf16.mxu1 %v20634_v17 }
 0x7b1   : > { %18883 = vmatmul.mubr.f32.vlgmr.msra.gmra.mrb[28].mxu1 %v24742_v9 }
 0x7b2   : > { %20637 = vmatpush3.bf16.msra.mxu1 %v20634_v17  ;;  %18889 = vmatprep.mubr.f32.mxu1 %v24743_v2 }
 0x7b3   : > { %20639 = vmatprep.subr.bf16.mxu1 %v23975_v21 }
 0x7b9   : > { %18890 = vmatmul.mubr.f32.vlgmr.msra.gmra.mrb[28].mxu1 %v24744_v12 }
 0x7ba   : > { %20641 = vmatpush3.bf16.msra.mxu1 %v23975_v21  ;;  %18896 = vmatprep.mubr.f32.mxu1 %v24745_v13 }
 0x7bb   : > { %20643 = vmatprep.subr.bf16.mxu1 %v23972_v32 }
 0x7c1   : > { %18897 = vmatmul.mubr.f32.vlgmr.msra.gmra.mrb[28].mxu1 %v24746_v36 }
 0x7c2   : > { %20645 = vmatpush3.bf16.msra.mxu1 %v23972_v32  ;;  %18903 = vmatprep.mubr.f32.mxu1 %v24747_v45 }
 0x7c3   : > { %20647 = vmatprep.subr.bf16.mxu1 %v20646_v48 }
 0x7c9   : > { %18904 = vmatmul.mubr.f32.vlgmr.msra.gmra.mrb[28].mxu1 %v24748_v46 }
 0x7ca   : > { %20649 = vmatpush3.bf16.msra.mxu1 %v20646_v48  ;;  %18910 = vmatprep.mubr.f32.mxu1 %v24743_v2 }
 0x7cb   : > { %20651 = vmatprep.subr.bf16.mxu1 %v23972_v32 }
 0x7d1   : > { %18911 = vmatmul.mubr.f32.vlgmr.msra.gmra.mrb[28].mxu1 %v24744_v12 }
 0x7d2   : > { %20653 = vmatpush3.bf16.msra.mxu1 %v23972_v32  ;;  %18917 = vmatprep.mubr.f32.mxu1 %v24743_v2 }
 0x7d3   : > { %20655 = vmatprep.subr.bf16.mxu1 %v23978_v0 }
 0x7d9   : > { %18918 = vmatmul.mubr.f32.vlgmr.msra.gmra.mrb[28].mxu1 %v24744_v12 }
 0x7da   : > { %20657 = vmatpush3.bf16.msra.mxu1 %v23978_v0  ;;  %18924 = vmatprep.mubr.f32.mxu1 %v24749_v5 }
 0x7db   : > { %20659 = vmatprep.subr.bf16.mxu1 %v20658_v33 }
 0x7dd   : > { %18925 = vmatmul.mubr.f32.vlgmr.msra.gmra.mrb[30].mxu1 %v24742_v9 }
 0x7de   : > { %20661 = vmatpush3.bf16.msra.mxu1 %v20658_v33  ;;  %18931 = vmatprep.mubr.f32.mxu1 %v24743_v2 }
 0x7df   : > { %20663 = vmatprep.subr.bf16.mxu1 %v23980_v53 }
 0x7e5   : > { %18932 = vmatmul.mubr.f32.vlgmr.msra.gmra.mrb[30].mxu1 %v24744_v12 }
 0x7e6   : > { %20665 = vmatpush3.bf16.msra.mxu1 %v23980_v53  ;;  %18938 = vmatprep.mubr.f32.mxu1 %v24745_v13 }
 0x7e7   : > { %20667 = vmatprep.subr.bf16.mxu1 %v23978_v0 }
 0x7ed   : > { %18939 = vmatmul.mubr.f32.vlgmr.msra.gmra.mrb[30].mxu1 %v24746_v36 }
 0x7ee   : > { %20669 = vmatpush3.bf16.msra.mxu1 %v23978_v0  ;;  %18945 = vmatprep.mubr.f32.mxu1 %v24747_v45 }
 0x7ef   : > { %20671 = vmatprep.subr.bf16.mxu1 %v23984_v59 }
 0x7f5   : > { %18946 = vmatmul.mubr.f32.vlgmr.msra.gmra.mrb[30].mxu1 %v24748_v46 }
 0x7f6   : > { %20673 = vmatpush3.bf16.msra.mxu1 %v23984_v59  ;;  %18952 = vmatprep.mubr.f32.mxu1 %v24743_v2 }
 0x7f7   : > { %20675 = vmatprep.subr.bf16.mxu1 %v23978_v0 }
 0x7fd   : > { %18953 = vmatmul.mubr.f32.vlgmr.msra.gmra.mrb[30].mxu1 %v24744_v12 }
 0x7fe   : > { %20677 = vmatpush3.bf16.msra.mxu1 %v23978_v0  ;;  %18959 = vmatprep.mubr.f32.mxu1 %v24743_v2 }
 0x7ff   : > { %20679 = vmatprep.subr.bf16.mxu1 %v23982_v22 }
 0x805   : > { %18960 = vmatmul.mubr.f32.vlgmr.msra.gmra.mrb[30].mxu1 %v24744_v12 }
 0x806   : > { %20681 = vmatpush3.bf16.msra.mxu1 %v23982_v22  ;;  %18966 = vmatprep.mubr.f32.mxu1 %v24749_v5 }
 0x807   : > { %20683 = vmatprep.subr.bf16.mxu1 %v23993_v35 }
 0x809   : > { %18967 = vmatmul.mubr.f32.vlgmr.msra.gmra.mrb[32].mxu1 %v24742_v9 }
 0x80a   : > { %20685 = vmatpush3.bf16.msra.mxu1 %v23993_v35  ;;  %18973 = vmatprep.mubr.f32.mxu1 %v24743_v2 }
 0x80b   : > { %20687 = vmatprep.subr.bf16.mxu1 %v23987_v38 }
 0x811   : > { %18974 = vmatmul.mubr.f32.vlgmr.msra.gmra.mrb[32].mxu1 %v24744_v12 }
 0x812   : > { %20689 = vmatpush3.bf16.msra.mxu1 %v23987_v38  ;;  %18980 = vmatprep.mubr.f32.mxu1 %v24745_v13 }
 0x813   : > { %20691 = vmatprep.subr.bf16.mxu1 %v23982_v22 }
 0x819   : > { %18981 = vmatmul.mubr.f32.vlgmr.msra.gmra.mrb[32].mxu1 %v24746_v36 }
 0x81a   : > { %20693 = vmatpush3.bf16.msra.mxu1 %v23982_v22  ;;  %18987 = vmatprep.mubr.f32.mxu1 %v24747_v45 }
 0x81b   : > { %20695 = vmatprep.subr.bf16.mxu1 %v23991_v40 }
 0x821   : > { %18988 = vmatmul.mubr.f32.vlgmr.msra.gmra.mrb[32].mxu1 %v24748_v46 }
 0x822   : > { %20697 = vmatpush3.bf16.msra.mxu1 %v23991_v40  ;;  %18994 = vmatprep.mubr.f32.mxu1 %v24743_v2 }
 0x823   : > { %20699 = vmatprep.subr.bf16.mxu1 %v23982_v22 }
 0x829   : > { %18995 = vmatmul.mubr.f32.vlgmr.msra.gmra.mrb[32].mxu1 %v24744_v12 }
 0x82a   : > { %20701 = vmatpush3.bf16.msra.mxu1 %v23982_v22  ;;  %19001 = vmatprep.mubr.f32.mxu1 %v24743_v2 }
 0x831   : > { %19002 = vmatmul.mubr.f32.vlgmr.msra.gmra.mrb[32].mxu1 %v24744_v12 }
 0x832   : > { %19272 = vmatprep.mubr.f32.mxu1 %v24749_v5 }
 0x83b   : > { %v19258_v39 = vpop.f32.mrb[32].mxu0 }
 0x83c   : > { %v13101_v15 = vand.u32 4294901760, %v19258_v39  ;;  %v13051_v61 = vpop.f32.mrb[33].mxu0 }
 0x83d   : > { %v13098_v6 = vand.u32 4294901760, %v13051_v61 }
 0x83e   : > { %v13193_v37 = vsub.f32 %v19258_v39, %v13101_v15 }
 0x83f   : > { %v24072_v32 = vpack.c.bf16 %v13101_v15, %v13098_v6  ;;  %v13186_v25 = vsub.f32 %v13051_v61, %v13098_v6  ;;  %v19261_v44 = vpop.f32.mrb[34].mxu0 }
 0x840   : > { %v13194_v31 = vand.u32 4294901760, %v13193_v37  ;;  %v13603_v14 = vand.u32 4294901760, %v19261_v44  ;;  %v13063_v8 = vpop.f32.mrb[35].mxu0 }
 0x841   : > { %v13187_v55 = vand.u32 4294901760, %v13186_v25  ;;  %v13600_v7 = vand.u32 4294901760, %v13063_v8  ;;  %20895 = vmatprep.subr.bf16.mxu1 %v24072_v32  ;;  %v20902_v23 = vpack.c.bf16 %v13193_v37, %v13186_v25 }
 0x842   : > { %v13195_v63 = vsub.f32 %v13193_v37, %v13194_v31  ;;  %v13695_v43 = vsub.f32 %v19261_v44, %v13603_v14  ;;  %20897 = vmatpush3.bf16.msra.mxu1 %v24072_v32 }
 0x843   : > { %v13188_v21 = vsub.f32 %v13186_v25, %v13187_v55  ;;  %v24076_v41 = vpack.c.bf16 %v13603_v14, %v13600_v7  ;;  %v13688_v58 = vsub.f32 %v13063_v8, %v13600_v7  ;;  %v19264_v30 = vpop.f32.mrb[36].mxu0  ;;  %v20910_v0 = vpack.c.bf16 %v13194_v31, %v13187_v55 }
 0x844   : > { %v13696_v11 = vand.u32 4294901760, %v13695_v43  ;;  %v14105_v4 = vand.u32 4294901760, %v19264_v30  ;;  %v13075_v29 = vpop.f32.mrb[37].mxu0  ;;  %v13196_v52 = vand.u32 4294901760, %v13195_v63 }
 0x845   : > { %v13689_v16 = vand.u32 4294901760, %v13688_v58  ;;  %v14102_v28 = vand.u32 4294901760, %v13075_v29  ;;  %19273 = vmatmul.mubr.f32.vlgmr.msra.gmra.mrb[34].mxu1 %v24742_v9  ;;  %v13189_v51 = vand.u32 4294901760, %v13188_v21  ;;  %v24079_v48 = vpack.c.bf16 %v13695_v43, %v13688_v58  ;;  %v24751_v21 = vld [vmem:[#allocation33_spill] sm:$0xff] }
 0x846   : > { %v13697_v18 = vsub.f32 %v13695_v43, %v13696_v11  ;;  %v14197_v50 = vsub.f32 %v19264_v30, %v14105_v4  ;;  %19279 = vmatprep.mubr.f32.mxu1 %v24743_v2  ;;  %v24752_v30 = vsub.f32 %v23610_v62, %v23288_v34 }
 0x847   : > { %v13690_v54 = vsub.f32 %v13688_v58, %v13689_v16  ;;  %v24082_v53 = vpack.c.bf16 %v14105_v4, %v14102_v28  ;;  %v14190_v3 = vsub.f32 %v13075_v29, %v14102_v28  ;;  %v19267_v20 = vpop.f32.mrb[38].mxu0  ;;  %v20898_v1 = vpack.c.bf16 %v13196_v52, %v13189_v51  ;;  %v24754_v29 = vld [vmem:[#allocation42_spill] sm:$0xff]  ;;  %v24755_v28 = vld [vmem:[#allocation43_spill] sm:$0xff] }
 0x848   : > { %v14198_v22 = vand.u32 4294901760, %v14197_v50  ;;  %v14607_v57 = vand.u32 4294901760, %v19267_v20  ;;  %v13087_v17 = vpop.f32.mrb[39].mxu0  ;;  %v13698_v24 = vand.u32 4294901760, %v13697_v18  ;;  %v24084_v47 = vpack.c.bf16 %v13696_v11, %v13689_v16 }
 0x849   : > { %v14191_v59 = vand.u32 4294901760, %v14190_v3  ;;  %v14604_v19 = vand.u32 4294901760, %v13087_v17  ;;  %20899 = vmatprep.subr.bf16.mxu1 %v20898_v1  ;;  %v13691_v49 = vand.u32 4294901760, %v13690_v54  ;;  %v24086_v38 = vpack.c.bf16 %v14197_v50, %v14190_v3 }
 0x84a   : > { %v14199_v10 = vsub.f32 %v14197_v50, %v14198_v22  ;;  %v14699_v42 = vsub.f32 %v19267_v20, %v14607_v57  ;;  %20901 = vmatpush3.bf16.msra.mxu1 %v20898_v1  ;;  %v24753_v11 = vsub.f32 %v23612_v56, %v23298_v60  ;;  %v15202_v52 = vadd.f32 0.0001, %v24754_v29  ;;  %v24756_v60 = vld [vmem:[#allocation44_spill] sm:$0xff]  ;;  %v24759_v20 = vld [vmem:[#allocation34_spill] sm:$0xff] }
 0x84b   : > { %v14192_v33 = vsub.f32 %v14190_v3, %v14191_v59  ;;  %v24088_v40 = vpack.c.bf16 %v14607_v57, %v14604_v19  ;;  %v14692_v26 = vsub.f32 %v13087_v17, %v14604_v19  ;;  %20903 = vmatprep.subr.bf16.mxu1 %v20902_v23  ;;  %v20922_v27 = vpack.c.bf16 %v13698_v24, %v13691_v49  ;;  %v24758_v3 = vld [vmem:[#allocation64_spill] sm:$0xff]  ;;  %v24761_v57 = vld [vmem:[#allocation65_spill] sm:$0xff]  ;;  %v24762_v17 = vld [vmem:[#allocation35_spill] sm:$0xff] }
 0x84c   : > { %v14700_v35 = vand.u32 4294901760, %v14699_v42  ;;  %v14200_v39 = vand.u32 4294901760, %v14199_v10  ;;  %v24090_v15 = vpack.c.bf16 %v14198_v22, %v14191_v59  ;;  %v15201_v51 = vadd.f32 0.0001, %v24755_v28  ;;  %v24764_v59 = vld [vmem:[#allocation48_spill] sm:$0xff]  ;;  %v24782_v28 = vld [vmem:[#allocation39_spill] sm:$0xff] }
 0x84d   : > { %v14693_v61 = vand.u32 4294901760, %v14692_v26  ;;  %19280 = vmatmul.mubr.f32.vlgmr.msra.gmra.mrb[34].mxu1 %v24744_v12  ;;  %v14193_v6 = vand.u32 4294901760, %v14192_v33  ;;  %v24093_v37 = vpack.c.bf16 %v14699_v42, %v14692_v26  ;;  %v24760_v1 = vsub.f32 %v24758_v3, %v24759_v20 }
 0x84e   : > { %v14701_v25 = vsub.f32 %v14699_v42, %v14700_v35  ;;  %20905 = vmatpush3.bf16.msra.mxu1 %v20902_v23  ;;  %19286 = vmatprep.mubr.f32.mxu1 %v24745_v13  ;;  %v24750_v23 = vld [vmem:[#allocation22_spill] sm:$0xff]  ;;  %v24763_v24 = vsub.f32 %v24761_v57, %v24762_v17  ;;  %v15204_v19 = vadd.f32 0.0001, %v24764_v59  ;;  %v24786_v57 = vld [vmem:[#allocation40_spill] sm:$0xff]  ;;  %v24787_v59 = vld [vmem:[#allocation41_spill] sm:$0xff] }
 0x84f   : > { %v14694_v44 = vsub.f32 %v14692_v26, %v14693_v61  ;;  %20907 = vmatprep.subr.bf16.mxu1 %v24072_v32  ;;  %v20946_v31 = vpack.c.bf16 %v14200_v39, %v14193_v6  ;;  %v24097_v14 = vpack.c.bf16 %v14700_v35, %v14693_v61  ;;  %v24769_v61 = vld [vmem:[#allocation36_spill] sm:$0xff]  ;;  %v15154_v17 = vmul.f32 2.0, %v24786_v57 }
 0x850   : > { %v14702_v8 = vand.u32 4294901760, %v14701_v25  ;;  %v24772_v25 = vld [vmem:[#allocation37_spill] sm:$0xff] }
 0x851   : > { %v14695_v55 = vand.u32 4294901760, %v14694_v44 }
 0x853   : > { %v24099_v7 = vpack.c.bf16 %v14702_v8, %v14695_v55  ;;  %v24774_v8 = vld [vmem:[#allocation54_spill] sm:$0xff] }
 0x854   : > { %v15206_v55 = vadd.f32 0.0001, %v24774_v8 }
 0x855   : > { %19287 = vmatmul.mubr.f32.vlgmr.msra.gmra.mrb[34].mxu1 %v24746_v36 }
 0x856   : > { %20909 = vmatpush3.bf16.msra.mxu1 %v24072_v32  ;;  %19293 = vmatprep.mubr.f32.mxu1 %v24747_v45 }
 0x857   : > { %20911 = vmatprep.subr.bf16.mxu1 %v20910_v0 }
 0x85d   : > { %19294 = vmatmul.mubr.f32.vlgmr.msra.gmra.mrb[34].mxu1 %v24748_v46 }
 0x85e   : > { %20913 = vmatpush3.bf16.msra.mxu1 %v20910_v0  ;;  %19300 = vmatprep.mubr.f32.mxu1 %v24743_v2 }
 0x85f   : > { %20915 = vmatprep.subr.bf16.mxu1 %v24072_v32 }
 0x865   : > { %19301 = vmatmul.mubr.f32.vlgmr.msra.gmra.mrb[34].mxu1 %v24744_v12 }
 0x866   : > { %20917 = vmatpush3.bf16.msra.mxu1 %v24072_v32  ;;  %19307 = vmatprep.mubr.f32.mxu1 %v24743_v2 }
 0x867   : > { %20919 = vmatprep.subr.bf16.mxu1 %v24076_v41 }
 0x86d   : > { %19308 = vmatmul.mubr.f32.vlgmr.msra.gmra.mrb[34].mxu1 %v24744_v12 }
 0x86e   : > { %20921 = vmatpush3.bf16.msra.mxu1 %v24076_v41  ;;  %19314 = vmatprep.mubr.f32.mxu1 %v24749_v5 }
 0x86f   : > { %20923 = vmatprep.subr.bf16.mxu1 %v20922_v27 }
 0x871   : > { %19315 = vmatmul.mubr.f32.vlgmr.msra.gmra.mrb[36].mxu1 %v24742_v9 }
 0x872   : > { %20925 = vmatpush3.bf16.msra.mxu1 %v20922_v27  ;;  %19321 = vmatprep.mubr.f32.mxu1 %v24743_v2 }
 0x873   : > { %20927 = vmatprep.subr.bf16.mxu1 %v24079_v48 }
 0x879   : > { %19322 = vmatmul.mubr.f32.vlgmr.msra.gmra.mrb[36].mxu1 %v24744_v12 }
 0x87a   : > { %20929 = vmatpush3.bf16.msra.mxu1 %v24079_v48  ;;  %19328 = vmatprep.mubr.f32.mxu1 %v24745_v13 }
 0x87b   : > { %20931 = vmatprep.subr.bf16.mxu1 %v24076_v41 }
 0x880   : > { %v18877_v32 = vpop.f32.mrb[26].mxu1 }
 0x881   : > { %v15138_v63 = vsub.f32 %v18877_v32, %v24750_v23  ;;  %v10631_v43 = vpop.f32.mrb[27].mxu1  ;;  %19329 = vmatmul.mubr.f32.vlgmr.msra.gmra.mrb[36].mxu1 %v24746_v36 }
 0x882   : > { %v15137_v58 = vsub.f32 %v10631_v43, %v24751_v21  ;;  %20933 = vmatpush3.bf16.msra.mxu1 %v24076_v41  ;;  %19335 = vmatprep.mubr.f32.mxu1 %v24747_v45 }
 0x883   : > { %v15210_v0 = vadd.f32 %v15138_v63, %v24752_v30  ;;  %20935 = vmatprep.subr.bf16.mxu1 %v24084_v47 }
 0x884   : > { %v15209_v4 = vadd.f32 %v15137_v58, %v24753_v11  ;;  %v24776_v58 = vld [vmem:[#allocation57_spill] sm:$0xff]  ;;  %v24778_v11 = vld [vmem:[#allocation26_spill] sm:$0xff] }
 0x885   : > { %v15218_v16 = vadd.f32 0.0009, %v15210_v0 }
 0x886   : > { %v15217_v48 = vadd.f32 0.0009, %v15209_v4  ;;  %v24779_v4 = vld [vmem:[#allocation38_spill] sm:$0xff] }
 0x887   : > { %v24135_v18 = vmul.f32 %v15218_v16, %v15202_v52  ;;  %v24780_v29 = vsub.f32 %v24778_v11, %v24779_v4  ;;  %v24781_v16 = vld [vmem:[#allocation27_spill] sm:$0xff] }
 0x888   : > { %v24137_v50 = vmul.f32 %v15217_v48, %v15201_v51 }
 0x889   : > { %19336 = vmatmul.mubr.f32.vlgmr.msra.gmra.mrb[36].mxu1 %v24748_v46  ;;  %21552 = vrcp.f32 %v24135_v18 }
 0x88a   : > { %20937 = vmatpush3.bf16.msra.mxu1 %v24084_v47  ;;  %19342 = vmatprep.mubr.f32.mxu1 %v24743_v2  ;;  %21554 = vrcp.f32 %v24137_v50 }
 0x88b   : > { %20939 = vmatprep.subr.bf16.mxu1 %v24076_v41 }
 0x891   : > { %19343 = vmatmul.mubr.f32.vlgmr.msra.gmra.mrb[36].mxu1 %v24744_v12 }
 0x892   : > { %20941 = vmatpush3.bf16.msra.mxu1 %v24076_v41  ;;  %19349 = vmatprep.mubr.f32.mxu1 %v24743_v2  ;;  %v24757_v41 = vld [vmem:[#allocation46_spill] sm:$0xff] }
 0x893   : > { %20943 = vmatprep.subr.bf16.mxu1 %v24082_v53 }
 0x899   : > { %19350 = vmatmul.mubr.f32.vlgmr.msra.gmra.mrb[36].mxu1 %v24744_v12 }
 0x89a   : > { %20945 = vmatpush3.bf16.msra.mxu1 %v24082_v53  ;;  %19356 = vmatprep.mubr.f32.mxu1 %v24749_v5 }
 0x89b   : > { %20947 = vmatprep.subr.bf16.mxu1 %v20946_v31 }
 0x89d   : > { %19357 = vmatmul.mubr.f32.vlgmr.msra.gmra.mrb[38].mxu1 %v24742_v9 }
 0x89e   : > { %20949 = vmatpush3.bf16.msra.mxu1 %v20946_v31  ;;  %19363 = vmatprep.mubr.f32.mxu1 %v24743_v2 }
 0x89f   : > { %20951 = vmatprep.subr.bf16.mxu1 %v24086_v38 }
 0x8a5   : > { %19364 = vmatmul.mubr.f32.vlgmr.msra.gmra.mrb[38].mxu1 %v24744_v12 }
 0x8a6   : > { %20953 = vmatpush3.bf16.msra.mxu1 %v24086_v38  ;;  %19370 = vmatprep.mubr.f32.mxu1 %v24745_v13  ;;  %v24765_v38 = vld [vmem:[#allocation49_spill] sm:$0xff] }
 0x8a7   : > { %20955 = vmatprep.subr.bf16.mxu1 %v24082_v53  ;;  %v15203_v10 = vadd.f32 0.0001, %v24765_v38 }
 0x8ac   : > { %v18919_v34 = vpop.f32.mrb[28].mxu1 }
 0x8ad   : > { %v15140_v62 = vsub.f32 %v18919_v34, %v24756_v60  ;;  %v11133_v56 = vpop.f32.mrb[29].mxu1  ;;  %19371 = vmatmul.mubr.f32.vlgmr.msra.gmra.mrb[38].mxu1 %v24746_v36  ;;  %v24785_v60 = vld [vmem:[#allocation63_spill] sm:$0xff] }
 0x8ae   : > { %v15139_v54 = vsub.f32 %v11133_v56, %v24757_v41  ;;  %20957 = vmatpush3.bf16.msra.mxu1 %v24082_v53  ;;  %19377 = vmatprep.mubr.f32.mxu1 %v24747_v45 }
 0x8af   : > { %v15212_v22 = vadd.f32 %v15140_v62, %v24760_v1  ;;  %20959 = vmatprep.subr.bf16.mxu1 %v24090_v15  ;;  %v15207_v62 = vadd.f32 0.0001, %v24785_v60 }
 0x8b0   : > { %v15211_v47 = vadd.f32 %v15139_v54, %v24763_v24  ;;  %v21553_v54 = vpop.eup %21552 }
 0x8b1   : > { %v15220_v49 = vadd.f32 0.0009, %v15212_v22  ;;  %v21555_v3 = vpop.eup %21554  ;;  %v15242_v20 = vmul.f32 %v21553_v54, %v24135_v18 }
 0x8b2   : > { %v15219_v42 = vadd.f32 0.0009, %v15211_v47  ;;  %v15241_v1 = vmul.f32 %v21555_v3, %v24137_v50 }
 0x8b3   : > { %v24171_v33 = vmul.f32 %v15220_v49, %v15204_v19  ;;  %v15153_v19 = vmul.f32 2.0, %v24787_v59  ;;  %v15250_v38 = vsub.f32 2.0, %v15242_v20 }
 0x8b4   : > { %v24173_v26 = vmul.f32 %v15219_v42, %v15203_v10  ;;  %v15249_v42 = vsub.f32 2.0, %v15241_v1 }
 0x8b5   : > { %19378 = vmatmul.mubr.f32.vlgmr.msra.gmra.mrb[38].mxu1 %v24748_v46  ;;  %v15258_v50 = vmul.f32 %v21553_v54, %v15250_v38  ;;  %21556 = vrcp.f32 %v24171_v33 }
 0x8b6   : > { %20961 = vmatpush3.bf16.msra.mxu1 %v24090_v15  ;;  %19384 = vmatprep.mubr.f32.mxu1 %v24743_v2  ;;  %v24768_v15 = vld [vmem:[#allocation24_spill] sm:$0xff]  ;;  %21558 = vrcp.f32 %v24173_v26 }
 0x8b7   : > { %20963 = vmatprep.subr.bf16.mxu1 %v24082_v53  ;;  %v24770_v6 = vsub.f32 %v24768_v15, %v24769_v61  ;;  %v15257_v15 = vmul.f32 %v21555_v3, %v15249_v42 }
 0x8bd   : > { %19385 = vmatmul.mubr.f32.vlgmr.msra.gmra.mrb[38].mxu1 %v24744_v12 }
 0x8be   : > { %20965 = vmatpush3.bf16.msra.mxu1 %v24082_v53  ;;  %19391 = vmatprep.mubr.f32.mxu1 %v24743_v2 }
 0x8bf   : > { %20967 = vmatprep.subr.bf16.mxu1 %v24088_v40 }
 0x8c5   : > { %19392 = vmatmul.mubr.f32.vlgmr.msra.gmra.mrb[38].mxu1 %v24744_v12 }
 0x8c6   : > { %20969 = vmatpush3.bf16.msra.mxu1 %v24088_v40  ;;  %19398 = vmatprep.mubr.f32.mxu1 %v24749_v5  ;;  %v24766_v5 = vld [vmem:[#allocation50_spill] sm:$0xff] }
 0x8c7   : > { %20971 = vmatprep.subr.bf16.mxu1 %v24099_v7 }
 0x8c9   : > { %19399 = vmatmul.mubr.f32.vlgmr.msra.gmra.mrb[40].mxu1 %v24742_v9  ;;  %v24767_v9 = vld [vmem:[#allocation52_spill] sm:$0xff] }
 0x8ca   : > { %20973 = vmatpush3.bf16.msra.mxu1 %v24099_v7  ;;  %19405 = vmatprep.mubr.f32.mxu1 %v24743_v2 }
 0x8cb   : > { %20975 = vmatprep.subr.bf16.mxu1 %v24093_v37 }
 0x8d1   : > { %19406 = vmatmul.mubr.f32.vlgmr.msra.gmra.mrb[40].mxu1 %v24744_v12 }
 0x8d2   : > { %20977 = vmatpush3.bf16.msra.mxu1 %v24093_v37  ;;  %19412 = vmatprep.mubr.f32.mxu1 %v24745_v13  ;;  %v24771_v13 = vld [vmem:[#allocation25_spill] sm:$0xff] }
 0x8d3   : > { %20979 = vmatprep.subr.bf16.mxu1 %v24088_v40  ;;  %v24773_v44 = vsub.f32 %v24771_v13, %v24772_v25 }
 0x8d8   : > { %v18961_v53 = vpop.f32.mrb[30].mxu1 }
 0x8d9   : > { %v15142_v27 = vsub.f32 %v18961_v53, %v24766_v5  ;;  %v11635_v35 = vpop.f32.mrb[31].mxu1  ;;  %19413 = vmatmul.mubr.f32.vlgmr.msra.gmra.mrb[40].mxu1 %v24746_v36  ;;  %v24775_v36 = vld [vmem:[#allocation55_spill] sm:$0xff]  ;;  %v15162_v5 = vadd.f32 0.0001, %v15154_v17 }
 0x8da   : > { %v15141_v39 = vsub.f32 %v11635_v35, %v24767_v9  ;;  %20981 = vmatpush3.bf16.msra.mxu1 %v24088_v40  ;;  %19419 = vmatprep.mubr.f32.mxu1 %v24747_v45  ;;  %v15205_v32 = vadd.f32 0.0001, %v24775_v36  ;;  %v21794_v45 = vmov 0.0|0.0   ;;  %v15161_v35 = vadd.f32 0.0001, %v15153_v19 }
 0x8db   : > { %v15214_v37 = vadd.f32 %v15142_v27, %v24770_v6  ;;  %20983 = vmatprep.subr.bf16.mxu1 %v24097_v14 }
 0x8dc   : > { %v15213_v31 = vadd.f32 %v15141_v39, %v24773_v44 }
 0x8dd   : > { %v15222_v7 = vadd.f32 0.0009, %v15214_v37 }
 0x8de   : > { %v15221_v23 = vadd.f32 0.0009, %v15213_v31 }
 0x8df   : > { %v24209_v63 = vmul.f32 %v15222_v7, %v15206_v55 }
 0x8e0   : > { %v24211_v43 = vmul.f32 %v15221_v23, %v15205_v32 }
 0x8e1   : > { %19420 = vmatmul.mubr.f32.vlgmr.msra.gmra.mrb[40].mxu1 %v24748_v46  ;;  %21560 = vrcp.f32 %v24209_v63 }
 0x8e2   : > { %20985 = vmatpush3.bf16.msra.mxu1 %v24097_v14  ;;  %19426 = vmatprep.mubr.f32.mxu1 %v24743_v2  ;;  %v24777_v14 = vld [vmem:[#allocation60_spill] sm:$0xff]  ;;  %21562 = vrcp.f32 %v24211_v43 }
 0x8e3   : > { %20987 = vmatprep.subr.bf16.mxu1 %v24088_v40 }
 0x8e9   : > { %19427 = vmatmul.mubr.f32.vlgmr.msra.gmra.mrb[40].mxu1 %v24744_v12 }
 0x8ea   : > { %20989 = vmatpush3.bf16.msra.mxu1 %v24088_v40  ;;  %19433 = vmatprep.mubr.f32.mxu1 %v24743_v2  ;;  %v24783_v40 = vsub.f32 %v24781_v16, %v24782_v28  ;;  %v24784_v2 = vld [vmem:[#allocation62_spill] sm:$0xff] }
 0x8eb   : > { %20990 = vmatprep.subr.bf16.mxu1 %v21794_v45  ;;  %v15208_v48 = vadd.f32 0.0001, %v24784_v2 }
 0x8f1   : > { %19434 = vmatmul.mubr.f32.vlgmr.msra.gmra.mrb[40].mxu1 %v24744_v12 }
 0x904   : > { %v19003_v21 = vpop.f32.mrb[32].mxu1 }
 0x905   : > { %v15144_v46 = vsub.f32 %v19003_v21, %v24776_v58  ;;  %v12137_v30 = vpop.f32.mrb[33].mxu1 }
 0x906   : > { %v15143_v0 = vsub.f32 %v12137_v30, %v24777_v14  ;;  %v21557_v14 = vpop.eup %21556 }
 0x907   : > { %v15216_v52 = vadd.f32 %v15144_v46, %v24780_v29  ;;  %v21796_v46 = vmov 0.0   ;;  %v15244_v11 = vmul.f32 %v21557_v14, %v24171_v33 }
 0x908   : > { %v15215_v51 = vadd.f32 %v15143_v0, %v24783_v40  ;;  %19452 = vmatprep.mubr.msk.f32.mxu1 %vm21795_vm1, %v21796_v46  ;;  %v21559_v0 = vpop.eup %21558 }
 0x909   : > { %v15224_v34 = vadd.f32 0.0009, %v15216_v52  ;;  %v15243_v4 = vmul.f32 %v21559_v0, %v24173_v26  ;;  %v24788_v52 = vld [vmem:[#allocation45_spill] sm:$0xff] }
 0x90a   : > { %v15223_v12 = vadd.f32 0.0009, %v15215_v51  ;;  %v15156_v16 = vmul.f32 2.0, %v24788_v52  ;;  %v24789_v51 = vld [vmem:[#allocation47_spill] sm:$0xff] }
 0x90b   : > { %v24232_v56 = vmul.f32 %v15224_v34, %v15208_v48  ;;  %v15155_v2 = vmul.f32 2.0, %v24789_v51  ;;  %v15252_v34 = vsub.f32 2.0, %v15244_v11 }
 0x90c   : > { %v24234_v41 = vmul.f32 %v15223_v12, %v15207_v62  ;;  %v15251_v62 = vsub.f32 2.0, %v15243_v4  ;;  %v15164_v54 = vadd.f32 0.0001, %v15156_v16 }
 0x90d   : > { %v15163_v20 = vadd.f32 0.0001, %v15155_v2  ;;  %v15260_v26 = vmul.f32 %v21557_v14, %v15252_v34  ;;  %21564 = vrcp.f32 %v24232_v56 }
 0x90e   : > { %21566 = vrcp.f32 %v24234_v41 }
 0x940   : > { %v19309_v22 = vpop.f32.mrb[34].mxu1 }
 0x941   : > { %v15146_v24 = vsub.f32 %v19309_v22, %v24786_v57  ;;  %v13589_v47 = vpop.f32.mrb[35].mxu1  ;;  %v15259_v57 = vmul.f32 %v21559_v0, %v15251_v62 }
 0x942   : > { %v15145_v49 = vsub.f32 %v13589_v47, %v24787_v59 }
 0x943   : > { %v15170_v10 = vmul.f32 2.0, %v15146_v24 }
 0x944   : > { %v15169_v53 = vmul.f32 2.0, %v15145_v49 }
 0x945   : > { %v15178_v27 = vadd.f32 0.0009, %v15170_v10 }
 0x946   : > { %v15177_v18 = vadd.f32 0.0009, %v15169_v53 }
 0x947   : > { %v15186_v9 = vmul.f32 %v15178_v27, %v15162_v5 }
 0x948   : > { %v15185_v39 = vmul.f32 %v15177_v18, %v15161_v35 }
 0x949   : > { %v15266_v61 = vmul.f32 %v15258_v50, %v15186_v9 }
 0x94a   : > { %v15265_v6 = vmul.f32 %v15257_v15, %v15185_v39  ;;  %v21561_v39 = vpop.eup %21560 }
 0x94b   : > { %v15292_v37 = vand.u32 4294901760, %v15266_v61  ;;  %v21563_v15 = vpop.eup %21562 }
 0x94c   : > { %v15289_v13 = vand.u32 4294901760, %v15265_v6 }
 0x94d   : > { %v24244_v25 = vsub.f32 %v15266_v61, %v15292_v37  ;;  %v15246_v61 = vmul.f32 %v21561_v39, %v24209_v63 }
 0x94e   : > { %v24246_v44 = vsub.f32 %v15265_v6, %v15289_v13  ;;  %v24248_v31 = vpack.c.bf16 %v15292_v37, %v15289_v13  ;;  %v15245_v6 = vmul.f32 %v21563_v15, %v24211_v43  ;;  %v24790_v13 = vld [vmem:[#allocation51_spill] sm:$0xff] }
 0x94f   : > { %v15381_v8 = vand.u32 4294901760, %v24244_v25  ;;  %v15254_v14 = vsub.f32 2.0, %v15246_v61 }
 0x950   : > { %20992 = vmatpush3.bf16.msra.mxu1 %v24248_v31  ;;  %v15374_v55 = vand.u32 4294901760, %v24246_v44  ;;  %v21015_v7 = vpack.c.bf16 %v24244_v25, %v24246_v44  ;;  %v15253_v11 = vsub.f32 2.0, %v15245_v6 }
 0x951   : > { %20993 = vmatprep.subr.bf16.mxu1 %v21794_v45  ;;  %v15382_v36 = vsub.f32 %v24244_v25, %v15381_v8  ;;  %v15262_v43 = vmul.f32 %v21561_v39, %v15254_v14  ;;  %v21797_v25 = vmov 1966171168  }
 0x952   : > { %v15375_v32 = vsub.f32 %v24246_v44, %v15374_v55  ;;  %v24258_v23 = vpack.c.bf16 %v15381_v8, %v15374_v55  ;;  %v15158_v8 = vmul.f32 2.0, %v24790_v13  ;;  %v15827_v44 = vunpack.c.l.s4 %v21797_v25 }
 0x953   : > { %v15383_v21 = vand.u32 4294901760, %v15382_v36 }
 0x954   : > { %v15376_v58 = vand.u32 4294901760, %v15375_v32  ;;  %v24791_v32 = vld [vmem:[#allocation53_spill] sm:$0xff] }
 0x956   : > { %v24262_v30 = vpack.c.bf16 %v15383_v21, %v15376_v58  ;;  %v15157_v21 = vmul.f32 2.0, %v24791_v32 }
 0x958   : > { %v15165_v16 = vadd.f32 0.0001, %v15157_v21 }
 0x96c   : > { %v19351_v29 = vpop.f32.mrb[36].mxu1 }
 0x96d   : > { %v15148_v28 = vsub.f32 %v19351_v29, %v24788_v52  ;;  %v14091_v40 = vpop.f32.mrb[37].mxu1  ;;  %v15166_v29 = vadd.f32 0.0001, %v15158_v8 }
 0x96e   : > { %v15147_v48 = vsub.f32 %v14091_v40, %v24789_v51  ;;  %v15261_v51 = vmul.f32 %v21563_v15, %v15253_v11 }
 0x96f   : > { %v15172_v60 = vmul.f32 2.0, %v15148_v28 }
 0x970   : > { %v15171_v12 = vmul.f32 2.0, %v15147_v48 }
 0x971   : > { %v15180_v3 = vadd.f32 0.0009, %v15172_v60 }
 0x972   : > { %v15179_v33 = vadd.f32 0.0009, %v15171_v12 }
 0x973   : > { %v15188_v1 = vmul.f32 %v15180_v3, %v15164_v54 }
 0x974   : > { %v15187_v22 = vmul.f32 %v15179_v33, %v15163_v20 }
 0x975   : > { %v15268_v17 = vmul.f32 %v15260_v26, %v15188_v1 }
 0x976   : > { %v15267_v24 = vmul.f32 %v15259_v57, %v15187_v22  ;;  %v15273_v57 = vlaneseq }
 0x977   : > { %v15298_v47 = vand.u32 4294901760, %v15268_v17 }
 0x978   : > { %v15295_v59 = vand.u32 4294901760, %v15267_v24 }
 0x979   : > { %v24272_v19 = vsub.f32 %v15268_v17, %v15298_v47 }
 0x97a   : > { %v24274_v49 = vsub.f32 %v15267_v24, %v15295_v59  ;;  %v24276_v38 = vpack.c.bf16 %v15298_v47, %v15295_v59  ;;  %v24314_v59 = vshrl.u32 %v15273_v57, 7 }
 0x97b   : > { %v15395_v10 = vand.u32 4294901760, %v24272_v19 }
 0x97c   : > { %20995 = vmatpush3.bf16.msra.mxu1 %v24276_v38  ;;  %v15388_v42 = vand.u32 4294901760, %v24274_v49  ;;  %v21018_v53 = vpack.c.bf16 %v24272_v19, %v24274_v49 }
 0x97d   : > { %20996 = vmatprep.subr.bf16.mxu1 %v21794_v45  ;;  %v15396_v5 = vsub.f32 %v24272_v19, %v15395_v10 }
 0x97e   : > { %v15389_v27 = vsub.f32 %v24274_v49, %v15388_v42  ;;  %v24286_v35 = vpack.c.bf16 %v15395_v10, %v15388_v42  ;;  %v15277_v10 = vmul.u32 16, %v24314_v59  ;;  %v15274_v42 = vand.u32 127, %v15273_v57 }
 0x97f   : > { %v15397_v18 = vand.u32 4294901760, %v15396_v5 }
 0x980   : > { %v15390_v9 = vand.u32 4294901760, %v15389_v27  ;;  %v15279_v5 = vadd.s32 16, %v15277_v10  ;;  %vm15278_vm2 = vcmp.ge.s32.totalorder %v15274_v42, %v15277_v10  ;;  %v21565_v27 = vpop.eup %21564 }
 0x981   : > { %v15248_v39 = vmul.f32 %v21565_v27, %v24232_v56 }
 0x982   : > { %v24288_v50 = vpack.c.bf16 %v15397_v18, %v15390_v9  ;;  %vm15280_vm3 = vcmp.lt.s32.totalorder %v15274_v42, %v15279_v5  ;;  %v21567_v18 = vpop.eup %21566 }
 0x983   : > { %vm15281_vm4 = vmand %vm15278_vm2, %vm15280_vm3  ;;  %v15247_v15 = vmul.f32 %v21567_v18, %v24234_v41 }
 0x984   : > { %v24320_v9 = vsel %vm15281_vm4, 1.0, %v21796_v46 }
 0x985   : > { %v15286_v6 = vsel %vm15284_vm5, %v24320_v9, 0  ;;  %v15255_v11 = vsub.f32 2.0, %v15247_v15 }
 0x998   : > { %v19393_v37 = vpop.f32.mrb[38].mxu1 }
 0x999   : > { %v15150_v55 = vsub.f32 %v19393_v37, %v24790_v13  ;;  %v14593_v36 = vpop.f32.mrb[39].mxu1  ;;  %v24792_v37 = vld [vmem:[#allocation58_spill] sm:$0xff] }
 0x99a   : > { %v15149_v58 = vsub.f32 %v14593_v36, %v24791_v32  ;;  %v15160_v13 = vmul.f32 2.0, %v24792_v37  ;;  %v24793_v36 = vld [vmem:[#allocation61_spill] sm:$0xff] }
 0x99b   : > { %v15174_v0 = vmul.f32 2.0, %v15150_v55  ;;  %v15159_v32 = vmul.f32 2.0, %v24793_v36 }
 0x99c   : > { %v15173_v4 = vmul.f32 2.0, %v15149_v58  ;;  %v15256_v58 = vsub.f32 2.0, %v15248_v39 }
 0x99d   : > { %v15182_v52 = vadd.f32 0.0009, %v15174_v0  ;;  %v15362_v0 = vsub.f32 %v15286_v6, %v15286_v6 }
 0x99e   : > { %v15181_v63 = vadd.f32 0.0009, %v15173_v4  ;;  %v15168_v4 = vadd.f32 0.0001, %v15160_v13 }
 0x99f   : > { %v15190_v28 = vmul.f32 %v15182_v52, %v15166_v29  ;;  %v15167_v29 = vadd.f32 0.0001, %v15159_v32 }
 0x9a0   : > { %v15189_v40 = vmul.f32 %v15181_v63, %v15165_v16  ;;  %v15264_v63 = vmul.f32 %v21565_v27, %v15256_v58 }
 0x9a1   : > { %v15270_v2 = vmul.f32 %v15262_v43, %v15190_v28  ;;  %v15363_v28 = vand.u32 4294901760, %v15362_v0 }
 0x9a2   : > { %v15269_v48 = vmul.f32 %v15261_v51, %v15189_v40  ;;  %v15263_v40 = vmul.f32 %v21567_v18, %v15255_v11 }
 0x9a3   : > { %v15304_v34 = vand.u32 4294901760, %v15270_v2 }
 0x9a4   : > { %v15301_v60 = vand.u32 4294901760, %v15269_v48 }
 0x9a5   : > { %v24298_v62 = vsub.f32 %v15270_v2, %v15304_v34 }
 0x9a6   : > { %v24300_v12 = vsub.f32 %v15269_v48, %v15301_v60  ;;  %v24302_v54 = vpack.c.bf16 %v15304_v34, %v15301_v60  ;;  %v15364_v34 = vsub.f32 %v15362_v0, %v15363_v28 }
 0x9a7   : > { %v15409_v3 = vand.u32 4294901760, %v24298_v62 }
 0x9a8   : > { %20998 = vmatpush3.bf16.msra.mxu1 %v24302_v54  ;;  %v15402_v20 = vand.u32 4294901760, %v24300_v12  ;;  %v21021_v33 = vpack.c.bf16 %v24298_v62, %v24300_v12 }
 0x9a9   : > { %20999 = vmatprep.subr.bf16.mxu1 %v21794_v45  ;;  %v15410_v1 = vsub.f32 %v24298_v62, %v15409_v3 }
 0x9aa   : > { %v15403_v26 = vsub.f32 %v24300_v12, %v15402_v20  ;;  %v24312_v22 = vpack.c.bf16 %v15409_v3, %v15402_v20 }
 0x9ab   : > { %v15411_v17 = vand.u32 4294901760, %v15410_v1 }
 0x9ac   : > { %v15404_v24 = vand.u32 4294901760, %v15403_v26  ;;  %v15365_v26 = vand.u32 4294901760, %v15364_v34 }
 0x9ae   : > { %v21009_v47 = vpack.c.bf16 %v15411_v17, %v15404_v24 }
 0x9c4   : > { %v19435_v61 = vpop.f32.mrb[40].mxu1 }
 0x9c5   : > { %v15152_v8 = vsub.f32 %v19435_v61, %v24792_v37  ;;  %v15095_v55 = vpop.f32.mrb[41].mxu1 }
 0x9c6   : > { %v15151_v21 = vsub.f32 %v15095_v55, %v24793_v36 }
 0x9c7   : > { %v15176_v14 = vmul.f32 2.0, %v15152_v8 }
 0x9c8   : > { %v15175_v56 = vmul.f32 2.0, %v15151_v21 }
 0x9c9   : > { %v15184_v41 = vadd.f32 0.0009, %v15176_v14 }
 0x9ca   : > { %v15183_v52 = vadd.f32 0.0009, %v15175_v56 }
 0x9cb   : > { %v15192_v16 = vmul.f32 %v15184_v41, %v15168_v4 }
 0x9cc   : > { %v15191_v43 = vmul.f32 %v15183_v52, %v15167_v29 }
 0x9cd   : > { %v15272_v51 = vmul.f32 %v15264_v63, %v15192_v16 }
 0x9ce   : > { %v15271_v2 = vmul.f32 %v15263_v40, %v15191_v43 }
 0x9cf   : > { %v15310_v48 = vand.u32 4294901760, %v15272_v51 }
 0x9d0   : > { %v15307_v60 = vand.u32 4294901760, %v15271_v2 }
 0x9d1   : > { %v15422_v3 = vsub.f32 %v15272_v51, %v15310_v48 }
 0x9d2   : > { %v15415_v20 = vsub.f32 %v15271_v2, %v15307_v60  ;;  %v21000_v1 = vpack.c.bf16 %v15310_v48, %v15307_v60 }
 0x9d3   : > { %v15423_v57 = vand.u32 4294901760, %v15422_v3 }
 0x9d4   : > { %21001 = vmatpush3.bf16.msra.mxu1 %v21000_v1  ;;  %v15416_v17 = vand.u32 4294901760, %v15415_v20  ;;  %v21024_v24 = vpack.c.bf16 %v15422_v3, %v15415_v20 }
 0x9d5   : > { %21002 = vmatprep.subr.bf16.mxu1 %v21794_v45  ;;  %v15424_v10 = vsub.f32 %v15422_v3, %v15423_v57 }
 0x9d6   : > { %v15417_v42 = vsub.f32 %v15415_v20, %v15416_v17  ;;  %v21048_v5 = vpack.c.bf16 %v15423_v57, %v15416_v17 }
 0x9d7   : > { %19453 = vmatmul.mubr.f32.vlgmr.msra.gmra.mrb[42].mxu1 %v15365_v26  ;;  %v15425_v27 = vand.u32 4294901760, %v15424_v10 }
 0x9d8   : > { %21004 = vmatpush3.bf16.msra.mxu1 %v24262_v30  ;;  %v15418_v18 = vand.u32 4294901760, %v15417_v42  ;;  %19471 = vmatprep.mubr.msk.f32.mxu1 %vm21795_vm1, %v21796_v46 }
 0x9d9   : > { %21005 = vmatprep.subr.bf16.mxu1 %v21794_v45 }
 0x9da   : > { %v21012_v39 = vpack.c.bf16 %v15425_v27, %v15418_v18 }
 0x9dc   : > { %21007 = vmatpush3.bf16.msra.mxu1 %v24288_v50 }
 0x9dd   : > { %21008 = vmatprep.subr.bf16.mxu1 %v21794_v45 }
 0x9e0   : > { %21010 = vmatpush3.bf16.msra.mxu1 %v21009_v47 }
 0x9e1   : > { %21011 = vmatprep.subr.bf16.mxu1 %v21794_v45 }
 0x9e4   : > { %21013 = vmatpush3.bf16.msra.mxu1 %v21012_v39 }
 0x9e5   : > { %21014 = vmatprep.subr.bf16.mxu1 %v21794_v45 }
 0x9e7   : > { %19472 = vmatmul.mubr.msk.f32.vlgmr.msra.gmra.mrb[42].mxu1 %vm15284_vm5, %v24320_v9 }
 0x9e8   : > { %21016 = vmatpush3.bf16.msra.mxu1 %v21015_v7  ;;  %19490 = vmatprep.mubr.msk.f32.mxu1 %vm21795_vm1, %v21796_v46 }
 0x9e9   : > { %21017 = vmatprep.subr.bf16.mxu1 %v21794_v45 }
 0x9ec   : > { %21019 = vmatpush3.bf16.msra.mxu1 %v21018_v53 }
 0x9ed   : > { %21020 = vmatprep.subr.bf16.mxu1 %v21794_v45 }
 0x9f0   : > { %21022 = vmatpush3.bf16.msra.mxu1 %v21021_v33 }
 0x9f1   : > { %21023 = vmatprep.subr.bf16.mxu1 %v21794_v45 }
 0x9f4   : > { %21025 = vmatpush3.bf16.msra.mxu1 %v21024_v24 }
 0x9f5   : > { %21026 = vmatprep.subr.bf16.mxu1 %v21794_v45 }
 0x9f7   : > { %19491 = vmatmul.mubr.f32.vlgmr.msra.gmra.mrb[42].mxu1 %v15362_v0 }
 0x9f8   : > { %21028 = vmatpush3.bf16.msra.mxu1 %v24248_v31  ;;  %19509 = vmatprep.mubr.msk.f32.mxu1 %vm21795_vm1, %v21796_v46 }
 0x9f9   : > { %21029 = vmatprep.subr.bf16.mxu1 %v21794_v45 }
 0x9fc   : > { %21031 = vmatpush3.bf16.msra.mxu1 %v24276_v38 }
 0x9fd   : > { %21032 = vmatprep.subr.bf16.mxu1 %v21794_v45 }
 0xa00   : > { %21034 = vmatpush3.bf16.msra.mxu1 %v24302_v54 }
 0xa01   : > { %21035 = vmatprep.subr.bf16.mxu1 %v21794_v45 }
 0xa04   : > { %21037 = vmatpush3.bf16.msra.mxu1 %v21000_v1 }
 0xa05   : > { %21038 = vmatprep.subr.bf16.mxu1 %v21794_v45 }
 0xa07   : > { %19510 = vmatmul.mubr.f32.vlgmr.msra.gmra.mrb[42].mxu1 %v15363_v28 }
 0xa08   : > { %21040 = vmatpush3.bf16.msra.mxu1 %v24258_v23  ;;  %19528 = vmatprep.mubr.msk.f32.mxu1 %vm21795_vm1, %v21796_v46 }
 0xa09   : > { %21041 = vmatprep.subr.bf16.mxu1 %v21794_v45 }
 0xa0c   : > { %21043 = vmatpush3.bf16.msra.mxu1 %v24286_v35 }
 0xa0d   : > { %21044 = vmatprep.subr.bf16.mxu1 %v21794_v45 }
 0xa10   : > { %21046 = vmatpush3.bf16.msra.mxu1 %v24312_v22 }
 0xa11   : > { %21047 = vmatprep.subr.bf16.mxu1 %v21794_v45 }
 0xa14   : > { %21049 = vmatpush3.bf16.msra.mxu1 %v21048_v5 }
 0xa15   : > { %21050 = vmatprep.subr.bf16.mxu1 %v21794_v45 }
 0xa17   : > { %19529 = vmatmul.mubr.msk.f32.vlgmr.msra.gmra.mrb[42].mxu1 %vm15284_vm5, %v24320_v9 }
 0xa18   : > { %21052 = vmatpush3.bf16.msra.mxu1 %v24248_v31  ;;  %19547 = vmatprep.mubr.msk.f32.mxu1 %vm21795_vm1, %v21796_v46  ;;  %v15828_v31 = vunpack.c.0.s8 %v15827_v44 }
 0xa19   : > { %21053 = vmatprep.subr.bf16.mxu1 %v21794_v45 }
 0xa1a   : > { %v15831_v7 = vsub.s32 %v15828_v31, %v24314_v59 }
 0xa1c   : > { %21055 = vmatpush3.bf16.msra.mxu1 %v24276_v38 }
 0xa1d   : > { %21056 = vmatprep.subr.bf16.mxu1 %v21794_v45 }
 0xa20   : > { %21058 = vmatpush3.bf16.msra.mxu1 %v24302_v54 }
 0xa21   : > { %21059 = vmatprep.subr.bf16.mxu1 %v21794_v45 }
 0xa24   : > { %21061 = vmatpush3.bf16.msra.mxu1 %v21000_v1 }
 0xa27   : > { %19548 = vmatmul.mubr.msk.f32.vlgmr.msra.gmra.mrb[42].mxu1 %vm15284_vm5, %v24320_v9 }
 0xafa   : > { %v15821_v23 = vpop.f32.mrb[42].mxu1 }
 0xafb   : > { %v15832_v46 = vrot.slane %v15821_v23, %v15831_v7  ;;  %v19549_v30 = vpop.f32.mrb[43].mxu1 }
 0xafd   : > { %v15833_v19 = vcombine.high %v15832_v46, %v15832_v46  ;;  %v15840_v49 = vrot.slane %v15832_v46, %v15831_v7  ;;  %16010 = vst.sshfl [vmem:[%s286_s27] sm:$0x1 pattern:$0x73625140] %v15832_v46 }
 0xaff   : > { %v15847_v45 = vrot.slane %v15833_v19, %v15831_v7  ;;  %v15848_v38 = vcombine.high %v15840_v49, %v15840_v49  ;;  %16011 = vst.sshfl [vmem:[%s286_s27 + $0x1] sm:$0x1 pattern:$0x73625140] %v15833_v19 }
 0xb01   : > { %v15849_v53 = vcombine.high %v15847_v45, %v15847_v45  ;;  %15856 = vst [vmem:[%s286_s27 + $0x2] sm:$0x1] %v15848_v38 }
 0xb03   : > { %15857 = vst [vmem:[%s286_s27 + $0x3] sm:$0x1] %v15849_v53 }
 0xb04   : > { %21721 = shalt.err (!%p21718_p7)
}
 0xb05   : > { %s21722_s28 = scalar_lea.hbm %s24394_s24, 64  ;;  %s21726_s25 = scalar_lea.hbm %s24442_s4, 128 }
 0xb06   : > { %p21723_p9 = scmp.ne.s32.totalorder %s24394_s24, %s21722_s28  ;;  %p21727_p11 = scmp.lt.u32.totalorder %s24394_s24, %s24442_s4 }
 0xb07   : > { %p21728_p2 = scmp.lt.u32.totalorder %s21726_s25, %s21722_s28  ;;  %p21730_p1 = scmp.lt.u32.totalorder %s21722_s28, %s24394_s24 }
 0xb08   : > { %p21724_p0 = pnand %p21723_p9, %p24794_p13 }
 0xb09   : > { %p21729_p12 = por %p21728_p2, %p21727_p11 }
 0xb0a   : > { %p21725_p8 = pneg %p21724_p0 }
 0xb0b   : > { %p21731_p6 = por %p21730_p1, %p21729_p12 }
 0xb0d   : > { %p21732_p10 = pnand %p21731_p6, %p21725_p8 }
 0xb0f   : > { %21735 = shalt.err (!%p21732_p10)
}
 0xb10   : > { %s21799_s21 = smov 16   ;;  %s21800_s27 = smov 1  }
 0xb11   : > { %21484 = dma.vmem_to_hbm [thread:$0]  (%p24794_p13), %s24389_s10, 64, %s24394_s24, %s15859_s30, %s21799_s21, %s21799_s21, %s21800_s27  }
 0xb12 PF: > { %s15887_s5 = sand.u32 1, %s21774_s15   ;;  %p24795_p4 = scmp.ne.s32.totalorder %s24578_s22, 0 }
 0xb13   : > { %p24796_p5 = scmp.ge.s32.totalorder %s21786_s18, 2  ;;  %s15888_s8 = scalar_lea.sflag [#allocation4], %s15887_s5 }
 0xb15   : > { %p21501_p3 = pnand %p24796_p5, %p24795_p4 }
 0xb17   : > { %21769 = dma.done.wait (!%p21501_p3), %s15888_s8, 64  }
 0xb18   : > { %21771 = vsyncadd (!%p21501_p3), %s15888_s8, 4294967232  ;;  %p21_p7 = scmp.ge.s32.totalorder %s21942_s26, 4   ;;  %s24797_s15 = smov %s21778_s16 }
 0xb19   : > { %s24798_s16 = smov %s21782_s17  ;;  %s24799_s17 = smov %s21958_s14 }
 0xb1a   : > { %s24800_s18 = smov %s21942_s26  ;;  %23 = sbr.rel (!%p21_p7) target bundleno = 10 (0xa), region = 102 }
 0xb21   :  { %15893 = vsyncpa [#allocation3], 1 }
 0xb22   :  { %15895 = vsyncpa [#allocation3 + $0x1], 1 }
 0xb23   :  { %15896 = vsyncpa [#allocation6], 1 }
 0xb24   :  { %15898 = vsyncpa [#allocation6 + $0x1], 1 }
 0xb25   :  { %15899 = vsyncpa [#allocation9], 1 }
 0xb26   :  { %15900 = vsyncpa [#allocation4], 1 }
 0xb27   :  { %15902 = vsyncpa [#allocation4 + $0x1], 1 }

</bundles_post_ra>
